<compile_context>
chip_gen: v6e
topology: v6e:2x2x1
jax: 0.10.0
libtpu: 0.0.40
codegen_flags: <defaults>
</compile_context>

<pallas_src>
import numpy as np

import jax
import jax.numpy as jnp
from jax import lax
from jax.experimental import pallas as pl
from jax.experimental.pallas import tpu as pltpu


def _gaussian_kernel_np(kernel_size: int, sigma: float) -> np.ndarray:
    """Host-side port of _get_gaussian_kernel (numpy, float32)."""
    kh = kw = int(kernel_size)
    assert kh % 2 == 1 and kw % 2 == 1, "must be odd"
    hs = np.arange(kh, dtype=np.float32) - kh // 2
    ws = np.arange(kw, dtype=np.float32) - kw // 2
    hh, ww = np.meshgrid(hs, ws, indexing="ij")
    pdist = hh ** 2 + ww ** 2
    kernel = np.exp(-pdist / (2.0 * sigma ** 2))
    kernel = kernel / kernel.sum()
    return kernel.astype(np.float32)


def _make_knn_kernel(H, W, kernel_size, weights, num_classes, k, cutoff):
    kh = kw = int(kernel_size)
    ph, pw = kh // 2, kw // 2
    He, We = H + 2 * ph, W + 2 * pw          # image + conv-padding ring
    offsets = [(dy, dx) for dy in range(-ph, ph + 1) for dx in range(-pw, pw + 1)]
    w = np.asarray(weights, dtype=np.float32)  # (kh, kw) = 1 - gaussian
    apply_cutoff = cutoff > 0

    def kernel(dpad_ref, lpad_ref, out_ref):
        # dpad_ref: (H + 4*ph, W + 4*pw) f32, depth zero-padded by 2*pad.
        # lpad_ref: (H + 2*ph, W + 2*pw) i32, labels zero-padded by pad.
        # out_ref : (H, W) i32 refined labels.

        # Anchor depth on the conv-padded ("extended") grid.
        anchor = dpad_ref[pl.ds(ph, He), pl.ds(pw, We)]            # (He, We)
        rows = lax.broadcasted_iota(jnp.int32, (He, We), 0)
        cols = lax.broadcasted_iota(jnp.int32, (He, We), 1)
        valid = (rows >= ph) & (rows < ph + H) & (cols >= pw) & (cols < pw + W)

        inf = float("inf")
        ds = [jnp.full((H, W), inf, dtype=jnp.float32) for _ in range(k)]
        ls = [jnp.zeros((H, W), dtype=jnp.int32) for _ in range(k)]

        for (dy, dx) in offsets:
            # --- unfold: neighbor depth for this window offset (zero pad) ---
            nb = dpad_ref[pl.ds(ph + dy, He), pl.ds(pw + dx, We)]  # (He, We)
            nb = jnp.where(nb < 0, inf, nb)                        # no-return -> inf
            # jump on the extended grid, zero outside the valid image (conv zero pad)
            jump = jnp.where(valid, jnp.abs(nb - anchor), 0.0)     # (He, We)

            # --- depthwise 3x3 conv with (1 - gaussian) weights ---
            dist = jnp.zeros((H, W), dtype=jnp.float32)
            for a in range(kh):
                for b in range(kw):
                    dist = dist + w[a, b] * jump[a:a + H, b:b + W]

            # --- label of this neighbor (unfold of label, zero pad) ---
            lab = lpad_ref[pl.ds(ph + dy, H), pl.ds(pw + dx, W)]   # (H, W) i32

            # --- online top-k (smallest dist) via insertion, earlier index wins ties ---
            cs = [dist < ds[i] for i in range(k)]
            new_ds = [jnp.where(cs[0], dist, ds[0])]
            new_ls = [jnp.where(cs[0], lab, ls[0])]
            for i in range(1, k):
                new_ds.append(jnp.where(cs[i - 1], ds[i - 1],
                                        jnp.where(cs[i], dist, ds[i])))
                new_ls.append(jnp.where(cs[i - 1], ls[i - 1],
                                        jnp.where(cs[i], lab, ls[i])))
            ds, ls = new_ds, new_ls

        # --- cutoff: far neighbors vote for the (dropped) invalid bin ---
        if apply_cutoff:
            ls = [jnp.where(ds[i] > cutoff, num_classes, ls[i]) for i in range(k)]

        # --- scatter_add + argmax: class-histogram vote, first max wins ---
        best_cnt = jnp.zeros((H, W), dtype=jnp.int32)
        best_cls = jnp.zeros((H, W), dtype=jnp.int32)
        for c in range(num_classes):
            cnt = (ls[0] == c).astype(jnp.int32)
            for i in range(1, k):
                cnt = cnt + (ls[i] == c).astype(jnp.int32)
            if c == 0:
                best_cnt = cnt
            else:
                better = cnt > best_cnt
                best_cnt = jnp.where(better, cnt, best_cnt)
                best_cls = jnp.where(better, c, best_cls)

        out_ref[...] = best_cls

    return kernel


def knn_filter(depth, label, *, num_classes, k=3, kernel_size=3, sigma=1.0,
               cutoff=1.0):
    """JAX/Pallas equivalent of kNN.forward.

    depth: (B, 1, H, W) float32 range image (negative = no return)
    label: (B, H, W) int class labels in [0, num_classes)
    returns (B, H, W) int32 refined labels
    """
    assert depth.ndim == 4 and depth.shape[1] == 1, "single-channel depth expected"
    B, _, H, W = depth.shape
    assert label.shape == (B, H, W)
    kh = kw = int(kernel_size)
    assert kh % 2 == 1, "must be odd"
    ph, pw = kh // 2, kw // 2

    gaussian = _gaussian_kernel_np(kernel_size, sigma)
    weights = (1.0 - gaussian).astype(np.float32)      # registered "dist_kernel"

    d = depth[:, 0].astype(jnp.float32)
    # pad depth by 2*pad: covers the unfold window AND the conv window with
    # plain static slices inside the kernel (no jnp.pad / gather in-kernel).
    dpad = jnp.pad(d, ((0, 0), (2 * ph, 2 * ph), (2 * pw, 2 * pw)))
    # labels padded by pad (unfold's zero padding -> class 0 outside, as in torch)
    lpad = jnp.pad(label.astype(jnp.int32), ((0, 0), (ph, ph), (pw, pw)))

    kernel = _make_knn_kernel(H, W, kernel_size, weights, num_classes, k, cutoff)

    return pl.pallas_call(
        kernel,
        out_shape=jax.ShapeDtypeStruct((B, H, W), jnp.int32),
        grid=(B,),
        in_specs=[
            pl.BlockSpec((None, H + 4 * ph, W + 4 * pw), lambda b: (b, 0, 0)),
            pl.BlockSpec((None, H + 2 * ph, W + 2 * pw), lambda b: (b, 0, 0)),
        ],
        out_specs=pl.BlockSpec((None, H, W), lambda b: (b, 0, 0)),
        compiler_params=pltpu.CompilerParams(
            dimension_semantics=("parallel",),
            vmem_limit_bytes=48 * 1024 * 1024,
        ),
    )(dpad, lpad)


def _reference(depth, label, *, num_classes, k, kernel_size, sigma, cutoff):
    """Pure-JAX re-implementation of kNN.forward (unfold / conv / topk / gather /
    scatter_add) used to validate the Pallas kernel."""
    B, C, H, W = depth.shape
    kh = kw = int(kernel_size)
    ph, pw = kh // 2, kw // 2
    gaussian = _gaussian_kernel_np(kernel_size, sigma)
    wk = (1.0 - gaussian).astype(np.float32)

    d = depth.astype(jnp.float32)                              # (B,1,H,W)
    dpad = jnp.pad(d, ((0, 0), (0, 0), (ph, ph), (pw, pw)))
    # F.unfold: (B, 1, K, H, W), windows in row-major order
    neigh = jnp.stack([dpad[:, :, a:a + H, b:b + W]
                       for a in range(kh) for b in range(kw)], axis=2)
    neigh = jnp.where(neigh < 0, float("inf"), neigh)
    jump = jnp.abs(neigh - d[:, :, None])                      # (B,1,K,H,W)

    # depthwise conv2d, same (1-gaussian) kernel per channel, zero padding
    jpad = jnp.pad(jump, ((0, 0), (0, 0), (0, 0), (ph, ph), (pw, pw)))
    dist = jnp.zeros_like(jump)
    for a in range(kh):
        for b in range(kw):
            dist = dist + wk[a, b] * jpad[:, :, :, a:a + H, b:b + W]

    # topk(k, largest=False) along K
    dist_b = jnp.moveaxis(dist[:, 0], 1, -1)                   # (B,H,W,K)
    neg_vals, ids = lax.top_k(-dist_b, k)                      # (B,H,W,k)
    dist_topk = -neg_vals

    lpad = jnp.pad(label.astype(jnp.int32), ((0, 0), (ph, ph), (pw, pw)))
    label_neigh = jnp.stack([lpad[:, a:a + H, b:b + W]
                             for a in range(kh) for b in range(kw)], axis=-1)
    label_topk = jnp.take_along_axis(label_neigh, ids, axis=-1)  # (B,H,W,k)
    if cutoff > 0:
        label_topk = jnp.where(dist_topk > cutoff, num_classes, label_topk)

    bins = jax.nn.one_hot(label_topk, num_classes + 1, dtype=jnp.float32).sum(axis=-2)
    refined = jnp.argmax(bins[..., :num_classes], axis=-1).astype(jnp.int32)
    return refined                                             # (B,H,W)


if __name__ == "__main__":
    key = jax.random.PRNGKey(0)
    k_depth, k_drop, k_label = jax.random.split(key, 3)

    B, C, H, W = 2, 1, 16, 128
    NUM_CLASSES = 8

    depth = jax.random.uniform(k_depth, (B, C, H, W), jnp.float32, 1.0, 10.0)
    # ~10% of rays have no return -> depth = -1 (exercises the `< 0 -> inf` path)
    no_return = jax.random.uniform(k_drop, (B, C, H, W)) < 0.1
    depth = jnp.where(no_return, jnp.float32(-1.0), depth)
    label = jax.random.randint(k_label, (B, H, W), 0, NUM_CLASSES, dtype=jnp.int32)

    out = knn_filter(depth, label, num_classes=NUM_CLASSES,
                     k=3, kernel_size=3, sigma=1.0, cutoff=1.0)
    out = jax.block_until_ready(out)

    ref = _reference(depth, label, num_classes=NUM_CLASSES,
                     k=3, kernel_size=3, sigma=1.0, cutoff=1.0)

    assert out.shape == (B, H, W) and out.dtype == jnp.int32
    assert jnp.array_equal(out, ref), "mismatch vs reference"
    print("KERNEL_OK")
</pallas_src>

<mosaic_0001>
module attributes {stable_mosaic.version = 11 : i64} {
  func.func @kernel(%arg0: i32, %arg1: memref<1x20x132xf32, #tpu.memory_space<vmem>>, %arg2: memref<1x18x130xi32, #tpu.memory_space<vmem>>, %arg3: memref<1x16x128xi32, #tpu.memory_space<vmem>>) attributes {dimension_semantics = [#tpu.dimension_semantics<parallel>], iteration_bounds = array<i64: 2>, scalar_prefetch = 0 : i64, scratch_operands = 0 : i64, tpu.core_type = #tpu.core_type<tc>, window_params = [{transform_indices = @transform_0, window_bounds = array<i64: 1, 20, 132>}, {transform_indices = @transform_1, window_bounds = array<i64: 1, 18, 130>}, {transform_indices = @transform_2, window_bounds = array<i64: 1, 16, 128>}]} {
    %c0 = arith.constant 0 : index
    %c1 = arith.constant 1 : index
    %c1_0 = arith.constant 1 : index
    %0 = vector.load %arg1[%c0, %c1, %c1_0] : memref<1x20x132xf32, #tpu.memory_space<vmem>>, vector<1x18x130xf32>
    %1 = vector.shape_cast %0 : vector<1x18x130xf32> to vector<18x130xf32>
    %2 = tpu.iota {dimensions = array<i32: 0>} : vector<18x130xi32>
    %3 = tpu.iota {dimensions = array<i32: 1>} : vector<18x130xi32>
    %c1_i32 = arith.constant 1 : i32
    %4 = vector.broadcast %c1_i32 : i32 to vector<18x130xi32>
    %5 = arith.cmpi sge, %2, %4 : vector<18x130xi32>
    %c17_i32 = arith.constant 17 : i32
    %6 = vector.broadcast %c17_i32 : i32 to vector<18x130xi32>
    %7 = arith.cmpi slt, %2, %6 : vector<18x130xi32>
    %8 = arith.andi %5, %7 : vector<18x130xi1>
    %c1_i32_1 = arith.constant 1 : i32
    %9 = vector.broadcast %c1_i32_1 : i32 to vector<18x130xi32>
    %10 = arith.cmpi sge, %3, %9 : vector<18x130xi32>
    %11 = arith.andi %8, %10 : vector<18x130xi1>
    %c129_i32 = arith.constant 129 : i32
    %12 = vector.broadcast %c129_i32 : i32 to vector<18x130xi32>
    %13 = arith.cmpi slt, %3, %12 : vector<18x130xi32>
    %14 = arith.andi %11, %13 : vector<18x130xi1>
    %cst = arith.constant 0x7F800000 : f32
    %15 = vector.broadcast %cst : f32 to vector<16x128xf32>
    %cst_2 = arith.constant 0x7F800000 : f32
    %16 = vector.broadcast %cst_2 : f32 to vector<16x128xf32>
    %cst_3 = arith.constant 0x7F800000 : f32
    %17 = vector.broadcast %cst_3 : f32 to vector<16x128xf32>
    %c0_i32 = arith.constant 0 : i32
    %18 = vector.broadcast %c0_i32 : i32 to vector<16x128xi32>
    %c0_i32_4 = arith.constant 0 : i32
    %19 = vector.broadcast %c0_i32_4 : i32 to vector<16x128xi32>
    %c0_i32_5 = arith.constant 0 : i32
    %20 = vector.broadcast %c0_i32_5 : i32 to vector<16x128xi32>
    %c0_6 = arith.constant 0 : index
    %c0_7 = arith.constant 0 : index
    %c0_8 = arith.constant 0 : index
    %21 = vector.load %arg1[%c0_6, %c0_7, %c0_8] : memref<1x20x132xf32, #tpu.memory_space<vmem>>, vector<1x18x130xf32>
    %22 = vector.shape_cast %21 : vector<1x18x130xf32> to vector<18x130xf32>
    %cst_9 = arith.constant 0.000000e+00 : f32
    %23 = vector.broadcast %cst_9 : f32 to vector<18x130xf32>
    %24 = arith.cmpf olt, %22, %23 : vector<18x130xf32>
    %cst_10 = arith.constant 0x7F800000 : f32
    %25 = vector.broadcast %cst_10 : f32 to vector<18x130xf32>
    %26 = arith.select %24, %25, %22 : vector<18x130xi1>, vector<18x130xf32>
    %27 = arith.subf %26, %1 : vector<18x130xf32>
    %28 = math.absf %27 : vector<18x130xf32>
    %cst_11 = arith.constant 0.000000e+00 : f32
    %29 = vector.broadcast %cst_11 : f32 to vector<18x130xf32>
    %30 = arith.select %14, %28, %29 : vector<18x130xi1>, vector<18x130xf32>
    %cst_12 = arith.constant 0.000000e+00 : f32
    %31 = vector.broadcast %cst_12 : f32 to vector<16x128xf32>
    %32 = vector.extract_strided_slice %30 {offsets = [0, 0], sizes = [16, 128], strides = [1, 1]} : vector<18x130xf32> to vector<16x128xf32>
    %cst_13 = arith.constant 0.924886405 : f32
    %33 = vector.broadcast %cst_13 : f32 to vector<16x128xf32>
    %34 = arith.mulf %33, %32 : vector<16x128xf32>
    %35 = arith.addf %31, %34 : vector<16x128xf32>
    %36 = vector.extract_strided_slice %30 {offsets = [0, 1], sizes = [16, 128], strides = [1, 1]} : vector<18x130xf32> to vector<16x128xf32>
    %cst_14 = arith.constant 0.876158595 : f32
    %37 = vector.broadcast %cst_14 : f32 to vector<16x128xf32>
    %38 = arith.mulf %37, %36 : vector<16x128xf32>
    %39 = arith.addf %35, %38 : vector<16x128xf32>
    %40 = vector.extract_strided_slice %30 {offsets = [0, 2], sizes = [16, 128], strides = [1, 1]} : vector<18x130xf32> to vector<16x128xf32>
    %cst_15 = arith.constant 0.924886405 : f32
    %41 = vector.broadcast %cst_15 : f32 to vector<16x128xf32>
    %42 = arith.mulf %41, %40 : vector<16x128xf32>
    %43 = arith.addf %39, %42 : vector<16x128xf32>
    %44 = vector.extract_strided_slice %30 {offsets = [1, 0], sizes = [16, 128], strides = [1, 1]} : vector<18x130xf32> to vector<16x128xf32>
    %cst_16 = arith.constant 0.876158595 : f32
    %45 = vector.broadcast %cst_16 : f32 to vector<16x128xf32>
    %46 = arith.mulf %45, %44 : vector<16x128xf32>
    %47 = arith.addf %43, %46 : vector<16x128xf32>
    %48 = vector.extract_strided_slice %30 {offsets = [1, 1], sizes = [16, 128], strides = [1, 1]} : vector<18x130xf32> to vector<16x128xf32>
    %cst_17 = arith.constant 0.795820057 : f32
    %49 = vector.broadcast %cst_17 : f32 to vector<16x128xf32>
    %50 = arith.mulf %49, %48 : vector<16x128xf32>
    %51 = arith.addf %47, %50 : vector<16x128xf32>
    %52 = vector.extract_strided_slice %30 {offsets = [1, 2], sizes = [16, 128], strides = [1, 1]} : vector<18x130xf32> to vector<16x128xf32>
    %cst_18 = arith.constant 0.876158595 : f32
    %53 = vector.broadcast %cst_18 : f32 to vector<16x128xf32>
    %54 = arith.mulf %53, %52 : vector<16x128xf32>
    %55 = arith.addf %51, %54 : vector<16x128xf32>
    %56 = vector.extract_strided_slice %30 {offsets = [2, 0], sizes = [16, 128], strides = [1, 1]} : vector<18x130xf32> to vector<16x128xf32>
    %cst_19 = arith.constant 0.924886405 : f32
    %57 = vector.broadcast %cst_19 : f32 to vector<16x128xf32>
    %58 = arith.mulf %57, %56 : vector<16x128xf32>
    %59 = arith.addf %55, %58 : vector<16x128xf32>
    %60 = vector.extract_strided_slice %30 {offsets = [2, 1], sizes = [16, 128], strides = [1, 1]} : vector<18x130xf32> to vector<16x128xf32>
    %cst_20 = arith.constant 0.876158595 : f32
    %61 = vector.broadcast %cst_20 : f32 to vector<16x128xf32>
    %62 = arith.mulf %61, %60 : vector<16x128xf32>
    %63 = arith.addf %59, %62 : vector<16x128xf32>
    %64 = vector.extract_strided_slice %30 {offsets = [2, 2], sizes = [16, 128], strides = [1, 1]} : vector<18x130xf32> to vector<16x128xf32>
    %cst_21 = arith.constant 0.924886405 : f32
    %65 = vector.broadcast %cst_21 : f32 to vector<16x128xf32>
    %66 = arith.mulf %65, %64 : vector<16x128xf32>
    %67 = arith.addf %63, %66 : vector<16x128xf32>
    %c0_22 = arith.constant 0 : index
    %c0_23 = arith.constant 0 : index
    %c0_24 = arith.constant 0 : index
    %68 = vector.load %arg2[%c0_22, %c0_23, %c0_24] : memref<1x18x130xi32, #tpu.memory_space<vmem>>, vector<1x16x128xi32>
    %69 = vector.shape_cast %68 : vector<1x16x128xi32> to vector<16x128xi32>
    %70 = arith.cmpf olt, %67, %15 : vector<16x128xf32>
    %71 = arith.cmpf olt, %67, %16 : vector<16x128xf32>
    %72 = arith.cmpf olt, %67, %17 : vector<16x128xf32>
    %73 = arith.select %70, %67, %15 : vector<16x128xi1>, vector<16x128xf32>
    %74 = arith.select %70, %69, %18 : vector<16x128xi1>, vector<16x128xi32>
    %75 = arith.select %71, %67, %16 : vector<16x128xi1>, vector<16x128xf32>
    %76 = arith.select %70, %15, %75 : vector<16x128xi1>, vector<16x128xf32>
    %77 = arith.select %71, %69, %19 : vector<16x128xi1>, vector<16x128xi32>
    %78 = arith.select %70, %18, %77 : vector<16x128xi1>, vector<16x128xi32>
    %79 = arith.select %72, %67, %17 : vector<16x128xi1>, vector<16x128xf32>
    %80 = arith.select %71, %16, %79 : vector<16x128xi1>, vector<16x128xf32>
    %81 = arith.select %72, %69, %20 : vector<16x128xi1>, vector<16x128xi32>
    %82 = arith.select %71, %19, %81 : vector<16x128xi1>, vector<16x128xi32>
    %c0_25 = arith.constant 0 : index
    %c0_26 = arith.constant 0 : index
    %c1_27 = arith.constant 1 : index
    %83 = vector.load %arg1[%c0_25, %c0_26, %c1_27] : memref<1x20x132xf32, #tpu.memory_space<vmem>>, vector<1x18x130xf32>
    %84 = vector.shape_cast %83 : vector<1x18x130xf32> to vector<18x130xf32>
    %cst_28 = arith.constant 0.000000e+00 : f32
    %85 = vector.broadcast %cst_28 : f32 to vector<18x130xf32>
    %86 = arith.cmpf olt, %84, %85 : vector<18x130xf32>
    %cst_29 = arith.constant 0x7F800000 : f32
    %87 = vector.broadcast %cst_29 : f32 to vector<18x130xf32>
    %88 = arith.select %86, %87, %84 : vector<18x130xi1>, vector<18x130xf32>
    %89 = arith.subf %88, %1 : vector<18x130xf32>
    %90 = math.absf %89 : vector<18x130xf32>
    %cst_30 = arith.constant 0.000000e+00 : f32
    %91 = vector.broadcast %cst_30 : f32 to vector<18x130xf32>
    %92 = arith.select %14, %90, %91 : vector<18x130xi1>, vector<18x130xf32>
    %cst_31 = arith.constant 0.000000e+00 : f32
    %93 = vector.broadcast %cst_31 : f32 to vector<16x128xf32>
    %94 = vector.extract_strided_slice %92 {offsets = [0, 0], sizes = [16, 128], strides = [1, 1]} : vector<18x130xf32> to vector<16x128xf32>
    %cst_32 = arith.constant 0.924886405 : f32
    %95 = vector.broadcast %cst_32 : f32 to vector<16x128xf32>
    %96 = arith.mulf %95, %94 : vector<16x128xf32>
    %97 = arith.addf %93, %96 : vector<16x128xf32>
    %98 = vector.extract_strided_slice %92 {offsets = [0, 1], sizes = [16, 128], strides = [1, 1]} : vector<18x130xf32> to vector<16x128xf32>
    %cst_33 = arith.constant 0.876158595 : f32
    %99 = vector.broadcast %cst_33 : f32 to vector<16x128xf32>
    %100 = arith.mulf %99, %98 : vector<16x128xf32>
    %101 = arith.addf %97, %100 : vector<16x128xf32>
    %102 = vector.extract_strided_slice %92 {offsets = [0, 2], sizes = [16, 128], strides = [1, 1]} : vector<18x130xf32> to vector<16x128xf32>
    %cst_34 = arith.constant 0.924886405 : f32
    %103 = vector.broadcast %cst_34 : f32 to vector<16x128xf32>
    %104 = arith.mulf %103, %102 : vector<16x128xf32>
    %105 = arith.addf %101, %104 : vector<16x128xf32>
    %106 = vector.extract_strided_slice %92 {offsets = [1, 0], sizes = [16, 128], strides = [1, 1]} : vector<18x130xf32> to vector<16x128xf32>
    %cst_35 = arith.constant 0.876158595 : f32
    %107 = vector.broadcast %cst_35 : f32 to vector<16x128xf32>
    %108 = arith.mulf %107, %106 : vector<16x128xf32>
    %109 = arith.addf %105, %108 : vector<16x128xf32>
    %110 = vector.extract_strided_slice %92 {offsets = [1, 1], sizes = [16, 128], strides = [1, 1]} : vector<18x130xf32> to vector<16x128xf32>
    %cst_36 = arith.constant 0.795820057 : f32
    %111 = vector.broadcast %cst_36 : f32 to vector<16x128xf32>
    %112 = arith.mulf %111, %110 : vector<16x128xf32>
    %113 = arith.addf %109, %112 : vector<16x128xf32>
    %114 = vector.extract_strided_slice %92 {offsets = [1, 2], sizes = [16, 128], strides = [1, 1]} : vector<18x130xf32> to vector<16x128xf32>
    %cst_37 = arith.constant 0.876158595 : f32
    %115 = vector.broadcast %cst_37 : f32 to vector<16x128xf32>
    %116 = arith.mulf %115, %114 : vector<16x128xf32>
    %117 = arith.addf %113, %116 : vector<16x128xf32>
    %118 = vector.extract_strided_slice %92 {offsets = [2, 0], sizes = [16, 128], strides = [1, 1]} : vector<18x130xf32> to vector<16x128xf32>
    %cst_38 = arith.constant 0.924886405 : f32
    %119 = vector.broadcast %cst_38 : f32 to vector<16x128xf32>
    %120 = arith.mulf %119, %118 : vector<16x128xf32>
    %121 = arith.addf %117, %120 : vector<16x128xf32>
    %122 = vector.extract_strided_slice %92 {offsets = [2, 1], sizes = [16, 128], strides = [1, 1]} : vector<18x130xf32> to vector<16x128xf32>
    %cst_39 = arith.constant 0.876158595 : f32
    %123 = vector.broadcast %cst_39 : f32 to vector<16x128xf32>
    %124 = arith.mulf %123, %122 : vector<16x128xf32>
    %125 = arith.addf %121, %124 : vector<16x128xf32>
    %126 = vector.extract_strided_slice %92 {offsets = [2, 2], sizes = [16, 128], strides = [1, 1]} : vector<18x130xf32> to vector<16x128xf32>
    %cst_40 = arith.constant 0.924886405 : f32
    %127 = vector.broadcast %cst_40 : f32 to vector<16x128xf32>
    %128 = arith.mulf %127, %126 : vector<16x128xf32>
    %129 = arith.addf %125, %128 : vector<16x128xf32>
    %c0_41 = arith.constant 0 : index
    %c0_42 = arith.constant 0 : index
    %c1_43 = arith.constant 1 : index
    %130 = vector.load %arg2[%c0_41, %c0_42, %c1_43] : memref<1x18x130xi32, #tpu.memory_space<vmem>>, vector<1x16x128xi32>
    %131 = vector.shape_cast %130 : vector<1x16x128xi32> to vector<16x128xi32>
    %132 = arith.cmpf olt, %129, %73 : vector<16x128xf32>
    %133 = arith.cmpf olt, %129, %76 : vector<16x128xf32>
    %134 = arith.cmpf olt, %129, %80 : vector<16x128xf32>
    %135 = arith.select %132, %129, %73 : vector<16x128xi1>, vector<16x128xf32>
    %136 = arith.select %132, %131, %74 : vector<16x128xi1>, vector<16x128xi32>
    %137 = arith.select %133, %129, %76 : vector<16x128xi1>, vector<16x128xf32>
    %138 = arith.select %132, %73, %137 : vector<16x128xi1>, vector<16x128xf32>
    %139 = arith.select %133, %131, %78 : vector<16x128xi1>, vector<16x128xi32>
    %140 = arith.select %132, %74, %139 : vector<16x128xi1>, vector<16x128xi32>
    %141 = arith.select %134, %129, %80 : vector<16x128xi1>, vector<16x128xf32>
    %142 = arith.select %133, %76, %141 : vector<16x128xi1>, vector<16x128xf32>
    %143 = arith.select %134, %131, %82 : vector<16x128xi1>, vector<16x128xi32>
    %144 = arith.select %133, %78, %143 : vector<16x128xi1>, vector<16x128xi32>
    %c0_44 = arith.constant 0 : index
    %c0_45 = arith.constant 0 : index
    %c2 = arith.constant 2 : index
    %145 = vector.load %arg1[%c0_44, %c0_45, %c2] : memref<1x20x132xf32, #tpu.memory_space<vmem>>, vector<1x18x130xf32>
    %146 = vector.shape_cast %145 : vector<1x18x130xf32> to vector<18x130xf32>
    %cst_46 = arith.constant 0.000000e+00 : f32
    %147 = vector.broadcast %cst_46 : f32 to vector<18x130xf32>
    %148 = arith.cmpf olt, %146, %147 : vector<18x130xf32>
    %cst_47 = arith.constant 0x7F800000 : f32
    %149 = vector.broadcast %cst_47 : f32 to vector<18x130xf32>
    %150 = arith.select %148, %149, %146 : vector<18x130xi1>, vector<18x130xf32>
    %151 = arith.subf %150, %1 : vector<18x130xf32>
    %152 = math.absf %151 : vector<18x130xf32>
    %cst_48 = arith.constant 0.000000e+00 : f32
    %153 = vector.broadcast %cst_48 : f32 to vector<18x130xf32>
    %154 = arith.select %14, %152, %153 : vector<18x130xi1>, vector<18x130xf32>
    %cst_49 = arith.constant 0.000000e+00 : f32
    %155 = vector.broadcast %cst_49 : f32 to vector<16x128xf32>
    %156 = vector.extract_strided_slice %154 {offsets = [0, 0], sizes = [16, 128], strides = [1, 1]} : vector<18x130xf32> to vector<16x128xf32>
    %cst_50 = arith.constant 0.924886405 : f32
    %157 = vector.broadcast %cst_50 : f32 to vector<16x128xf32>
    %158 = arith.mulf %157, %156 : vector<16x128xf32>
    %159 = arith.addf %155, %158 : vector<16x128xf32>
    %160 = vector.extract_strided_slice %154 {offsets = [0, 1], sizes = [16, 128], strides = [1, 1]} : vector<18x130xf32> to vector<16x128xf32>
    %cst_51 = arith.constant 0.876158595 : f32
    %161 = vector.broadcast %cst_51 : f32 to vector<16x128xf32>
    %162 = arith.mulf %161, %160 : vector<16x128xf32>
    %163 = arith.addf %159, %162 : vector<16x128xf32>
    %164 = vector.extract_strided_slice %154 {offsets = [0, 2], sizes = [16, 128], strides = [1, 1]} : vector<18x130xf32> to vector<16x128xf32>
    %cst_52 = arith.constant 0.924886405 : f32
    %165 = vector.broadcast %cst_52 : f32 to vector<16x128xf32>
    %166 = arith.mulf %165, %164 : vector<16x128xf32>
    %167 = arith.addf %163, %166 : vector<16x128xf32>
    %168 = vector.extract_strided_slice %154 {offsets = [1, 0], sizes = [16, 128], strides = [1, 1]} : vector<18x130xf32> to vector<16x128xf32>
    %cst_53 = arith.constant 0.876158595 : f32
    %169 = vector.broadcast %cst_53 : f32 to vector<16x128xf32>
    %170 = arith.mulf %169, %168 : vector<16x128xf32>
    %171 = arith.addf %167, %170 : vector<16x128xf32>
    %172 = vector.extract_strided_slice %154 {offsets = [1, 1], sizes = [16, 128], strides = [1, 1]} : vector<18x130xf32> to vector<16x128xf32>
    %cst_54 = arith.constant 0.795820057 : f32
    %173 = vector.broadcast %cst_54 : f32 to vector<16x128xf32>
    %174 = arith.mulf %173, %172 : vector<16x128xf32>
    %175 = arith.addf %171, %174 : vector<16x128xf32>
    %176 = vector.extract_strided_slice %154 {offsets = [1, 2], sizes = [16, 128], strides = [1, 1]} : vector<18x130xf32> to vector<16x128xf32>
    %cst_55 = arith.constant 0.876158595 : f32
    %177 = vector.broadcast %cst_55 : f32 to vector<16x128xf32>
    %178 = arith.mulf %177, %176 : vector<16x128xf32>
    %179 = arith.addf %175, %178 : vector<16x128xf32>
    %180 = vector.extract_strided_slice %154 {offsets = [2, 0], sizes = [16, 128], strides = [1, 1]} : vector<18x130xf32> to vector<16x128xf32>
    %cst_56 = arith.constant 0.924886405 : f32
    %181 = vector.broadcast %cst_56 : f32 to vector<16x128xf32>
    %182 = arith.mulf %181, %180 : vector<16x128xf32>
    %183 = arith.addf %179, %182 : vector<16x128xf32>
    %184 = vector.extract_strided_slice %154 {offsets = [2, 1], sizes = [16, 128], strides = [1, 1]} : vector<18x130xf32> to vector<16x128xf32>
    %cst_57 = arith.constant 0.876158595 : f32
    %185 = vector.broadcast %cst_57 : f32 to vector<16x128xf32>
    %186 = arith.mulf %185, %184 : vector<16x128xf32>
    %187 = arith.addf %183, %186 : vector<16x128xf32>
    %188 = vector.extract_strided_slice %154 {offsets = [2, 2], sizes = [16, 128], strides = [1, 1]} : vector<18x130xf32> to vector<16x128xf32>
    %cst_58 = arith.constant 0.924886405 : f32
    %189 = vector.broadcast %cst_58 : f32 to vector<16x128xf32>
    %190 = arith.mulf %189, %188 : vector<16x128xf32>
    %191 = arith.addf %187, %190 : vector<16x128xf32>
    %c0_59 = arith.constant 0 : index
    %c0_60 = arith.constant 0 : index
    %c2_61 = arith.constant 2 : index
    %192 = vector.load %arg2[%c0_59, %c0_60, %c2_61] : memref<1x18x130xi32, #tpu.memory_space<vmem>>, vector<1x16x128xi32>
    %193 = vector.shape_cast %192 : vector<1x16x128xi32> to vector<16x128xi32>
    %194 = arith.cmpf olt, %191, %135 : vector<16x128xf32>
    %195 = arith.cmpf olt, %191, %138 : vector<16x128xf32>
    %196 = arith.cmpf olt, %191, %142 : vector<16x128xf32>
    %197 = arith.select %194, %191, %135 : vector<16x128xi1>, vector<16x128xf32>
    %198 = arith.select %194, %193, %136 : vector<16x128xi1>, vector<16x128xi32>
    %199 = arith.select %195, %191, %138 : vector<16x128xi1>, vector<16x128xf32>
    %200 = arith.select %194, %135, %199 : vector<16x128xi1>, vector<16x128xf32>
    %201 = arith.select %195, %193, %140 : vector<16x128xi1>, vector<16x128xi32>
    %202 = arith.select %194, %136, %201 : vector<16x128xi1>, vector<16x128xi32>
    %203 = arith.select %196, %191, %142 : vector<16x128xi1>, vector<16x128xf32>
    %204 = arith.select %195, %138, %203 : vector<16x128xi1>, vector<16x128xf32>
    %205 = arith.select %196, %193, %144 : vector<16x128xi1>, vector<16x128xi32>
    %206 = arith.select %195, %140, %205 : vector<16x128xi1>, vector<16x128xi32>
    %c0_62 = arith.constant 0 : index
    %c1_63 = arith.constant 1 : index
    %c0_64 = arith.constant 0 : index
    %207 = vector.load %arg1[%c0_62, %c1_63, %c0_64] : memref<1x20x132xf32, #tpu.memory_space<vmem>>, vector<1x18x130xf32>
    %208 = vector.shape_cast %207 : vector<1x18x130xf32> to vector<18x130xf32>
    %cst_65 = arith.constant 0.000000e+00 : f32
    %209 = vector.broadcast %cst_65 : f32 to vector<18x130xf32>
    %210 = arith.cmpf olt, %208, %209 : vector<18x130xf32>
    %cst_66 = arith.constant 0x7F800000 : f32
    %211 = vector.broadcast %cst_66 : f32 to vector<18x130xf32>
    %212 = arith.select %210, %211, %208 : vector<18x130xi1>, vector<18x130xf32>
    %213 = arith.subf %212, %1 : vector<18x130xf32>
    %214 = math.absf %213 : vector<18x130xf32>
    %cst_67 = arith.constant 0.000000e+00 : f32
    %215 = vector.broadcast %cst_67 : f32 to vector<18x130xf32>
    %216 = arith.select %14, %214, %215 : vector<18x130xi1>, vector<18x130xf32>
    %cst_68 = arith.constant 0.000000e+00 : f32
    %217 = vector.broadcast %cst_68 : f32 to vector<16x128xf32>
    %218 = vector.extract_strided_slice %216 {offsets = [0, 0], sizes = [16, 128], strides = [1, 1]} : vector<18x130xf32> to vector<16x128xf32>
    %cst_69 = arith.constant 0.924886405 : f32
    %219 = vector.broadcast %cst_69 : f32 to vector<16x128xf32>
    %220 = arith.mulf %219, %218 : vector<16x128xf32>
    %221 = arith.addf %217, %220 : vector<16x128xf32>
    %222 = vector.extract_strided_slice %216 {offsets = [0, 1], sizes = [16, 128], strides = [1, 1]} : vector<18x130xf32> to vector<16x128xf32>
    %cst_70 = arith.constant 0.876158595 : f32
    %223 = vector.broadcast %cst_70 : f32 to vector<16x128xf32>
    %224 = arith.mulf %223, %222 : vector<16x128xf32>
    %225 = arith.addf %221, %224 : vector<16x128xf32>
    %226 = vector.extract_strided_slice %216 {offsets = [0, 2], sizes = [16, 128], strides = [1, 1]} : vector<18x130xf32> to vector<16x128xf32>
    %cst_71 = arith.constant 0.924886405 : f32
    %227 = vector.broadcast %cst_71 : f32 to vector<16x128xf32>
    %228 = arith.mulf %227, %226 : vector<16x128xf32>
    %229 = arith.addf %225, %228 : vector<16x128xf32>
    %230 = vector.extract_strided_slice %216 {offsets = [1, 0], sizes = [16, 128], strides = [1, 1]} : vector<18x130xf32> to vector<16x128xf32>
    %cst_72 = arith.constant 0.876158595 : f32
    %231 = vector.broadcast %cst_72 : f32 to vector<16x128xf32>
    %232 = arith.mulf %231, %230 : vector<16x128xf32>
    %233 = arith.addf %229, %232 : vector<16x128xf32>
    %234 = vector.extract_strided_slice %216 {offsets = [1, 1], sizes = [16, 128], strides = [1, 1]} : vector<18x130xf32> to vector<16x128xf32>
    %cst_73 = arith.constant 0.795820057 : f32
    %235 = vector.broadcast %cst_73 : f32 to vector<16x128xf32>
    %236 = arith.mulf %235, %234 : vector<16x128xf32>
    %237 = arith.addf %233, %236 : vector<16x128xf32>
    %238 = vector.extract_strided_slice %216 {offsets = [1, 2], sizes = [16, 128], strides = [1, 1]} : vector<18x130xf32> to vector<16x128xf32>
    %cst_74 = arith.constant 0.876158595 : f32
    %239 = vector.broadcast %cst_74 : f32 to vector<16x128xf32>
    %240 = arith.mulf %239, %238 : vector<16x128xf32>
    %241 = arith.addf %237, %240 : vector<16x128xf32>
    %242 = vector.extract_strided_slice %216 {offsets = [2, 0], sizes = [16, 128], strides = [1, 1]} : vector<18x130xf32> to vector<16x128xf32>
    %cst_75 = arith.constant 0.924886405 : f32
    %243 = vector.broadcast %cst_75 : f32 to vector<16x128xf32>
    %244 = arith.mulf %243, %242 : vector<16x128xf32>
    %245 = arith.addf %241, %244 : vector<16x128xf32>
    %246 = vector.extract_strided_slice %216 {offsets = [2, 1], sizes = [16, 128], strides = [1, 1]} : vector<18x130xf32> to vector<16x128xf32>
    %cst_76 = arith.constant 0.876158595 : f32
    %247 = vector.broadcast %cst_76 : f32 to vector<16x128xf32>
    %248 = arith.mulf %247, %246 : vector<16x128xf32>
    %249 = arith.addf %245, %248 : vector<16x128xf32>
    %250 = vector.extract_strided_slice %216 {offsets = [2, 2], sizes = [16, 128], strides = [1, 1]} : vector<18x130xf32> to vector<16x128xf32>
    %cst_77 = arith.constant 0.924886405 : f32
    %251 = vector.broadcast %cst_77 : f32 to vector<16x128xf32>
    %252 = arith.mulf %251, %250 : vector<16x128xf32>
    %253 = arith.addf %249, %252 : vector<16x128xf32>
    %c0_78 = arith.constant 0 : index
    %c1_79 = arith.constant 1 : index
    %c0_80 = arith.constant 0 : index
    %254 = vector.load %arg2[%c0_78, %c1_79, %c0_80] : memref<1x18x130xi32, #tpu.memory_space<vmem>>, vector<1x16x128xi32>
    %255 = vector.shape_cast %254 : vector<1x16x128xi32> to vector<16x128xi32>
    %256 = arith.cmpf olt, %253, %197 : vector<16x128xf32>
    %257 = arith.cmpf olt, %253, %200 : vector<16x128xf32>
    %258 = arith.cmpf olt, %253, %204 : vector<16x128xf32>
    %259 = arith.select %256, %253, %197 : vector<16x128xi1>, vector<16x128xf32>
    %260 = arith.select %256, %255, %198 : vector<16x128xi1>, vector<16x128xi32>
    %261 = arith.select %257, %253, %200 : vector<16x128xi1>, vector<16x128xf32>
    %262 = arith.select %256, %197, %261 : vector<16x128xi1>, vector<16x128xf32>
    %263 = arith.select %257, %255, %202 : vector<16x128xi1>, vector<16x128xi32>
    %264 = arith.select %256, %198, %263 : vector<16x128xi1>, vector<16x128xi32>
    %265 = arith.select %258, %253, %204 : vector<16x128xi1>, vector<16x128xf32>
    %266 = arith.select %257, %200, %265 : vector<16x128xi1>, vector<16x128xf32>
    %267 = arith.select %258, %255, %206 : vector<16x128xi1>, vector<16x128xi32>
    %268 = arith.select %257, %202, %267 : vector<16x128xi1>, vector<16x128xi32>
    %c0_81 = arith.constant 0 : index
    %c1_82 = arith.constant 1 : index
    %c1_83 = arith.constant 1 : index
    %269 = vector.load %arg1[%c0_81, %c1_82, %c1_83] : memref<1x20x132xf32, #tpu.memory_space<vmem>>, vector<1x18x130xf32>
    %270 = vector.shape_cast %269 : vector<1x18x130xf32> to vector<18x130xf32>
    %cst_84 = arith.constant 0.000000e+00 : f32
    %271 = vector.broadcast %cst_84 : f32 to vector<18x130xf32>
    %272 = arith.cmpf olt, %270, %271 : vector<18x130xf32>
    %cst_85 = arith.constant 0x7F800000 : f32
    %273 = vector.broadcast %cst_85 : f32 to vector<18x130xf32>
    %274 = arith.select %272, %273, %270 : vector<18x130xi1>, vector<18x130xf32>
    %275 = arith.subf %274, %1 : vector<18x130xf32>
    %276 = math.absf %275 : vector<18x130xf32>
    %cst_86 = arith.constant 0.000000e+00 : f32
    %277 = vector.broadcast %cst_86 : f32 to vector<18x130xf32>
    %278 = arith.select %14, %276, %277 : vector<18x130xi1>, vector<18x130xf32>
    %cst_87 = arith.constant 0.000000e+00 : f32
    %279 = vector.broadcast %cst_87 : f32 to vector<16x128xf32>
    %280 = vector.extract_strided_slice %278 {offsets = [0, 0], sizes = [16, 128], strides = [1, 1]} : vector<18x130xf32> to vector<16x128xf32>
    %cst_88 = arith.constant 0.924886405 : f32
    %281 = vector.broadcast %cst_88 : f32 to vector<16x128xf32>
    %282 = arith.mulf %281, %280 : vector<16x128xf32>
    %283 = arith.addf %279, %282 : vector<16x128xf32>
    %284 = vector.extract_strided_slice %278 {offsets = [0, 1], sizes = [16, 128], strides = [1, 1]} : vector<18x130xf32> to vector<16x128xf32>
    %cst_89 = arith.constant 0.876158595 : f32
    %285 = vector.broadcast %cst_89 : f32 to vector<16x128xf32>
    %286 = arith.mulf %285, %284 : vector<16x128xf32>
    %287 = arith.addf %283, %286 : vector<16x128xf32>
    %288 = vector.extract_strided_slice %278 {offsets = [0, 2], sizes = [16, 128], strides = [1, 1]} : vector<18x130xf32> to vector<16x128xf32>
    %cst_90 = arith.constant 0.924886405 : f32
    %289 = vector.broadcast %cst_90 : f32 to vector<16x128xf32>
    %290 = arith.mulf %289, %288 : vector<16x128xf32>
    %291 = arith.addf %287, %290 : vector<16x128xf32>
    %292 = vector.extract_strided_slice %278 {offsets = [1, 0], sizes = [16, 128], strides = [1, 1]} : vector<18x130xf32> to vector<16x128xf32>
    %cst_91 = arith.constant 0.876158595 : f32
    %293 = vector.broadcast %cst_91 : f32 to vector<16x128xf32>
    %294 = arith.mulf %293, %292 : vector<16x128xf32>
    %295 = arith.addf %291, %294 : vector<16x128xf32>
    %296 = vector.extract_strided_slice %278 {offsets = [1, 1], sizes = [16, 128], strides = [1, 1]} : vector<18x130xf32> to vector<16x128xf32>
    %cst_92 = arith.constant 0.795820057 : f32
    %297 = vector.broadcast %cst_92 : f32 to vector<16x128xf32>
    %298 = arith.mulf %297, %296 : vector<16x128xf32>
    %299 = arith.addf %295, %298 : vector<16x128xf32>
    %300 = vector.extract_strided_slice %278 {offsets = [1, 2], sizes = [16, 128], strides = [1, 1]} : vector<18x130xf32> to vector<16x128xf32>
    %cst_93 = arith.constant 0.876158595 : f32
    %301 = vector.broadcast %cst_93 : f32 to vector<16x128xf32>
    %302 = arith.mulf %301, %300 : vector<16x128xf32>
    %303 = arith.addf %299, %302 : vector<16x128xf32>
    %304 = vector.extract_strided_slice %278 {offsets = [2, 0], sizes = [16, 128], strides = [1, 1]} : vector<18x130xf32> to vector<16x128xf32>
    %cst_94 = arith.constant 0.924886405 : f32
    %305 = vector.broadcast %cst_94 : f32 to vector<16x128xf32>
    %306 = arith.mulf %305, %304 : vector<16x128xf32>
    %307 = arith.addf %303, %306 : vector<16x128xf32>
    %308 = vector.extract_strided_slice %278 {offsets = [2, 1], sizes = [16, 128], strides = [1, 1]} : vector<18x130xf32> to vector<16x128xf32>
    %cst_95 = arith.constant 0.876158595 : f32
    %309 = vector.broadcast %cst_95 : f32 to vector<16x128xf32>
    %310 = arith.mulf %309, %308 : vector<16x128xf32>
    %311 = arith.addf %307, %310 : vector<16x128xf32>
    %312 = vector.extract_strided_slice %278 {offsets = [2, 2], sizes = [16, 128], strides = [1, 1]} : vector<18x130xf32> to vector<16x128xf32>
    %cst_96 = arith.constant 0.924886405 : f32
    %313 = vector.broadcast %cst_96 : f32 to vector<16x128xf32>
    %314 = arith.mulf %313, %312 : vector<16x128xf32>
    %315 = arith.addf %311, %314 : vector<16x128xf32>
    %c0_97 = arith.constant 0 : index
    %c1_98 = arith.constant 1 : index
    %c1_99 = arith.constant 1 : index
    %316 = vector.load %arg2[%c0_97, %c1_98, %c1_99] : memref<1x18x130xi32, #tpu.memory_space<vmem>>, vector<1x16x128xi32>
    %317 = vector.shape_cast %316 : vector<1x16x128xi32> to vector<16x128xi32>
    %318 = arith.cmpf olt, %315, %259 : vector<16x128xf32>
    %319 = arith.cmpf olt, %315, %262 : vector<16x128xf32>
    %320 = arith.cmpf olt, %315, %266 : vector<16x128xf32>
    %321 = arith.select %318, %315, %259 : vector<16x128xi1>, vector<16x128xf32>
    %322 = arith.select %318, %317, %260 : vector<16x128xi1>, vector<16x128xi32>
    %323 = arith.select %319, %315, %262 : vector<16x128xi1>, vector<16x128xf32>
    %324 = arith.select %318, %259, %323 : vector<16x128xi1>, vector<16x128xf32>
    %325 = arith.select %319, %317, %264 : vector<16x128xi1>, vector<16x128xi32>
    %326 = arith.select %318, %260, %325 : vector<16x128xi1>, vector<16x128xi32>
    %327 = arith.select %320, %315, %266 : vector<16x128xi1>, vector<16x128xf32>
    %328 = arith.select %319, %262, %327 : vector<16x128xi1>, vector<16x128xf32>
    %329 = arith.select %320, %317, %268 : vector<16x128xi1>, vector<16x128xi32>
    %330 = arith.select %319, %264, %329 : vector<16x128xi1>, vector<16x128xi32>
    %c0_100 = arith.constant 0 : index
    %c1_101 = arith.constant 1 : index
    %c2_102 = arith.constant 2 : index
    %331 = vector.load %arg1[%c0_100, %c1_101, %c2_102] : memref<1x20x132xf32, #tpu.memory_space<vmem>>, vector<1x18x130xf32>
    %332 = vector.shape_cast %331 : vector<1x18x130xf32> to vector<18x130xf32>
    %cst_103 = arith.constant 0.000000e+00 : f32
    %333 = vector.broadcast %cst_103 : f32 to vector<18x130xf32>
    %334 = arith.cmpf olt, %332, %333 : vector<18x130xf32>
    %cst_104 = arith.constant 0x7F800000 : f32
    %335 = vector.broadcast %cst_104 : f32 to vector<18x130xf32>
    %336 = arith.select %334, %335, %332 : vector<18x130xi1>, vector<18x130xf32>
    %337 = arith.subf %336, %1 : vector<18x130xf32>
    %338 = math.absf %337 : vector<18x130xf32>
    %cst_105 = arith.constant 0.000000e+00 : f32
    %339 = vector.broadcast %cst_105 : f32 to vector<18x130xf32>
    %340 = arith.select %14, %338, %339 : vector<18x130xi1>, vector<18x130xf32>
    %cst_106 = arith.constant 0.000000e+00 : f32
    %341 = vector.broadcast %cst_106 : f32 to vector<16x128xf32>
    %342 = vector.extract_strided_slice %340 {offsets = [0, 0], sizes = [16, 128], strides = [1, 1]} : vector<18x130xf32> to vector<16x128xf32>
    %cst_107 = arith.constant 0.924886405 : f32
    %343 = vector.broadcast %cst_107 : f32 to vector<16x128xf32>
    %344 = arith.mulf %343, %342 : vector<16x128xf32>
    %345 = arith.addf %341, %344 : vector<16x128xf32>
    %346 = vector.extract_strided_slice %340 {offsets = [0, 1], sizes = [16, 128], strides = [1, 1]} : vector<18x130xf32> to vector<16x128xf32>
    %cst_108 = arith.constant 0.876158595 : f32
    %347 = vector.broadcast %cst_108 : f32 to vector<16x128xf32>
    %348 = arith.mulf %347, %346 : vector<16x128xf32>
    %349 = arith.addf %345, %348 : vector<16x128xf32>
    %350 = vector.extract_strided_slice %340 {offsets = [0, 2], sizes = [16, 128], strides = [1, 1]} : vector<18x130xf32> to vector<16x128xf32>
    %cst_109 = arith.constant 0.924886405 : f32
    %351 = vector.broadcast %cst_109 : f32 to vector<16x128xf32>
    %352 = arith.mulf %351, %350 : vector<16x128xf32>
    %353 = arith.addf %349, %352 : vector<16x128xf32>
    %354 = vector.extract_strided_slice %340 {offsets = [1, 0], sizes = [16, 128], strides = [1, 1]} : vector<18x130xf32> to vector<16x128xf32>
    %cst_110 = arith.constant 0.876158595 : f32
    %355 = vector.broadcast %cst_110 : f32 to vector<16x128xf32>
    %356 = arith.mulf %355, %354 : vector<16x128xf32>
    %357 = arith.addf %353, %356 : vector<16x128xf32>
    %358 = vector.extract_strided_slice %340 {offsets = [1, 1], sizes = [16, 128], strides = [1, 1]} : vector<18x130xf32> to vector<16x128xf32>
    %cst_111 = arith.constant 0.795820057 : f32
    %359 = vector.broadcast %cst_111 : f32 to vector<16x128xf32>
    %360 = arith.mulf %359, %358 : vector<16x128xf32>
    %361 = arith.addf %357, %360 : vector<16x128xf32>
    %362 = vector.extract_strided_slice %340 {offsets = [1, 2], sizes = [16, 128], strides = [1, 1]} : vector<18x130xf32> to vector<16x128xf32>
    %cst_112 = arith.constant 0.876158595 : f32
    %363 = vector.broadcast %cst_112 : f32 to vector<16x128xf32>
    %364 = arith.mulf %363, %362 : vector<16x128xf32>
    %365 = arith.addf %361, %364 : vector<16x128xf32>
    %366 = vector.extract_strided_slice %340 {offsets = [2, 0], sizes = [16, 128], strides = [1, 1]} : vector<18x130xf32> to vector<16x128xf32>
    %cst_113 = arith.constant 0.924886405 : f32
    %367 = vector.broadcast %cst_113 : f32 to vector<16x128xf32>
    %368 = arith.mulf %367, %366 : vector<16x128xf32>
    %369 = arith.addf %365, %368 : vector<16x128xf32>
    %370 = vector.extract_strided_slice %340 {offsets = [2, 1], sizes = [16, 128], strides = [1, 1]} : vector<18x130xf32> to vector<16x128xf32>
    %cst_114 = arith.constant 0.876158595 : f32
    %371 = vector.broadcast %cst_114 : f32 to vector<16x128xf32>
    %372 = arith.mulf %371, %370 : vector<16x128xf32>
    %373 = arith.addf %369, %372 : vector<16x128xf32>
    %374 = vector.extract_strided_slice %340 {offsets = [2, 2], sizes = [16, 128], strides = [1, 1]} : vector<18x130xf32> to vector<16x128xf32>
    %cst_115 = arith.constant 0.924886405 : f32
    %375 = vector.broadcast %cst_115 : f32 to vector<16x128xf32>
    %376 = arith.mulf %375, %374 : vector<16x128xf32>
    %377 = arith.addf %373, %376 : vector<16x128xf32>
    %c0_116 = arith.constant 0 : index
    %c1_117 = arith.constant 1 : index
    %c2_118 = arith.constant 2 : index
    %378 = vector.load %arg2[%c0_116, %c1_117, %c2_118] : memref<1x18x130xi32, #tpu.memory_space<vmem>>, vector<1x16x128xi32>
    %379 = vector.shape_cast %378 : vector<1x16x128xi32> to vector<16x128xi32>
    %380 = arith.cmpf olt, %377, %321 : vector<16x128xf32>
    %381 = arith.cmpf olt, %377, %324 : vector<16x128xf32>
    %382 = arith.cmpf olt, %377, %328 : vector<16x128xf32>
    %383 = arith.select %380, %377, %321 : vector<16x128xi1>, vector<16x128xf32>
    %384 = arith.select %380, %379, %322 : vector<16x128xi1>, vector<16x128xi32>
    %385 = arith.select %381, %377, %324 : vector<16x128xi1>, vector<16x128xf32>
    %386 = arith.select %380, %321, %385 : vector<16x128xi1>, vector<16x128xf32>
    %387 = arith.select %381, %379, %326 : vector<16x128xi1>, vector<16x128xi32>
    %388 = arith.select %380, %322, %387 : vector<16x128xi1>, vector<16x128xi32>
    %389 = arith.select %382, %377, %328 : vector<16x128xi1>, vector<16x128xf32>
    %390 = arith.select %381, %324, %389 : vector<16x128xi1>, vector<16x128xf32>
    %391 = arith.select %382, %379, %330 : vector<16x128xi1>, vector<16x128xi32>
    %392 = arith.select %381, %326, %391 : vector<16x128xi1>, vector<16x128xi32>
    %c0_119 = arith.constant 0 : index
    %c2_120 = arith.constant 2 : index
    %c0_121 = arith.constant 0 : index
    %393 = vector.load %arg1[%c0_119, %c2_120, %c0_121] : memref<1x20x132xf32, #tpu.memory_space<vmem>>, vector<1x18x130xf32>
    %394 = vector.shape_cast %393 : vector<1x18x130xf32> to vector<18x130xf32>
    %cst_122 = arith.constant 0.000000e+00 : f32
    %395 = vector.broadcast %cst_122 : f32 to vector<18x130xf32>
    %396 = arith.cmpf olt, %394, %395 : vector<18x130xf32>
    %cst_123 = arith.constant 0x7F800000 : f32
    %397 = vector.broadcast %cst_123 : f32 to vector<18x130xf32>
    %398 = arith.select %396, %397, %394 : vector<18x130xi1>, vector<18x130xf32>
    %399 = arith.subf %398, %1 : vector<18x130xf32>
    %400 = math.absf %399 : vector<18x130xf32>
    %cst_124 = arith.constant 0.000000e+00 : f32
    %401 = vector.broadcast %cst_124 : f32 to vector<18x130xf32>
    %402 = arith.select %14, %400, %401 : vector<18x130xi1>, vector<18x130xf32>
    %cst_125 = arith.constant 0.000000e+00 : f32
    %403 = vector.broadcast %cst_125 : f32 to vector<16x128xf32>
    %404 = vector.extract_strided_slice %402 {offsets = [0, 0], sizes = [16, 128], strides = [1, 1]} : vector<18x130xf32> to vector<16x128xf32>
    %cst_126 = arith.constant 0.924886405 : f32
    %405 = vector.broadcast %cst_126 : f32 to vector<16x128xf32>
    %406 = arith.mulf %405, %404 : vector<16x128xf32>
    %407 = arith.addf %403, %406 : vector<16x128xf32>
    %408 = vector.extract_strided_slice %402 {offsets = [0, 1], sizes = [16, 128], strides = [1, 1]} : vector<18x130xf32> to vector<16x128xf32>
    %cst_127 = arith.constant 0.876158595 : f32
    %409 = vector.broadcast %cst_127 : f32 to vector<16x128xf32>
    %410 = arith.mulf %409, %408 : vector<16x128xf32>
    %411 = arith.addf %407, %410 : vector<16x128xf32>
    %412 = vector.extract_strided_slice %402 {offsets = [0, 2], sizes = [16, 128], strides = [1, 1]} : vector<18x130xf32> to vector<16x128xf32>
    %cst_128 = arith.constant 0.924886405 : f32
    %413 = vector.broadcast %cst_128 : f32 to vector<16x128xf32>
    %414 = arith.mulf %413, %412 : vector<16x128xf32>
    %415 = arith.addf %411, %414 : vector<16x128xf32>
    %416 = vector.extract_strided_slice %402 {offsets = [1, 0], sizes = [16, 128], strides = [1, 1]} : vector<18x130xf32> to vector<16x128xf32>
    %cst_129 = arith.constant 0.876158595 : f32
    %417 = vector.broadcast %cst_129 : f32 to vector<16x128xf32>
    %418 = arith.mulf %417, %416 : vector<16x128xf32>
    %419 = arith.addf %415, %418 : vector<16x128xf32>
    %420 = vector.extract_strided_slice %402 {offsets = [1, 1], sizes = [16, 128], strides = [1, 1]} : vector<18x130xf32> to vector<16x128xf32>
    %cst_130 = arith.constant 0.795820057 : f32
    %421 = vector.broadcast %cst_130 : f32 to vector<16x128xf32>
    %422 = arith.mulf %421, %420 : vector<16x128xf32>
    %423 = arith.addf %419, %422 : vector<16x128xf32>
    %424 = vector.extract_strided_slice %402 {offsets = [1, 2], sizes = [16, 128], strides = [1, 1]} : vector<18x130xf32> to vector<16x128xf32>
    %cst_131 = arith.constant 0.876158595 : f32
    %425 = vector.broadcast %cst_131 : f32 to vector<16x128xf32>
    %426 = arith.mulf %425, %424 : vector<16x128xf32>
    %427 = arith.addf %423, %426 : vector<16x128xf32>
    %428 = vector.extract_strided_slice %402 {offsets = [2, 0], sizes = [16, 128], strides = [1, 1]} : vector<18x130xf32> to vector<16x128xf32>
    %cst_132 = arith.constant 0.924886405 : f32
    %429 = vector.broadcast %cst_132 : f32 to vector<16x128xf32>
    %430 = arith.mulf %429, %428 : vector<16x128xf32>
    %431 = arith.addf %427, %430 : vector<16x128xf32>
    %432 = vector.extract_strided_slice %402 {offsets = [2, 1], sizes = [16, 128], strides = [1, 1]} : vector<18x130xf32> to vector<16x128xf32>
    %cst_133 = arith.constant 0.876158595 : f32
    %433 = vector.broadcast %cst_133 : f32 to vector<16x128xf32>
    %434 = arith.mulf %433, %432 : vector<16x128xf32>
    %435 = arith.addf %431, %434 : vector<16x128xf32>
    %436 = vector.extract_strided_slice %402 {offsets = [2, 2], sizes = [16, 128], strides = [1, 1]} : vector<18x130xf32> to vector<16x128xf32>
    %cst_134 = arith.constant 0.924886405 : f32
    %437 = vector.broadcast %cst_134 : f32 to vector<16x128xf32>
    %438 = arith.mulf %437, %436 : vector<16x128xf32>
    %439 = arith.addf %435, %438 : vector<16x128xf32>
    %c0_135 = arith.constant 0 : index
    %c2_136 = arith.constant 2 : index
    %c0_137 = arith.constant 0 : index
    %440 = vector.load %arg2[%c0_135, %c2_136, %c0_137] : memref<1x18x130xi32, #tpu.memory_space<vmem>>, vector<1x16x128xi32>
    %441 = vector.shape_cast %440 : vector<1x16x128xi32> to vector<16x128xi32>
    %442 = arith.cmpf olt, %439, %383 : vector<16x128xf32>
    %443 = arith.cmpf olt, %439, %386 : vector<16x128xf32>
    %444 = arith.cmpf olt, %439, %390 : vector<16x128xf32>
    %445 = arith.select %442, %439, %383 : vector<16x128xi1>, vector<16x128xf32>
    %446 = arith.select %442, %441, %384 : vector<16x128xi1>, vector<16x128xi32>
    %447 = arith.select %443, %439, %386 : vector<16x128xi1>, vector<16x128xf32>
    %448 = arith.select %442, %383, %447 : vector<16x128xi1>, vector<16x128xf32>
    %449 = arith.select %443, %441, %388 : vector<16x128xi1>, vector<16x128xi32>
    %450 = arith.select %442, %384, %449 : vector<16x128xi1>, vector<16x128xi32>
    %451 = arith.select %444, %439, %390 : vector<16x128xi1>, vector<16x128xf32>
    %452 = arith.select %443, %386, %451 : vector<16x128xi1>, vector<16x128xf32>
    %453 = arith.select %444, %441, %392 : vector<16x128xi1>, vector<16x128xi32>
    %454 = arith.select %443, %388, %453 : vector<16x128xi1>, vector<16x128xi32>
    %c0_138 = arith.constant 0 : index
    %c2_139 = arith.constant 2 : index
    %c1_140 = arith.constant 1 : index
    %455 = vector.load %arg1[%c0_138, %c2_139, %c1_140] : memref<1x20x132xf32, #tpu.memory_space<vmem>>, vector<1x18x130xf32>
    %456 = vector.shape_cast %455 : vector<1x18x130xf32> to vector<18x130xf32>
    %cst_141 = arith.constant 0.000000e+00 : f32
    %457 = vector.broadcast %cst_141 : f32 to vector<18x130xf32>
    %458 = arith.cmpf olt, %456, %457 : vector<18x130xf32>
    %cst_142 = arith.constant 0x7F800000 : f32
    %459 = vector.broadcast %cst_142 : f32 to vector<18x130xf32>
    %460 = arith.select %458, %459, %456 : vector<18x130xi1>, vector<18x130xf32>
    %461 = arith.subf %460, %1 : vector<18x130xf32>
    %462 = math.absf %461 : vector<18x130xf32>
    %cst_143 = arith.constant 0.000000e+00 : f32
    %463 = vector.broadcast %cst_143 : f32 to vector<18x130xf32>
    %464 = arith.select %14, %462, %463 : vector<18x130xi1>, vector<18x130xf32>
    %cst_144 = arith.constant 0.000000e+00 : f32
    %465 = vector.broadcast %cst_144 : f32 to vector<16x128xf32>
    %466 = vector.extract_strided_slice %464 {offsets = [0, 0], sizes = [16, 128], strides = [1, 1]} : vector<18x130xf32> to vector<16x128xf32>
    %cst_145 = arith.constant 0.924886405 : f32
    %467 = vector.broadcast %cst_145 : f32 to vector<16x128xf32>
    %468 = arith.mulf %467, %466 : vector<16x128xf32>
    %469 = arith.addf %465, %468 : vector<16x128xf32>
    %470 = vector.extract_strided_slice %464 {offsets = [0, 1], sizes = [16, 128], strides = [1, 1]} : vector<18x130xf32> to vector<16x128xf32>
    %cst_146 = arith.constant 0.876158595 : f32
    %471 = vector.broadcast %cst_146 : f32 to vector<16x128xf32>
    %472 = arith.mulf %471, %470 : vector<16x128xf32>
    %473 = arith.addf %469, %472 : vector<16x128xf32>
    %474 = vector.extract_strided_slice %464 {offsets = [0, 2], sizes = [16, 128], strides = [1, 1]} : vector<18x130xf32> to vector<16x128xf32>
    %cst_147 = arith.constant 0.924886405 : f32
    %475 = vector.broadcast %cst_147 : f32 to vector<16x128xf32>
    %476 = arith.mulf %475, %474 : vector<16x128xf32>
    %477 = arith.addf %473, %476 : vector<16x128xf32>
    %478 = vector.extract_strided_slice %464 {offsets = [1, 0], sizes = [16, 128], strides = [1, 1]} : vector<18x130xf32> to vector<16x128xf32>
    %cst_148 = arith.constant 0.876158595 : f32
    %479 = vector.broadcast %cst_148 : f32 to vector<16x128xf32>
    %480 = arith.mulf %479, %478 : vector<16x128xf32>
    %481 = arith.addf %477, %480 : vector<16x128xf32>
    %482 = vector.extract_strided_slice %464 {offsets = [1, 1], sizes = [16, 128], strides = [1, 1]} : vector<18x130xf32> to vector<16x128xf32>
    %cst_149 = arith.constant 0.795820057 : f32
    %483 = vector.broadcast %cst_149 : f32 to vector<16x128xf32>
    %484 = arith.mulf %483, %482 : vector<16x128xf32>
    %485 = arith.addf %481, %484 : vector<16x128xf32>
    %486 = vector.extract_strided_slice %464 {offsets = [1, 2], sizes = [16, 128], strides = [1, 1]} : vector<18x130xf32> to vector<16x128xf32>
    %cst_150 = arith.constant 0.876158595 : f32
    %487 = vector.broadcast %cst_150 : f32 to vector<16x128xf32>
    %488 = arith.mulf %487, %486 : vector<16x128xf32>
    %489 = arith.addf %485, %488 : vector<16x128xf32>
    %490 = vector.extract_strided_slice %464 {offsets = [2, 0], sizes = [16, 128], strides = [1, 1]} : vector<18x130xf32> to vector<16x128xf32>
    %cst_151 = arith.constant 0.924886405 : f32
    %491 = vector.broadcast %cst_151 : f32 to vector<16x128xf32>
    %492 = arith.mulf %491, %490 : vector<16x128xf32>
    %493 = arith.addf %489, %492 : vector<16x128xf32>
    %494 = vector.extract_strided_slice %464 {offsets = [2, 1], sizes = [16, 128], strides = [1, 1]} : vector<18x130xf32> to vector<16x128xf32>
    %cst_152 = arith.constant 0.876158595 : f32
    %495 = vector.broadcast %cst_152 : f32 to vector<16x128xf32>
    %496 = arith.mulf %495, %494 : vector<16x128xf32>
    %497 = arith.addf %493, %496 : vector<16x128xf32>
    %498 = vector.extract_strided_slice %464 {offsets = [2, 2], sizes = [16, 128], strides = [1, 1]} : vector<18x130xf32> to vector<16x128xf32>
    %cst_153 = arith.constant 0.924886405 : f32
    %499 = vector.broadcast %cst_153 : f32 to vector<16x128xf32>
    %500 = arith.mulf %499, %498 : vector<16x128xf32>
    %501 = arith.addf %497, %500 : vector<16x128xf32>
    %c0_154 = arith.constant 0 : index
    %c2_155 = arith.constant 2 : index
    %c1_156 = arith.constant 1 : index
    %502 = vector.load %arg2[%c0_154, %c2_155, %c1_156] : memref<1x18x130xi32, #tpu.memory_space<vmem>>, vector<1x16x128xi32>
    %503 = vector.shape_cast %502 : vector<1x16x128xi32> to vector<16x128xi32>
    %504 = arith.cmpf olt, %501, %445 : vector<16x128xf32>
    %505 = arith.cmpf olt, %501, %448 : vector<16x128xf32>
    %506 = arith.cmpf olt, %501, %452 : vector<16x128xf32>
    %507 = arith.select %504, %501, %445 : vector<16x128xi1>, vector<16x128xf32>
    %508 = arith.select %504, %503, %446 : vector<16x128xi1>, vector<16x128xi32>
    %509 = arith.select %505, %501, %448 : vector<16x128xi1>, vector<16x128xf32>
    %510 = arith.select %504, %445, %509 : vector<16x128xi1>, vector<16x128xf32>
    %511 = arith.select %505, %503, %450 : vector<16x128xi1>, vector<16x128xi32>
    %512 = arith.select %504, %446, %511 : vector<16x128xi1>, vector<16x128xi32>
    %513 = arith.select %506, %501, %452 : vector<16x128xi1>, vector<16x128xf32>
    %514 = arith.select %505, %448, %513 : vector<16x128xi1>, vector<16x128xf32>
    %515 = arith.select %506, %503, %454 : vector<16x128xi1>, vector<16x128xi32>
    %516 = arith.select %505, %450, %515 : vector<16x128xi1>, vector<16x128xi32>
    %c0_157 = arith.constant 0 : index
    %c2_158 = arith.constant 2 : index
    %c2_159 = arith.constant 2 : index
    %517 = vector.load %arg1[%c0_157, %c2_158, %c2_159] : memref<1x20x132xf32, #tpu.memory_space<vmem>>, vector<1x18x130xf32>
    %518 = vector.shape_cast %517 : vector<1x18x130xf32> to vector<18x130xf32>
    %cst_160 = arith.constant 0.000000e+00 : f32
    %519 = vector.broadcast %cst_160 : f32 to vector<18x130xf32>
    %520 = arith.cmpf olt, %518, %519 : vector<18x130xf32>
    %cst_161 = arith.constant 0x7F800000 : f32
    %521 = vector.broadcast %cst_161 : f32 to vector<18x130xf32>
    %522 = arith.select %520, %521, %518 : vector<18x130xi1>, vector<18x130xf32>
    %523 = arith.subf %522, %1 : vector<18x130xf32>
    %524 = math.absf %523 : vector<18x130xf32>
    %cst_162 = arith.constant 0.000000e+00 : f32
    %525 = vector.broadcast %cst_162 : f32 to vector<18x130xf32>
    %526 = arith.select %14, %524, %525 : vector<18x130xi1>, vector<18x130xf32>
    %cst_163 = arith.constant 0.000000e+00 : f32
    %527 = vector.broadcast %cst_163 : f32 to vector<16x128xf32>
    %528 = vector.extract_strided_slice %526 {offsets = [0, 0], sizes = [16, 128], strides = [1, 1]} : vector<18x130xf32> to vector<16x128xf32>
    %cst_164 = arith.constant 0.924886405 : f32
    %529 = vector.broadcast %cst_164 : f32 to vector<16x128xf32>
    %530 = arith.mulf %529, %528 : vector<16x128xf32>
    %531 = arith.addf %527, %530 : vector<16x128xf32>
    %532 = vector.extract_strided_slice %526 {offsets = [0, 1], sizes = [16, 128], strides = [1, 1]} : vector<18x130xf32> to vector<16x128xf32>
    %cst_165 = arith.constant 0.876158595 : f32
    %533 = vector.broadcast %cst_165 : f32 to vector<16x128xf32>
    %534 = arith.mulf %533, %532 : vector<16x128xf32>
    %535 = arith.addf %531, %534 : vector<16x128xf32>
    %536 = vector.extract_strided_slice %526 {offsets = [0, 2], sizes = [16, 128], strides = [1, 1]} : vector<18x130xf32> to vector<16x128xf32>
    %cst_166 = arith.constant 0.924886405 : f32
    %537 = vector.broadcast %cst_166 : f32 to vector<16x128xf32>
    %538 = arith.mulf %537, %536 : vector<16x128xf32>
    %539 = arith.addf %535, %538 : vector<16x128xf32>
    %540 = vector.extract_strided_slice %526 {offsets = [1, 0], sizes = [16, 128], strides = [1, 1]} : vector<18x130xf32> to vector<16x128xf32>
    %cst_167 = arith.constant 0.876158595 : f32
    %541 = vector.broadcast %cst_167 : f32 to vector<16x128xf32>
    %542 = arith.mulf %541, %540 : vector<16x128xf32>
    %543 = arith.addf %539, %542 : vector<16x128xf32>
    %544 = vector.extract_strided_slice %526 {offsets = [1, 1], sizes = [16, 128], strides = [1, 1]} : vector<18x130xf32> to vector<16x128xf32>
    %cst_168 = arith.constant 0.795820057 : f32
    %545 = vector.broadcast %cst_168 : f32 to vector<16x128xf32>
    %546 = arith.mulf %545, %544 : vector<16x128xf32>
    %547 = arith.addf %543, %546 : vector<16x128xf32>
    %548 = vector.extract_strided_slice %526 {offsets = [1, 2], sizes = [16, 128], strides = [1, 1]} : vector<18x130xf32> to vector<16x128xf32>
    %cst_169 = arith.constant 0.876158595 : f32
    %549 = vector.broadcast %cst_169 : f32 to vector<16x128xf32>
    %550 = arith.mulf %549, %548 : vector<16x128xf32>
    %551 = arith.addf %547, %550 : vector<16x128xf32>
    %552 = vector.extract_strided_slice %526 {offsets = [2, 0], sizes = [16, 128], strides = [1, 1]} : vector<18x130xf32> to vector<16x128xf32>
    %cst_170 = arith.constant 0.924886405 : f32
    %553 = vector.broadcast %cst_170 : f32 to vector<16x128xf32>
    %554 = arith.mulf %553, %552 : vector<16x128xf32>
    %555 = arith.addf %551, %554 : vector<16x128xf32>
    %556 = vector.extract_strided_slice %526 {offsets = [2, 1], sizes = [16, 128], strides = [1, 1]} : vector<18x130xf32> to vector<16x128xf32>
    %cst_171 = arith.constant 0.876158595 : f32
    %557 = vector.broadcast %cst_171 : f32 to vector<16x128xf32>
    %558 = arith.mulf %557, %556 : vector<16x128xf32>
    %559 = arith.addf %555, %558 : vector<16x128xf32>
    %560 = vector.extract_strided_slice %526 {offsets = [2, 2], sizes = [16, 128], strides = [1, 1]} : vector<18x130xf32> to vector<16x128xf32>
    %cst_172 = arith.constant 0.924886405 : f32
    %561 = vector.broadcast %cst_172 : f32 to vector<16x128xf32>
    %562 = arith.mulf %561, %560 : vector<16x128xf32>
    %563 = arith.addf %559, %562 : vector<16x128xf32>
    %c0_173 = arith.constant 0 : index
    %c2_174 = arith.constant 2 : index
    %c2_175 = arith.constant 2 : index
    %564 = vector.load %arg2[%c0_173, %c2_174, %c2_175] : memref<1x18x130xi32, #tpu.memory_space<vmem>>, vector<1x16x128xi32>
    %565 = vector.shape_cast %564 : vector<1x16x128xi32> to vector<16x128xi32>
    %566 = arith.cmpf olt, %563, %507 : vector<16x128xf32>
    %567 = arith.cmpf olt, %563, %510 : vector<16x128xf32>
    %568 = arith.cmpf olt, %563, %514 : vector<16x128xf32>
    %569 = arith.select %566, %563, %507 : vector<16x128xi1>, vector<16x128xf32>
    %570 = arith.select %566, %565, %508 : vector<16x128xi1>, vector<16x128xi32>
    %571 = arith.select %567, %563, %510 : vector<16x128xi1>, vector<16x128xf32>
    %572 = arith.select %566, %507, %571 : vector<16x128xi1>, vector<16x128xf32>
    %573 = arith.select %567, %565, %512 : vector<16x128xi1>, vector<16x128xi32>
    %574 = arith.select %566, %508, %573 : vector<16x128xi1>, vector<16x128xi32>
    %575 = arith.select %568, %563, %514 : vector<16x128xi1>, vector<16x128xf32>
    %576 = arith.select %567, %510, %575 : vector<16x128xi1>, vector<16x128xf32>
    %577 = arith.select %568, %565, %516 : vector<16x128xi1>, vector<16x128xi32>
    %578 = arith.select %567, %512, %577 : vector<16x128xi1>, vector<16x128xi32>
    %cst_176 = arith.constant 1.000000e+00 : f32
    %579 = vector.broadcast %cst_176 : f32 to vector<16x128xf32>
    %580 = arith.cmpf ogt, %569, %579 : vector<16x128xf32>
    %c8_i32 = arith.constant 8 : i32
    %581 = vector.broadcast %c8_i32 : i32 to vector<16x128xi32>
    %582 = arith.select %580, %581, %570 : vector<16x128xi1>, vector<16x128xi32>
    %cst_177 = arith.constant 1.000000e+00 : f32
    %583 = vector.broadcast %cst_177 : f32 to vector<16x128xf32>
    %584 = arith.cmpf ogt, %572, %583 : vector<16x128xf32>
    %c8_i32_178 = arith.constant 8 : i32
    %585 = vector.broadcast %c8_i32_178 : i32 to vector<16x128xi32>
    %586 = arith.select %584, %585, %574 : vector<16x128xi1>, vector<16x128xi32>
    %cst_179 = arith.constant 1.000000e+00 : f32
    %587 = vector.broadcast %cst_179 : f32 to vector<16x128xf32>
    %588 = arith.cmpf ogt, %576, %587 : vector<16x128xf32>
    %c8_i32_180 = arith.constant 8 : i32
    %589 = vector.broadcast %c8_i32_180 : i32 to vector<16x128xi32>
    %590 = arith.select %588, %589, %578 : vector<16x128xi1>, vector<16x128xi32>
    %c0_i32_181 = arith.constant 0 : i32
    %591 = vector.broadcast %c0_i32_181 : i32 to vector<16x128xi32>
    %c0_i32_182 = arith.constant 0 : i32
    %592 = vector.broadcast %c0_i32_182 : i32 to vector<16x128xi32>
    %593 = arith.cmpi eq, %582, %592 : vector<16x128xi32>
    %594 = arith.extui %593 : vector<16x128xi1> to vector<16x128xi32>
    %c0_i32_183 = arith.constant 0 : i32
    %595 = vector.broadcast %c0_i32_183 : i32 to vector<16x128xi32>
    %596 = arith.cmpi eq, %586, %595 : vector<16x128xi32>
    %597 = arith.extui %596 : vector<16x128xi1> to vector<16x128xi32>
    %598 = arith.addi %594, %597 : vector<16x128xi32>
    %c0_i32_184 = arith.constant 0 : i32
    %599 = vector.broadcast %c0_i32_184 : i32 to vector<16x128xi32>
    %600 = arith.cmpi eq, %590, %599 : vector<16x128xi32>
    %601 = arith.extui %600 : vector<16x128xi1> to vector<16x128xi32>
    %602 = arith.addi %598, %601 : vector<16x128xi32>
    %c1_i32_185 = arith.constant 1 : i32
    %603 = vector.broadcast %c1_i32_185 : i32 to vector<16x128xi32>
    %604 = arith.cmpi eq, %582, %603 : vector<16x128xi32>
    %605 = arith.extui %604 : vector<16x128xi1> to vector<16x128xi32>
    %c1_i32_186 = arith.constant 1 : i32
    %606 = vector.broadcast %c1_i32_186 : i32 to vector<16x128xi32>
    %607 = arith.cmpi eq, %586, %606 : vector<16x128xi32>
    %608 = arith.extui %607 : vector<16x128xi1> to vector<16x128xi32>
    %609 = arith.addi %605, %608 : vector<16x128xi32>
    %c1_i32_187 = arith.constant 1 : i32
    %610 = vector.broadcast %c1_i32_187 : i32 to vector<16x128xi32>
    %611 = arith.cmpi eq, %590, %610 : vector<16x128xi32>
    %612 = arith.extui %611 : vector<16x128xi1> to vector<16x128xi32>
    %613 = arith.addi %609, %612 : vector<16x128xi32>
    %614 = arith.cmpi sgt, %613, %602 : vector<16x128xi32>
    %615 = arith.select %614, %613, %602 : vector<16x128xi1>, vector<16x128xi32>
    %c1_i32_188 = arith.constant 1 : i32
    %616 = vector.broadcast %c1_i32_188 : i32 to vector<16x128xi32>
    %617 = arith.select %614, %616, %591 : vector<16x128xi1>, vector<16x128xi32>
    %c2_i32 = arith.constant 2 : i32
    %618 = vector.broadcast %c2_i32 : i32 to vector<16x128xi32>
    %619 = arith.cmpi eq, %582, %618 : vector<16x128xi32>
    %620 = arith.extui %619 : vector<16x128xi1> to vector<16x128xi32>
    %c2_i32_189 = arith.constant 2 : i32
    %621 = vector.broadcast %c2_i32_189 : i32 to vector<16x128xi32>
    %622 = arith.cmpi eq, %586, %621 : vector<16x128xi32>
    %623 = arith.extui %622 : vector<16x128xi1> to vector<16x128xi32>
    %624 = arith.addi %620, %623 : vector<16x128xi32>
    %c2_i32_190 = arith.constant 2 : i32
    %625 = vector.broadcast %c2_i32_190 : i32 to vector<16x128xi32>
    %626 = arith.cmpi eq, %590, %625 : vector<16x128xi32>
    %627 = arith.extui %626 : vector<16x128xi1> to vector<16x128xi32>
    %628 = arith.addi %624, %627 : vector<16x128xi32>
    %629 = arith.cmpi sgt, %628, %615 : vector<16x128xi32>
    %630 = arith.select %629, %628, %615 : vector<16x128xi1>, vector<16x128xi32>
    %c2_i32_191 = arith.constant 2 : i32
    %631 = vector.broadcast %c2_i32_191 : i32 to vector<16x128xi32>
    %632 = arith.select %629, %631, %617 : vector<16x128xi1>, vector<16x128xi32>
    %c3_i32 = arith.constant 3 : i32
    %633 = vector.broadcast %c3_i32 : i32 to vector<16x128xi32>
    %634 = arith.cmpi eq, %582, %633 : vector<16x128xi32>
    %635 = arith.extui %634 : vector<16x128xi1> to vector<16x128xi32>
    %c3_i32_192 = arith.constant 3 : i32
    %636 = vector.broadcast %c3_i32_192 : i32 to vector<16x128xi32>
    %637 = arith.cmpi eq, %586, %636 : vector<16x128xi32>
    %638 = arith.extui %637 : vector<16x128xi1> to vector<16x128xi32>
    %639 = arith.addi %635, %638 : vector<16x128xi32>
    %c3_i32_193 = arith.constant 3 : i32
    %640 = vector.broadcast %c3_i32_193 : i32 to vector<16x128xi32>
    %641 = arith.cmpi eq, %590, %640 : vector<16x128xi32>
    %642 = arith.extui %641 : vector<16x128xi1> to vector<16x128xi32>
    %643 = arith.addi %639, %642 : vector<16x128xi32>
    %644 = arith.cmpi sgt, %643, %630 : vector<16x128xi32>
    %645 = arith.select %644, %643, %630 : vector<16x128xi1>, vector<16x128xi32>
    %c3_i32_194 = arith.constant 3 : i32
    %646 = vector.broadcast %c3_i32_194 : i32 to vector<16x128xi32>
    %647 = arith.select %644, %646, %632 : vector<16x128xi1>, vector<16x128xi32>
    %c4_i32 = arith.constant 4 : i32
    %648 = vector.broadcast %c4_i32 : i32 to vector<16x128xi32>
    %649 = arith.cmpi eq, %582, %648 : vector<16x128xi32>
    %650 = arith.extui %649 : vector<16x128xi1> to vector<16x128xi32>
    %c4_i32_195 = arith.constant 4 : i32
    %651 = vector.broadcast %c4_i32_195 : i32 to vector<16x128xi32>
    %652 = arith.cmpi eq, %586, %651 : vector<16x128xi32>
    %653 = arith.extui %652 : vector<16x128xi1> to vector<16x128xi32>
    %654 = arith.addi %650, %653 : vector<16x128xi32>
    %c4_i32_196 = arith.constant 4 : i32
    %655 = vector.broadcast %c4_i32_196 : i32 to vector<16x128xi32>
    %656 = arith.cmpi eq, %590, %655 : vector<16x128xi32>
    %657 = arith.extui %656 : vector<16x128xi1> to vector<16x128xi32>
    %658 = arith.addi %654, %657 : vector<16x128xi32>
    %659 = arith.cmpi sgt, %658, %645 : vector<16x128xi32>
    %660 = arith.select %659, %658, %645 : vector<16x128xi1>, vector<16x128xi32>
    %c4_i32_197 = arith.constant 4 : i32
    %661 = vector.broadcast %c4_i32_197 : i32 to vector<16x128xi32>
    %662 = arith.select %659, %661, %647 : vector<16x128xi1>, vector<16x128xi32>
    %c5_i32 = arith.constant 5 : i32
    %663 = vector.broadcast %c5_i32 : i32 to vector<16x128xi32>
    %664 = arith.cmpi eq, %582, %663 : vector<16x128xi32>
    %665 = arith.extui %664 : vector<16x128xi1> to vector<16x128xi32>
    %c5_i32_198 = arith.constant 5 : i32
    %666 = vector.broadcast %c5_i32_198 : i32 to vector<16x128xi32>
    %667 = arith.cmpi eq, %586, %666 : vector<16x128xi32>
    %668 = arith.extui %667 : vector<16x128xi1> to vector<16x128xi32>
    %669 = arith.addi %665, %668 : vector<16x128xi32>
    %c5_i32_199 = arith.constant 5 : i32
    %670 = vector.broadcast %c5_i32_199 : i32 to vector<16x128xi32>
    %671 = arith.cmpi eq, %590, %670 : vector<16x128xi32>
    %672 = arith.extui %671 : vector<16x128xi1> to vector<16x128xi32>
    %673 = arith.addi %669, %672 : vector<16x128xi32>
    %674 = arith.cmpi sgt, %673, %660 : vector<16x128xi32>
    %675 = arith.select %674, %673, %660 : vector<16x128xi1>, vector<16x128xi32>
    %c5_i32_200 = arith.constant 5 : i32
    %676 = vector.broadcast %c5_i32_200 : i32 to vector<16x128xi32>
    %677 = arith.select %674, %676, %662 : vector<16x128xi1>, vector<16x128xi32>
    %c6_i32 = arith.constant 6 : i32
    %678 = vector.broadcast %c6_i32 : i32 to vector<16x128xi32>
    %679 = arith.cmpi eq, %582, %678 : vector<16x128xi32>
    %680 = arith.extui %679 : vector<16x128xi1> to vector<16x128xi32>
    %c6_i32_201 = arith.constant 6 : i32
    %681 = vector.broadcast %c6_i32_201 : i32 to vector<16x128xi32>
    %682 = arith.cmpi eq, %586, %681 : vector<16x128xi32>
    %683 = arith.extui %682 : vector<16x128xi1> to vector<16x128xi32>
    %684 = arith.addi %680, %683 : vector<16x128xi32>
    %c6_i32_202 = arith.constant 6 : i32
    %685 = vector.broadcast %c6_i32_202 : i32 to vector<16x128xi32>
    %686 = arith.cmpi eq, %590, %685 : vector<16x128xi32>
    %687 = arith.extui %686 : vector<16x128xi1> to vector<16x128xi32>
    %688 = arith.addi %684, %687 : vector<16x128xi32>
    %689 = arith.cmpi sgt, %688, %675 : vector<16x128xi32>
    %690 = arith.select %689, %688, %675 : vector<16x128xi1>, vector<16x128xi32>
    %c6_i32_203 = arith.constant 6 : i32
    %691 = vector.broadcast %c6_i32_203 : i32 to vector<16x128xi32>
    %692 = arith.select %689, %691, %677 : vector<16x128xi1>, vector<16x128xi32>
    %c7_i32 = arith.constant 7 : i32
    %693 = vector.broadcast %c7_i32 : i32 to vector<16x128xi32>
    %694 = arith.cmpi eq, %582, %693 : vector<16x128xi32>
    %695 = arith.extui %694 : vector<16x128xi1> to vector<16x128xi32>
    %c7_i32_204 = arith.constant 7 : i32
    %696 = vector.broadcast %c7_i32_204 : i32 to vector<16x128xi32>
    %697 = arith.cmpi eq, %586, %696 : vector<16x128xi32>
    %698 = arith.extui %697 : vector<16x128xi1> to vector<16x128xi32>
    %699 = arith.addi %695, %698 : vector<16x128xi32>
    %c7_i32_205 = arith.constant 7 : i32
    %700 = vector.broadcast %c7_i32_205 : i32 to vector<16x128xi32>
    %701 = arith.cmpi eq, %590, %700 : vector<16x128xi32>
    %702 = arith.extui %701 : vector<16x128xi1> to vector<16x128xi32>
    %703 = arith.addi %699, %702 : vector<16x128xi32>
    %704 = arith.cmpi sgt, %703, %690 : vector<16x128xi32>
    %c7_i32_206 = arith.constant 7 : i32
    %705 = vector.broadcast %c7_i32_206 : i32 to vector<16x128xi32>
    %706 = arith.select %704, %705, %692 : vector<16x128xi1>, vector<16x128xi32>
    %c0_207 = arith.constant 0 : index
    %c0_208 = arith.constant 0 : index
    %c0_209 = arith.constant 0 : index
    %707 = vector.load %arg3[%c0_207, %c0_208, %c0_209] : memref<1x16x128xi32, #tpu.memory_space<vmem>>, vector<1x16x128xi32>
    %708 = vector.shape_cast %707 : vector<1x16x128xi32> to vector<16x128xi32>
    %709 = vector.shape_cast %706 : vector<16x128xi32> to vector<1x16x128xi32>
    tpu.vector_store %arg3[%c0_207, %c0_208, %c0_209], %709 {strides = array<i32>} : memref<1x16x128xi32, #tpu.memory_space<vmem>>, vector<1x16x128xi32>,
    return
  }
  func.func @transform_0(%arg0: i32) -> (i32, i32, i32) {
    %c0_i32 = arith.constant 0 : i32
    %c0_i32_0 = arith.constant 0 : i32
    %c0_i32_1 = arith.constant 0 : i32
    return %arg0, %c0_i32, %c0_i32_0 : i32, i32, i32
  }
  func.func @transform_1(%arg0: i32) -> (i32, i32, i32) {
    %c0_i32 = arith.constant 0 : i32
    %c0_i32_0 = arith.constant 0 : i32
    %c0_i32_1 = arith.constant 0 : i32
    return %arg0, %c0_i32, %c0_i32_0 : i32, i32, i32
  }
  func.func @transform_2(%arg0: i32) -> (i32, i32, i32) {
    %c0_i32 = arith.constant 0 : i32
    %c0_i32_0 = arith.constant 0 : i32
    %c0_i32_1 = arith.constant 0 : i32
    return %arg0, %c0_i32, %c0_i32_0 : i32, i32, i32
  }
}

</mosaic_0001>

<bundles_post_ra>
// kernel: tpu_custom_call.1
= control target key start
LH: loop header
LB: loop body
LE: loop exit
PB: predicated region body
PF: predicated region fallthrough
CT: control target
= control target key end

     0   :  { %7 = vsyncpa [#allocation3], 0  ;;  %s6267_s0 = inlined_call_operand.vmem [shape: f32[2,20,132], index: 0, kind: input, shape index: {}]   ;;  %s6268_s1 = inlined_call_operand.vmem [shape: s32[2,18,130], index: 1, kind: input, shape index: {}]   ;;  %s6269_s2 = inlined_call_operand.hbm [shape: s32[2,16,128], index: 2, kind: output, shape index: {}]  }
   0x1   :  { %9 = vsyncpa [#allocation3 + $0x1], 0  ;;  %s3064_s9 = smov 0   ;;  %s3066_s10 = smov 0  }
   0x2   :  { %s3068_s11 = smov 0   ;;  %s3070_s12 = smov 0  }
   0x3 LB: > { %s3085_s13 = sadd.s32 4294967295, %s3040_s12   ;;  %s2910_s14 = sadd.s32 4294967294, %s3040_s12   ;;  %s3040_s12 = sphi %s3070_s12, %s6708_s12   ;;  %s3036_s11 = sphi %s3068_s11, %s6707_s11   ;;  %s3032_s10 = sphi %s3066_s10, %s6706_s10   ;;  %s3028_s9 = sphi %s3064_s9, %s6705_s9  }
   0x4   : > { %s3089_s15 = sadd.s32 1, %s3040_s12   ;;  %s74_s16 = sadd.s32 1, %s3036_s11 }
   0x5   : > { %s71_s17 = ssub.s32 %s3040_s12, %s3089_s15  ;;  %p84_p0 = scmp.ne.s32.totalorder %s3036_s11, %s3032_s10 }
   0x6   : > { %p72_p1 = scmp.eq.s32.totalorder %s71_s17, 0  ;;  %p85_p2 = scmp.eq.s32.totalorder %s3085_s13, 1 }
   0x7   : > { %p90_p3 = scmp.ne.s32.totalorder %s3032_s10, %s3028_s9  ;;  %p91_p4 = scmp.eq.s32.totalorder %s2910_s14, 1 }
   0x8   : > { %s3100_s18 = scalar_select %p72_p1, %s3036_s11, %s74_s16  }
   0x9   : > { %p3102_p5 = por %p85_p2, %p84_p0  ;;  %p3106_p6 = por %p91_p4, %p90_p3 }
   0xa   : > { %p2913_p7 = scmp.ge.s32.totalorder %s3040_s12, 1  ;;  %p125_p8 = scmp.lt.s32.totalorder %s3040_s12, 3 }
   0xc   : > { %p126_p9 = pnand %p2913_p7, %p125_p8 }
   0xe   : > { %129 = sbr.rel (%p126_p9) target bundleno = 1545 (0x609), region = 28 }
  0x13   : > { %p152_p10 = scmp.lt.s32.totalorder %s3085_s13, 1  ;;  %vm222_vm0 = vcmask 1046528   ;;  %s3042_s26 = smov 127   ;;  %v168_v42 = vlaneseq  ;;  %vm245_vm9 = vcmask 1039360   ;;  %v6327_v57 = vmov 0 }
  0x14   : > { %s3043_s30 = smov 1   ;;  %v6330_v61 = vmov 0  ;;  %s3044_s3 = smov 126  }
  0x15   : > { %s3114_s21 = scalar_select %p152_p10, %s3085_s13, 1  ;;  %v3235_v43 = vand.u32 127, %v168_v42  ;;  %v169_v49 = vshrl.u32 %v168_v42, 7 }
  0x16   : > { %s149_s4 = sand.u32 1, %s3032_s10   ;;  %s2922_s6 = sshll.u32 %s3085_s13, 8 }
  0x17   : > { %s2923_s22 = smul.u32 48, %s3114_s21  ;;  %6325 = vst [vmem:[#allocation5_spill] sm:$0xff] %v3235_v43  ;;  %v3240_v46 = vadd.s32 128, %v3235_v43  ;;  %vm175_vm7 = vcmp.ge.s32.totalorder %v169_v49, 1  ;;  %vm184_vm10 = vcmp.ge.s32.totalorder %v3235_v43, 1  ;;  %s2914_s5 = sshll.u32 %s149_s4, 4 }
  0x18   : > { %vm3260_vm12 = vmand %vm175_vm7, %vm184_vm10  ;;  %s151_s7 = scalar_lea.vmem [#allocation2], %s2914_s5  ;;  %s6221_s17 = scalar_lea.hbm %s6269_s2, %s2922_s6 }
  0x19   : > { %s3122_s25 = scalar_lea.vmem %s6267_s0, %s2923_s22  ;;  %s3203_s29 = scalar_lea.vmem %s6268_s1, %s2923_s22  ;;  %6326 = vst [vmem:[#allocation6_spill] sm:$0xff] %v3240_v46  ;;  %vm193_vm8 = vcmp.lt.s32.totalorder %v3240_v46, 129  ;;  %v6331_v61 = vsel %vm3260_vm12, 4294967295, %v6330_v61 }
  0x1a   : > { %v3125_v0 = vld [vmem:[%s3122_s25 + $0x28] sm:$0x7]  ;;  %v3128_v1 = vld [vmem:[%s3122_s25 + $0x20] sm:$0x7]  ;;  %v3131_v2 = vld [vmem:[%s3122_s25 + $0x10] sm:$0xff]  ;;  %6332 = vst [vmem:[#allocation8_spill] sm:$0xff] %v6331_v61 }
  0x1b   : > { %v3134_v3 = vrot.slane %v3125_v0, 1  ;;  %v3137_v4 = vrot.slane %v3128_v1, 1  ;;  %v224_v5 = vrot.slane %v3131_v2, 1  ;;  %v3141_v6 = vld [vmem:[%s3122_s25] sm:$0xfe]  ;;  %v3146_v9 = vld [vmem:[%s3122_s25 + $0x18] sm:$0xff]  ;;  %vm3252_vm11 = vmand %vm175_vm7, %vm193_vm8 }
  0x1c   : > { %v200_v7 = vld [vmem:[%s3122_s25] sm:$0xff]  ;;  %v223_v8 = vrot.slane %v3141_v6, 1  ;;  %v3149_v10 = vld [vmem:[%s3122_s25 + $0x8] sm:$0xfe]  ;;  %v227_v11 = vrot.slane %v3146_v9, 1  ;;  %vm206_vm2 = vcmp.lt.f32.partialorder %v3131_v2, 0.0 }
  0x1d   : > { %243 = vrot.lane.b32.xlu1 %v3134_v3, %s3042_s26  ;;  %241 = vrot.lane.b32.xlu0 %v3137_v4, %s3042_s26  ;;  %vm204_vm1 = vcmp.lt.f32.partialorder %v200_v7, 0.0  ;;  %v201_v12 = vld [vmem:[%s3122_s25 + $0x8] sm:$0xff]  ;;  %v230_v13 = vsel %vm222_vm0, %v224_v5, %v3137_v4  ;;  %vm207_vm3 = vcmp.lt.f32.partialorder %v3146_v9, 0.0  ;;  %v226_v16 = vrot.slane %v3149_v10, 1  ;;  %v202_v19 = vld [vmem:[%s3122_s25 + $0x20] sm:$0x3] }
  0x1e   : > { %v3159_v14 = vsel %vm204_vm1, inf, %v200_v7  ;;  %v225_v15 = vsel %vm222_vm0, %v223_v8, %v224_v5  ;;  %vm205_vm4 = vcmp.lt.f32.partialorder %v201_v12, 0.0  ;;  %v203_v18 = vld [vmem:[%s3122_s25 + $0x28] sm:$0x3]  ;;  %v3174_v22 = vsel %vm206_vm2, inf, %v3131_v2  ;;  %v3211_v39 = vld [vmem:[%s3203_s29] sm:$0xff] }
  0x1f   : > { %v3165_v17 = vsel %vm205_vm4, inf, %v201_v12  ;;  %v459_v20 = vsub.f32 %v3159_v14, %v225_v15  ;;  %v228_v21 = vsel %vm222_vm0, %v226_v16, %v227_v11  ;;  %v3177_v23 = vsel %vm207_vm3, inf, %v3146_v9  ;;  %v3208_v38 = vld [vmem:[%s3203_s29 + $0x8] sm:$0xff]  ;;  %v3218_v40 = vld [vmem:[%s3203_s29 + $0x18] sm:$0xff]  ;;  %v3221_v41 = vld [vmem:[%s3203_s29 + $0x10] sm:$0xff]  ;;  %s2836_s8 = sshll.u32 %s151_s7, 4  ;;  %s6223_s8 = int_to_ptr.vmem [resolvable:$true] %s2836_s8 }
  0x20   : > { %v232_v24 = vsel %vm222_vm0, %v227_v11, %v3134_v3  ;;  %v460_v25 = vsub.f32 %v3165_v17, %v228_v21  ;;  %vm209_vm5 = vcmp.lt.f32.partialorder %v203_v18, 0.0  ;;  %vm208_vm6 = vcmp.lt.f32.partialorder %v202_v19, 0.0  ;;  %s6227_s13 = scalar_lea.sflag [#allocation3], %s149_s4  ;;  %s2980_s21 = scalar_lea.vmem %s6223_s8, 256 }
  0x21   : > { %237 = vrot.lane.b32.xlu1 %v230_v13, %s3042_s26  ;;  %233 = vrot.lane.b32.xlu0 %v225_v15, %s3042_s26  ;;  %v461_v26 = vsub.f32 %v3174_v22, %v230_v13  ;;  %v462_v27 = vsub.f32 %v3177_v23, %v232_v24  ;;  %v465_v29 = vand.u32 2147483647, %v459_v20  ;;  %v3186_v30 = vsel %vm209_vm5, inf, %v203_v18  ;;  %p2981_p11 = scmp.ne.s32.totalorder %s6223_s8, %s2980_s21  ;;  %s3046_s22 = smov [#allocation2]  }
  0x22   : > { %v466_v28 = vand.u32 2147483647, %v460_v25  ;;  %v3188_v31 = vsel %vm208_vm6, inf, %v202_v19  ;;  %v464_v34 = vsub.f32 %v3186_v30, %v3134_v3  ;;  %v6328_v57 = vsel %vm3252_vm11, 4294967295, %v6327_v57  ;;  %s2984_s23 = sshll.u32 %s3046_s22, 4  ;;  %s2985_s23 = int_to_ptr.vmem [resolvable:$false] %s2984_s23 }
  0x23   : > { %v468_v32 = vand.u32 2147483647, %v462_v27  ;;  %v467_v33 = vand.u32 2147483647, %v461_v26  ;;  %v463_v35 = vsub.f32 %v3188_v31, %v3137_v4  ;;  %6329 = vst [vmem:[#allocation7_spill] sm:$0xff] %v6328_v57  ;;  %vm390_vm1 = vcmask 1045504   ;;  %p2982_p12 = pnand %p2981_p11, %p3102_p5  ;;  %p2987_p0 = scmp.lt.s32.totalorder %s6223_s8, %s2985_s23 }
  0x24   : > { %v470_v36 = vand.u32 2147483647, %v464_v34  ;;  %vm714_vm2 = vcmask 7168   ;;  %vm976_vm3 = vcmp.lt.f32.partialorder %v3149_v10, 0.0  ;;  %vm975_vm4 = vcmp.lt.f32.partialorder %v3141_v6, 0.0  ;;  %s2986_s24 = scalar_lea.vmem %s2985_s23, 512 }
  0x25   : > { %239 = vrot.lane.b32.xlu1 %v232_v24, %s3042_s26  ;;  %235 = vrot.lane.b32.xlu0 %v228_v21, %s3042_s26  ;;  %v469_v37 = vand.u32 2147483647, %v463_v35  ;;  %vm978_vm5 = vcmp.lt.f32.partialorder %v3125_v0, 0.0  ;;  %vm977_vm6 = vcmp.lt.f32.partialorder %v3128_v1, 0.0  ;;  %vm313_vm7 = vcmask 1031168   ;;  %p2983_p13 = pneg %p2982_p12  ;;  %p2988_p1 = scmp.lt.s32.totalorder %s2986_s24, %s2980_s21 }
  0x27   : > { %p2989_p2 = por %p2988_p1, %p2987_p0 }
  0x29   : > { %479 = vrot.lane.b32.xlu1 %v466_v28, %s3042_s26  ;;  %477 = vrot.lane.b32.xlu0 %v465_v29, %s3042_s26  ;;  %p2990_p3 = pnand %p2989_p2, %p2983_p13 }
  0x2d   : > { %483 = vrot.lane.b32.xlu1 %v468_v32, %s3042_s26  ;;  %481 = vrot.lane.b32.xlu0 %v467_v33, %s3042_s26 }
  0x31   : > { %487 = vrot.lane.b32.xlu1 %v470_v36, %s3042_s26  ;;  %485 = vrot.lane.b32.xlu0 %v469_v37, %s3042_s26  ;;  %v171_v37 = vadd.s32 16, %v169_v49 }
  0x33   : > { %vm180_vm13 = vcmp.lt.s32.totalorder %v171_v37, 17 }
  0x34   : > { %vm3352_vm14 = vmand %vm180_vm13, %vm193_vm8 }
  0x35   : > { %684 = vrot.lane.b32.xlu1 %v3208_v38, %s3042_s26  ;;  %682 = vrot.lane.b32.xlu0 %v3211_v39, %s3042_s26  ;;  %vm3361_vm15 = vmand %vm180_vm13, %vm184_vm10  ;;  %vm1809_vm13 = vcmask 1040384  }
  0x39   : > { %688 = vrot.lane.b32.xlu1 %v3218_v40, %s3042_s26  ;;  %686 = vrot.lane.b32.xlu0 %v3221_v41, %s3042_s26 }
  0x3d   : > { %704 = vrot.lane.b32.xlu1 %v228_v21, %s3043_s30  ;;  %702 = vrot.lane.b32.xlu0 %v225_v15, %s3043_s30 }
  0x41   : > { %708 = vrot.lane.b32.xlu1 %v232_v24, %s3043_s30  ;;  %706 = vrot.lane.b32.xlu0 %v230_v13, %s3043_s30 }
  0x45   : > { %712 = vrot.lane.b32.xlu1 %v3134_v3, %s3043_s30  ;;  %710 = vrot.lane.b32.xlu0 %v3137_v4, %s3043_s30 }
  0x8f   : > { %v3237_v44 = vpop.permute.xlu1 %243  ;;  %v242_v45 = vpop.permute.xlu0 %241 }
  0x90   : > { %v248_v34 = vsel %vm245_vm9, %v242_v45, %v3237_v44  ;;  %v260_v42 = vsub.f32 %v3186_v30, %v3237_v44 }
  0x91   : > { %v259_v45 = vsub.f32 %v3188_v31, %v248_v34 }
  0x92   : > { %v266_v49 = vand.u32 2147483647, %v260_v42 }
  0x93   : > { %v238_v47 = vpop.permute.xlu1 %237  ;;  %v234_v48 = vpop.permute.xlu0 %233 }
  0x97   : > { %v240_v50 = vpop.permute.xlu1 %239  ;;  %v236_v51 = vpop.permute.xlu0 %235 }
  0x98   : > { %v247_v52 = vsel %vm245_vm9, %v238_v47, %v240_v50  ;;  %v258_v53 = vsub.f32 %v3177_v23, %v240_v50  ;;  %v246_v54 = vsel %vm245_vm9, %v234_v48, %v236_v51  ;;  %v256_v55 = vsub.f32 %v3165_v17, %v236_v51 }
  0x99   : > { %v257_v56 = vsub.f32 %v3174_v22, %v247_v52  ;;  %v255_v58 = vsub.f32 %v3159_v14, %v246_v54  ;;  %v265_v50 = vand.u32 2147483647, %v259_v45 }
  0x9a   : > { %v264_v59 = vand.u32 2147483647, %v258_v53  ;;  %v262_v60 = vand.u32 2147483647, %v256_v55 }
  0x9b   : > { %v263_v62 = vand.u32 2147483647, %v257_v56  ;;  %v261_v63 = vand.u32 2147483647, %v255_v58  ;;  %v480_v15 = vpop.permute.xlu1 %479  ;;  %v478_v16 = vpop.permute.xlu0 %477 }
  0x9c   : > { %v268_v3 = vsel %vm3252_vm11, %v262_v60, 0.0  ;;  %v270_v7 = vsel %vm193_vm8, %v264_v59, 0.0  ;;  %v489_v19 = vsel %vm245_vm9, %v478_v16, %v480_v15  ;;  %v3297_v21 = vsel %vm3252_vm11, %v480_v15, 0.0 }
  0x9d   : > { %v3266_v4 = vmul.f32 0.8761586, %v268_v3  ;;  %v267_v5 = vsel %vm3260_vm12, %v261_v63, 0.0  ;;  %v269_v11 = vsel %vm184_vm10, %v263_v62, 0.0  ;;  %v3280_v12 = vmul.f32 0.8761586, %v270_v7 }
  0x9e   : > { %v3272_v8 = vmul.f32 0.8761586, %v267_v5  ;;  %v3282_v13 = vmul.f32 0.8761586, %v269_v11  ;;  %v3288_v18 = vmul.f32 0.9248864, %v268_v3 }
  0x9f   : > { %287 = vrot.lane.b32.xlu1 %v3266_v4, %s3042_s26  ;;  %v3291_v20 = vmul.f32 0.9248864, %v267_v5  ;;  %v3303_v24 = vsel %vm3260_vm12, %v489_v19, 0.0  ;;  %v484_v25 = vpop.permute.xlu1 %483  ;;  %v3305_v26 = vmul.f32 0.9248864, %v270_v7  ;;  %v482_v27 = vpop.permute.xlu0 %481  ;;  %v272_v59 = vsel %vm3352_vm14, %v266_v49, 0.0 }
  0xa0   : > { %285 = vrot.lane.b32.xlu0 %v3272_v8, %s3042_s26  ;;  %v3307_v28 = vmul.f32 0.9248864, %v269_v11  ;;  %v3312_v29 = vmul.f32 0.8761586, %v3297_v21  ;;  %v490_v32 = vsel %vm245_vm9, %v482_v27, %v484_v25  ;;  %v3318_v33 = vmul.f32 0.8761586, %v3303_v24 }
  0xa1   : > { %v3324_v35 = vsel %vm193_vm8, %v484_v25, 0.0  ;;  %v3328_v36 = vsel %vm184_vm10, %v490_v32, 0.0  ;;  %v3348_v51 = vmul.f32 0.9248864, %v3297_v21  ;;  %v3357_v52 = vmul.f32 0.9248864, %v3303_v24 }
  0xa2   : > { %v3338_v47 = vmul.f32 0.8761586, %v3324_v35  ;;  %v3341_v48 = vmul.f32 0.8761586, %v3328_v36  ;;  %v332_v53 = vmul.f32 0.79582006, %v268_v3 }
  0xa3   : > { %291 = vrot.lane.b32.xlu1 %v3280_v12, %s3042_s26  ;;  %v334_v54 = vmul.f32 0.79582006, %v270_v7  ;;  %v331_v56 = vmul.f32 0.79582006, %v267_v5  ;;  %v333_v58 = vmul.f32 0.79582006, %v269_v11 }
  0xa4   : > { %289 = vrot.lane.b32.xlu0 %v3282_v13, %s3042_s26  ;;  %v3372_v60 = vmul.f32 0.9248864, %v3324_v35  ;;  %v271_v62 = vsel %vm3361_vm15, %v265_v50, 0.0  ;;  %v3377_v63 = vmul.f32 0.9248864, %v3328_v36  ;;  %v346_v3 = vrot.slane %v332_v53, 1 }
  0xa5   : > { %v347_v7 = vrot.slane %v334_v54, 1  ;;  %v343_v5 = vrot.slane %v331_v56, 1  ;;  %v344_v11 = vrot.slane %v333_v58, 1  ;;  %v336_v15 = vmul.f32 0.79582006, %v272_v59 }
  0xa6   : > { %6337 = vst [vmem:[#allocation9_spill] sm:$0xff] %v3377_v63  ;;  %v335_v16 = vmul.f32 0.79582006, %v271_v62  ;;  %v369_v37 = vrot.slane %v3266_v4, 1  ;;  %v370_v42 = vrot.slane %v3280_v12, 1  ;;  %v322_v49 = vrot.slane %v3272_v8, 1 }
  0xa7   : > { %307 = vrot.lane.b32.xlu1 %v3288_v18, %s3044_s3  ;;  %v348_v19 = vsel %vm222_vm0, %v346_v3, %v347_v7  ;;  %v345_v25 = vsel %vm222_vm0, %v343_v5, %v344_v11  ;;  %v351_v27 = vrot.slane %v336_v15, 1  ;;  %v323_v50 = vrot.slane %v3282_v13, 1 }
  0xa8   : > { %305 = vrot.lane.b32.xlu0 %v3291_v20, %s3044_s3  ;;  %v349_v32 = vrot.slane %v335_v16, 1  ;;  %v367_v53 = vmul.f32 0.8761586, %v272_v59  ;;  %v320_v54 = vmul.f32 0.8761586, %v271_v62  ;;  %v371_v56 = vsel %vm222_vm0, %v369_v37, %v370_v42 }
  0xa9   : > { %v352_v34 = vsel %vm222_vm0, %v347_v7, %v351_v27  ;;  %v3398_v58 = vsel %vm222_vm0, %v322_v49, %v323_v50  ;;  %v404_v15 = vrot.slane %v3280_v12, 2  ;;  %v427_v37 = vrot.slane %v3305_v26, 2 }
  0xaa   : > { %v350_v45 = vsel %vm222_vm0, %v344_v11, %v349_v32  ;;  %v372_v3 = vrot.slane %v367_v53, 1  ;;  %v325_v7 = vrot.slane %v320_v54, 1  ;;  %v403_v11 = vrot.slane %v3266_v4, 2 }
  0xab   : > { %311 = vrot.lane.b32.xlu1 %v3305_v26, %s3044_s3  ;;  %v408_v12 = vrot.slane %v367_v53, 2  ;;  %v406_v32 = vrot.slane %v320_v54, 2  ;;  %v391_v49 = vrot.slane %v3291_v20, 2  ;;  %v424_v53 = vmul.f32 0.9248864, %v272_v59 }
  0xac   : > { %309 = vrot.lane.b32.xlu0 %v3307_v28, %s3044_s3  ;;  %v373_v5 = vsel %vm222_vm0, %v370_v42, %v372_v3  ;;  %v3407_v16 = vsel %vm222_vm0, %v323_v50, %v325_v7  ;;  %v405_v27 = vsel %vm390_vm1, %v403_v11, %v404_v15  ;;  %v486_v42 = vpop.permute.xlu0 %485  ;;  %v392_v50 = vrot.slane %v3307_v28, 2 }
  0xad   : > { %6338 = vst [vmem:[#allocation10_spill] sm:$0xff] %v3407_v16  ;;  %v562_v26 = vmul.f32 0.79582006, %v3297_v21  ;;  %v561_v7 = vmul.f32 0.79582006, %v3303_v24  ;;  %v429_v21 = vrot.slane %v424_v53, 2 }
  0xae   : > { %v3435_v59 = vsel %vm390_vm1, %v391_v49, %v392_v50  ;;  %v600_v53 = vrot.slane %v3338_v47, 1 }
  0xaf   : > { %518 = vrot.lane.b32.xlu1 %v3312_v29, %s3042_s26  ;;  %6339 = vst [vmem:[#allocation11_spill] sm:$0xff] %v3435_v59  ;;  %v430_v24 = vsel %vm390_vm1, %v427_v37, %v429_v21 }
  0xb0   : > { %516 = vrot.lane.b32.xlu0 %v3318_v33, %s3042_s26 }
  0xb3   : > { %522 = vrot.lane.b32.xlu1 %v3338_v47, %s3042_s26 }
  0xb4   : > { %520 = vrot.lane.b32.xlu0 %v3341_v48, %s3042_s26 }
  0xb7   : > { %538 = vrot.lane.b32.xlu1 %v3348_v51, %s3044_s3 }
  0xb8   : > { %536 = vrot.lane.b32.xlu0 %v3357_v52, %s3044_s3 }
  0xbb   : > { %542 = vrot.lane.b32.xlu1 %v3372_v60, %s3044_s3 }
  0xbc   : > { %540 = vrot.lane.b32.xlu0 %v3377_v63, %s3044_s3 }
  0xbf   : > { %355 = vrot.lane.b32.xlu1 %v348_v19, %s3042_s26  ;;  %v400_v19 = vrot.slane %v3272_v8, 2  ;;  %v488_v8 = vpop.permute.xlu1 %487 }
  0xc0   : > { %353 = vrot.lane.b32.xlu0 %v345_v25, %s3042_s26  ;;  %v401_v25 = vrot.slane %v3282_v13, 2  ;;  %v409_v13 = vsel %vm390_vm1, %v404_v15, %v408_v12  ;;  %v491_v54 = vsel %vm245_vm9, %v486_v42, %v488_v8  ;;  %v503_v11 = vsel %vm3352_vm14, %v488_v8, 0.0 }
  0xc1   : > { %v566_v15 = vmul.f32 0.79582006, %v503_v11 }
  0xc2   : > { %v402_v4 = vsel %vm390_vm1, %v400_v19, %v401_v25 }
  0xc3   : > { %359 = vrot.lane.b32.xlu1 %v352_v34, %s3042_s26  ;;  %v426_v34 = vrot.slane %v3288_v18, 2  ;;  %v388_v18 = vmul.f32 0.9248864, %v271_v62  ;;  %v502_v62 = vsel %vm3361_vm15, %v491_v54, 0.0  ;;  %v3452_v42 = vpop.permute.xlu1 %684 }
  0xc4   : > { %357 = vrot.lane.b32.xlu0 %v350_v45, %s3042_s26  ;;  %v407_v45 = vsel %vm390_vm1, %v401_v25, %v406_v32  ;;  %v573_v25 = vrot.slane %v561_v7, 1  ;;  %6341 = vst [vmem:[#allocation13_spill] sm:$0xff] %v3452_v42  ;;  %v550_v54 = vmul.f32 0.8761586, %v502_v62 }
  0xc5   : > { %v428_v3 = vsel %vm390_vm1, %v426_v34, %v427_v37  ;;  %v581_v34 = vrot.slane %v566_v15, 1 }
  0xc6   : > { %v555_v21 = vrot.slane %v550_v54, 1 }
  0xc7   : > { %376 = vrot.lane.b32.xlu1 %v371_v56, %s3044_s3  ;;  %v564_v56 = vmul.f32 0.79582006, %v3324_v35  ;;  %v394_v35 = vrot.slane %v388_v18, 2 }
  0xc8   : > { %374 = vrot.lane.b32.xlu0 %v3398_v58, %s3044_s3 }
  0xc9   : > { %v577_v19 = vrot.slane %v564_v56, 1  ;;  %v3444_v12 = vsel %vm390_vm1, %v392_v50, %v394_v35  ;;  %v599_v50 = vrot.slane %v3312_v29, 1  ;;  %v553_v56 = vrot.slane %v3341_v48, 1  ;;  %v3469_v35 = vpop.permute.xlu1 %688 }
  0xca   : > { %6340 = vst [vmem:[#allocation12_spill] sm:$0xff] %v3444_v12  ;;  %6344 = vst [vmem:[#allocation16_spill] sm:$0xff] %v3469_v35 }
  0xcb   : > { %380 = vrot.lane.b32.xlu1 %v373_v5, %s3044_s3  ;;  %v563_v5 = vmul.f32 0.79582006, %v3328_v36  ;;  %v576_v36 = vrot.slane %v562_v26, 1  ;;  %v582_v49 = vsel %vm222_vm0, %v577_v19, %v581_v34  ;;  %v552_v26 = vrot.slane %v3318_v33, 1 }
  0xcc   : > { %378 = vrot.lane.b32.xlu0 %v3407_v16, %s3044_s3 }
  0xcd   : > { %v578_v32 = vsel %vm222_vm0, %v576_v36, %v577_v19  ;;  %v632_v36 = vrot.slane %v3312_v29, 2  ;;  %v633_v19 = vrot.slane %v3338_v47, 2  ;;  %v635_v47 = vrot.slane %v550_v54, 2 }
  0xcf   : > { %412 = vrot.lane.b32.xlu1 %v405_v27, %s3042_s26  ;;  %v574_v27 = vrot.slane %v563_v5, 1  ;;  %v3467_v5 = vsel %vm222_vm0, %v552_v26, %v553_v56  ;;  %v621_v26 = vrot.slane %v3377_v63, 2 }
  0xd0   : > { %410 = vrot.lane.b32.xlu0 %v402_v4, %s3042_s26  ;;  %v565_v4 = vmul.f32 0.79582006, %v502_v62  ;;  %6343 = vst [vmem:[#allocation15_spill] sm:$0xff] %v3467_v5 }
  0xd1   : > { %v575_v37 = vsel %vm222_vm0, %v573_v25, %v574_v27  ;;  %v3480_v25 = vsel %vm222_vm0, %v553_v56, %v555_v21 }
  0xd2   : > { %v579_v8 = vrot.slane %v565_v4, 1  ;;  %6346 = vst [vmem:[#allocation18_spill] sm:$0xff] %v3480_v25  ;;  %v630_v4 = vrot.slane %v3341_v48, 2  ;;  %v656_v48 = vrot.slane %v3372_v60, 2 }
  0xd3   : > { %416 = vrot.lane.b32.xlu1 %v409_v13, %s3042_s26  ;;  %v3454_v13 = vpop.permute.xlu0 %682 }
  0xd4   : > { %414 = vrot.lane.b32.xlu0 %v407_v45, %s3042_s26  ;;  %6342 = vst [vmem:[#allocation14_spill] sm:$0xff] %v3454_v13  ;;  %v597_v45 = vmul.f32 0.8761586, %v503_v11  ;;  %v580_v18 = vsel %vm222_vm0, %v574_v27, %v579_v8  ;;  %v629_v27 = vrot.slane %v3318_v33, 2  ;;  %v634_v8 = vsel %vm390_vm1, %v632_v36, %v633_v19 }
  0xd5   : > { %v655_v33 = vrot.slane %v3348_v51, 2 }
  0xd6   : > { %v602_v7 = vrot.slane %v597_v45, 1  ;;  %v631_v29 = vsel %vm390_vm1, %v629_v27, %v630_v4 }
  0xd7   : > { %433 = vrot.lane.b32.xlu1 %v428_v3, %s3044_s3  ;;  %v601_v3 = vsel %vm222_vm0, %v599_v50, %v600_v53  ;;  %v3471_v15 = vpop.permute.xlu0 %686  ;;  %v657_v51 = vsel %vm390_vm1, %v655_v33, %v656_v48 }
  0xd8   : > { %431 = vrot.lane.b32.xlu0 %v3435_v59, %s3044_s3  ;;  %6345 = vst [vmem:[#allocation17_spill] sm:$0xff] %v3471_v15 }
  0xdb   : > { %437 = vrot.lane.b32.xlu1 %v430_v24, %s3044_s3  ;;  %v603_v24 = vsel %vm222_vm0, %v600_v53, %v602_v7  ;;  %v703_v34 = vpop.permute.xlu0 %702  ;;  %v618_v53 = vmul.f32 0.9248864, %v502_v62 }
  0xdc   : > { %435 = vrot.lane.b32.xlu0 %v3444_v12, %s3044_s3  ;;  %v724_v21 = vsub.f32 %v3159_v14, %v703_v34 }
  0xde   : > { %v730_v14 = vand.u32 2147483647, %v724_v21 }
  0xdf   : > { %585 = vrot.lane.b32.xlu1 %v578_v32, %s3042_s26  ;;  %v705_v32 = vpop.permute.xlu1 %704  ;;  %v707_v56 = vpop.permute.xlu0 %706 }
  0xe0   : > { %583 = vrot.lane.b32.xlu0 %v575_v37, %s3042_s26  ;;  %v637_v37 = vrot.slane %v597_v45, 2  ;;  %v636_v45 = vsel %vm390_vm1, %v630_v4, %v635_v47 }
  0xe2   : > { %v638_v50 = vsel %vm390_vm1, %v633_v19, %v637_v37 }
  0xe3   : > { %589 = vrot.lane.b32.xlu1 %v582_v49, %s3042_s26  ;;  %v653_v49 = vmul.f32 0.9248864, %v503_v11  ;;  %v709_v54 = vpop.permute.xlu1 %708  ;;  %v715_v11 = vsel %vm714_vm2, %v703_v34, %v705_v32  ;;  %v711_v19 = vpop.permute.xlu0 %710 }
  0xe4   : > { %587 = vrot.lane.b32.xlu0 %v580_v18, %s3042_s26  ;;  %v620_v18 = vrot.slane %v3357_v52, 2  ;;  %v725_v7 = vsub.f32 %v3165_v17, %v715_v11  ;;  %v726_v17 = vsub.f32 %v3174_v22, %v707_v56  ;;  %v728_v47 = vsub.f32 %v3188_v31, %v711_v19 }
  0xe5   : > { %v658_v60 = vrot.slane %v653_v49, 2 }
  0xe6   : > { %v3502_v62 = vsel %vm390_vm1, %v620_v18, %v621_v26  ;;  %v731_v32 = vand.u32 2147483647, %v725_v7  ;;  %v732_v49 = vand.u32 2147483647, %v726_v17 }
  0xe7   : > { %606 = vrot.lane.b32.xlu1 %v601_v3, %s3044_s3  ;;  %v623_v3 = vrot.slane %v618_v53, 2  ;;  %6347 = vst [vmem:[#allocation19_spill] sm:$0xff] %v3502_v62  ;;  %v713_v36 = vpop.permute.xlu1 %712  ;;  %v659_v27 = vsel %vm390_vm1, %v656_v48, %v658_v60  ;;  %v734_v48 = vand.u32 2147483647, %v728_v47 }
  0xe8   : > { %604 = vrot.lane.b32.xlu0 %v3467_v5, %s3044_s3  ;;  %v717_v34 = vsel %vm714_vm2, %v711_v19, %v713_v36 }
  0xe9   : > { %v3512_v4 = vsel %vm390_vm1, %v621_v26, %v623_v3 }
  0xea   : > { %6348 = vst [vmem:[#allocation20_spill] sm:$0xff] %v3512_v4 }
  0xeb   : > { %610 = vrot.lane.b32.xlu1 %v603_v24, %s3044_s3  ;;  %v716_v24 = vsel %vm714_vm2, %v707_v56, %v709_v54 }
  0xec   : > { %608 = vrot.lane.b32.xlu0 %v3480_v25, %s3044_s3 }
  0xef   : > { %641 = vrot.lane.b32.xlu1 %v634_v8, %s3042_s26  ;;  %v727_v8 = vsub.f32 %v3177_v23, %v716_v24 }
  0xf0   : > { %639 = vrot.lane.b32.xlu0 %v631_v29, %s3042_s26  ;;  %v729_v29 = vsub.f32 %v3186_v30, %v717_v34 }
  0xf1   : > { %v733_v37 = vand.u32 2147483647, %v727_v8 }
  0xf2   : > { %v735_v33 = vand.u32 2147483647, %v729_v29 }
  0xf3   : > { %645 = vrot.lane.b32.xlu1 %v638_v50, %s3042_s26 }
  0xf4   : > { %643 = vrot.lane.b32.xlu0 %v636_v45, %s3042_s26 }
  0xf7   : > { %662 = vrot.lane.b32.xlu1 %v657_v51, %s3044_s3 }
  0xf8   : > { %660 = vrot.lane.b32.xlu0 %v3502_v62, %s3044_s3 }
  0xfb   : > { %666 = vrot.lane.b32.xlu1 %v659_v27, %s3044_s3 }
  0xfc   : > { %664 = vrot.lane.b32.xlu0 %v3512_v4, %s3044_s3 }
  0xff   : > { %744 = vrot.lane.b32.xlu1 %v731_v32, %s3044_s3 }
 0x100   : > { %742 = vrot.lane.b32.xlu0 %v730_v14, %s3044_s3 }
 0x103   : > { %748 = vrot.lane.b32.xlu1 %v733_v37, %s3044_s3 }
 0x104   : > { %746 = vrot.lane.b32.xlu0 %v732_v49, %s3044_s3 }
 0x107   : > { %752 = vrot.lane.b32.xlu1 %v735_v33, %s3044_s3 }
 0x108   : > { %750 = vrot.lane.b32.xlu0 %v734_v48, %s3044_s3 }
 0x10b   : > { %949 = vrot.lane.b32.xlu1 %v3208_v38, %s3044_s3 }
 0x10c   : > { %947 = vrot.lane.b32.xlu0 %v3211_v39, %s3044_s3 }
 0x10f   : > { %953 = vrot.lane.b32.xlu1 %v3218_v40, %s3044_s3 }
 0x110   : > { %951 = vrot.lane.b32.xlu0 %v3221_v41, %s3044_s3 }
 0x111   : > { %v3535_v30 = vpop.permute.xlu1 %287 }
 0x112   : > { %v3537_v31 = vpop.permute.xlu0 %285 }
 0x113   : > { %985 = vrot.lane.b32.xlu1 %v3149_v10, %s3042_s26 }
 0x114   : > { %983 = vrot.lane.b32.xlu0 %v3141_v6, %s3042_s26 }
 0x115   : > { %v3543_v38 = vpop.permute.xlu1 %291 }
 0x116   : > { %v3545_v50 = vpop.permute.xlu0 %289 }
 0x117   : > { %989 = vrot.lane.b32.xlu1 %v3146_v9, %s3042_s26 }
 0x118   : > { %987 = vrot.lane.b32.xlu0 %v3131_v2, %s3042_s26 }
 0x119   : > { %v3551_v39 = vpop.permute.xlu1 %307 }
 0x11a   : > { %v3553_v40 = vpop.permute.xlu0 %305 }
 0x11b   : > { %993 = vrot.lane.b32.xlu1 %v3125_v0, %s3042_s26 }
 0x11c   : > { %991 = vrot.lane.b32.xlu0 %v3128_v1, %s3042_s26 }
 0x11d   : > { %v3559_v41 = vpop.permute.xlu1 %311 }
 0x11e   : > { %v3561_v53 = vpop.permute.xlu0 %309 }
 0x121   : > { %v3563_v45 = vpop.permute.xlu1 %518 }
 0x122   : > { %v3565_v9 = vpop.permute.xlu0 %516 }
 0x125   : > { %v3567_v18 = vpop.permute.xlu1 %522 }
 0x126   : > { %6349 = vst [vmem:[#allocation21_spill] sm:$0xff] %v3567_v18  ;;  %v3569_v2 = vpop.permute.xlu0 %520 }
 0x127   : > { %6350 = vst [vmem:[#allocation22_spill] sm:$0xff] %v3569_v2 }
 0x129   : > { %v3571_v26 = vpop.permute.xlu1 %538 }
 0x12a   : > { %v3573_v54 = vpop.permute.xlu0 %536 }
 0x12d   : > { %v3575_v56 = vpop.permute.xlu1 %542 }
 0x12e   : > { %6351 = vst [vmem:[#allocation23_spill] sm:$0xff] %v3575_v56  ;;  %v3577_v11 = vpop.permute.xlu0 %540 }
 0x12f   : > { %6352 = vst [vmem:[#allocation24_spill] sm:$0xff] %v3577_v11 }
 0x131   : > { %v3579_v51 = vpop.permute.xlu1 %355 }
 0x132   : > { %v3581_v60 = vpop.permute.xlu0 %353 }
 0x135   : > { %v3583_v3 = vpop.permute.xlu1 %359 }
 0x136   : > { %6353 = vst [vmem:[#allocation25_spill] sm:$0xff] %v3583_v3  ;;  %v3585_v7 = vpop.permute.xlu0 %357 }
 0x137   : > { %6354 = vst [vmem:[#allocation26_spill] sm:$0xff] %v3585_v7 }
 0x139   : > { %v3587_v21 = vpop.permute.xlu1 %376 }
 0x13a   : > { %6355 = vst [vmem:[#allocation27_spill] sm:$0xff] %v3587_v21  ;;  %v3589_v24 = vpop.permute.xlu0 %374 }
 0x13b   : > { %6356 = vst [vmem:[#allocation28_spill] sm:$0xff] %v3589_v24 }
 0x13d   : > { %v3591_v36 = vpop.permute.xlu1 %380 }
 0x13e   : > { %6357 = vst [vmem:[#allocation29_spill] sm:$0xff] %v3591_v36  ;;  %v3593_v19 = vpop.permute.xlu0 %378 }
 0x13f   : > { %6358 = vst [vmem:[#allocation30_spill] sm:$0xff] %v3593_v19 }
 0x141   : > { %v3595_v27 = vpop.permute.xlu1 %412 }
 0x142   : > { %6359 = vst [vmem:[#allocation31_spill] sm:$0xff] %v3595_v27  ;;  %v3597_v32 = vpop.permute.xlu0 %410 }
 0x143   : > { %6360 = vst [vmem:[#allocation32_spill] sm:$0xff] %v3597_v32  ;;  %v3679_v32 = vsel %vm978_vm5, inf, %v3125_v0 }
 0x145   : > { %v3599_v8 = vpop.permute.xlu1 %416 }
 0x146   : > { %6361 = vst [vmem:[#allocation33_spill] sm:$0xff] %v3599_v8  ;;  %v3601_v17 = vpop.permute.xlu0 %414 }
 0x147   : > { %6362 = vst [vmem:[#allocation34_spill] sm:$0xff] %v3601_v17 }
 0x149   : > { %v3603_v14 = vpop.permute.xlu1 %433 }
 0x14a   : > { %6363 = vst [vmem:[#allocation35_spill] sm:$0xff] %v3603_v14  ;;  %v3605_v34 = vpop.permute.xlu0 %431 }
 0x14b   : > { %6364 = vst [vmem:[#allocation36_spill] sm:$0xff] %v3605_v34  ;;  %v3669_v34 = vsel %vm975_vm4, inf, %v3141_v6 }
 0x14d   : > { %v3607_v37 = vpop.permute.xlu1 %437 }
 0x14e   : > { %6365 = vst [vmem:[#allocation37_spill] sm:$0xff] %v3607_v37  ;;  %v3609_v29 = vpop.permute.xlu0 %435 }
 0x14f   : > { %6366 = vst [vmem:[#allocation38_spill] sm:$0xff] %v3609_v29 }
 0x151   : > { %v3611_v47 = vpop.permute.xlu1 %585 }
 0x152   : > { %6367 = vst [vmem:[#allocation39_spill] sm:$0xff] %v3611_v47  ;;  %v3613_v49 = vpop.permute.xlu0 %583 }
 0x153   : > { %6368 = vst [vmem:[#allocation40_spill] sm:$0xff] %v3613_v49 }
 0x155   : > { %v3615_v33 = vpop.permute.xlu1 %589 }
 0x156   : > { %6369 = vst [vmem:[#allocation41_spill] sm:$0xff] %v3615_v33  ;;  %v3617_v48 = vpop.permute.xlu0 %587 }
 0x157   : > { %6370 = vst [vmem:[#allocation42_spill] sm:$0xff] %v3617_v48 }
 0x159   : > { %v3619_v15 = vpop.permute.xlu1 %606 }
 0x15a   : > { %6371 = vst [vmem:[#allocation43_spill] sm:$0xff] %v3619_v15  ;;  %v3621_v35 = vpop.permute.xlu0 %604 }
 0x15b   : > { %6372 = vst [vmem:[#allocation44_spill] sm:$0xff] %v3621_v35 }
 0x15d   : > { %v3623_v4 = vpop.permute.xlu1 %610 }
 0x15e   : > { %6373 = vst [vmem:[#allocation45_spill] sm:$0xff] %v3623_v4  ;;  %v3625_v62 = vpop.permute.xlu0 %608 }
 0x15f   : > { %6374 = vst [vmem:[#allocation46_spill] sm:$0xff] %v3625_v62 }
 0x161   : > { %v3627_v13 = vpop.permute.xlu1 %641 }
 0x162   : > { %6375 = vst [vmem:[#allocation47_spill] sm:$0xff] %v3627_v13  ;;  %v3629_v37 = vpop.permute.xlu0 %639 }
 0x163   : > { %6376 = vst [vmem:[#allocation48_spill] sm:$0xff] %v3629_v37 }
 0x165   : > { %v3631_v29 = vpop.permute.xlu1 %645 }
 0x166   : > { %6377 = vst [vmem:[#allocation49_spill] sm:$0xff] %v3631_v29  ;;  %v3633_v42 = vpop.permute.xlu0 %643 }
 0x167   : > { %6378 = vst [vmem:[#allocation50_spill] sm:$0xff] %v3633_v42 }
 0x169   : > { %v3635_v12 = vpop.permute.xlu1 %662 }
 0x16a   : > { %6379 = vst [vmem:[#allocation51_spill] sm:$0xff] %v3635_v12  ;;  %v3637_v17 = vpop.permute.xlu0 %660 }
 0x16b   : > { %6380 = vst [vmem:[#allocation52_spill] sm:$0xff] %v3637_v17  ;;  %v3666_v17 = vsel %vm976_vm3, inf, %v3149_v10 }
 0x16d   : > { %v3639_v8 = vpop.permute.xlu1 %666 }
 0x16e   : > { %6381 = vst [vmem:[#allocation53_spill] sm:$0xff] %v3639_v8  ;;  %v3641_v25 = vpop.permute.xlu0 %664 }
 0x16f   : > { %6382 = vst [vmem:[#allocation54_spill] sm:$0xff] %v3641_v25 }
 0x171   : > { %v3643_v48 = vpop.permute.xlu1 %744 }
 0x172   : > { %v3645_v4 = vpop.permute.xlu0 %742 }
 0x175   : > { %v3647_v62 = vpop.permute.xlu1 %748 }
 0x176   : > { %v3649_v13 = vpop.permute.xlu0 %746 }
 0x179   : > { %v3651_v37 = vpop.permute.xlu1 %752 }
 0x17a   : > { %v3653_v29 = vpop.permute.xlu0 %750 }
 0x17d   : > { %v3655_v42 = vpop.permute.xlu1 %949 }
 0x17e   : > { %6383 = vst [vmem:[#allocation55_spill] sm:$0xff] %v3655_v42  ;;  %v3657_v12 = vpop.permute.xlu0 %947 }
 0x17f   : > { %6384 = vst [vmem:[#allocation56_spill] sm:$0xff] %v3657_v12 }
 0x181   : > { %v3660_v8 = vpop.permute.xlu1 %953 }
 0x182   : > { %6385 = vst [vmem:[#allocation57_spill] sm:$0xff] %v3660_v8  ;;  %v3662_v25 = vpop.permute.xlu0 %951 }
 0x183   : > { %6386 = vst [vmem:[#allocation58_spill] sm:$0xff] %v3662_v25 }
 0x185   : > { %v986_v33 = vpop.permute.xlu1 %985 }
 0x186   : > { %v1005_v14 = vsub.f32 %v3666_v17, %v986_v33  ;;  %v984_v42 = vpop.permute.xlu0 %983 }
 0x187   : > { %v995_v12 = vsel %vm245_vm9, %v984_v42, %v986_v33 }
 0x188   : > { %v1004_v59 = vsub.f32 %v3669_v34, %v995_v12  ;;  %v1011_v25 = vand.u32 2147483647, %v1005_v14  ;;  %v3683_v12 = vsel %vm977_vm6, inf, %v3128_v1 }
 0x189   : > { %v990_v8 = vpop.permute.xlu1 %989 }
 0x18a   : > { %v1007_v35 = vsub.f32 %v3177_v23, %v990_v8  ;;  %v988_v15 = vpop.permute.xlu0 %987  ;;  %v1010_v10 = vand.u32 2147483647, %v1004_v59  ;;  %v1025_v5 = vrot.slane %v1011_v25, 1 }
 0x18b   : > { %v996_v6 = vsel %vm245_vm9, %v988_v15, %v990_v8 }
 0x18c   : > { %v1013_v27 = vand.u32 2147483647, %v1007_v35  ;;  %v1006_v42 = vsub.f32 %v3174_v22, %v996_v6  ;;  %v1022_v36 = vrot.slane %v1010_v10, 1 }
 0x18d   : > { %v994_v33 = vpop.permute.xlu1 %993 }
 0x18e   : > { %v1026_v14 = vrot.slane %v1013_v27, 1  ;;  %v1012_v49 = vand.u32 2147483647, %v1006_v42  ;;  %v1009_v47 = vsub.f32 %v3679_v32, %v994_v33  ;;  %v992_v19 = vpop.permute.xlu0 %991 }
 0x18f   : > { %v997_v59 = vsel %vm245_vm9, %v992_v19, %v994_v33 }
 0x190   : > { %v1023_v15 = vrot.slane %v1012_v49, 1  ;;  %v1015_v8 = vand.u32 2147483647, %v1009_v47  ;;  %v1008_v0 = vsub.f32 %v3683_v12, %v997_v59  ;;  %v1027_v35 = vsel %vm222_vm0, %v1025_v5, %v1026_v14 }
 0x191   : > { %v1039_v6 = vsel %vm3252_vm11, %v1027_v35, 0.0 }
 0x192   : > { %v1030_v1 = vrot.slane %v1015_v8, 1  ;;  %v1014_v16 = vand.u32 2147483647, %v1008_v0  ;;  %v3691_v25 = vmul.f32 0.8761586, %v1039_v6  ;;  %v1024_v27 = vsel %vm222_vm0, %v1022_v36, %v1023_v15 }
 0x193   : > { %v1038_v10 = vsel %vm3260_vm12, %v1024_v27, 0.0  ;;  %v1102_v27 = vmul.f32 0.79582006, %v1039_v6 }
 0x194   : > { %v1028_v42 = vrot.slane %v1014_v16, 1  ;;  %1058 = vrot.lane.b32.xlu1 %v3691_v25, %s3042_s26  ;;  %v3698_v19 = vmul.f32 0.8761586, %v1038_v10  ;;  %v1031_v5 = vsel %vm222_vm0, %v1026_v14, %v1030_v1  ;;  %v1070_v14 = vmul.f32 0.9248864, %v1039_v6 }
 0x195   : > { %v1041_v47 = vsel %vm193_vm8, %v1031_v5, 0.0  ;;  %v1043_v0 = vsel %vm3352_vm14, %v1030_v1, 0.0  ;;  %v1116_v6 = vrot.slane %v1102_v27, 1 }
 0x196   : > { %1056 = vrot.lane.b32.xlu0 %v3698_v19, %s3042_s26  ;;  %v3705_v49 = vmul.f32 0.8761586, %v1041_v47  ;;  %v1029_v36 = vsel %vm222_vm0, %v1023_v15, %v1028_v42  ;;  %v1071_v59 = vmul.f32 0.9248864, %v1041_v47  ;;  %v1104_v8 = vmul.f32 0.79582006, %v1041_v47 }
 0x197   : > { %v1040_v16 = vsel %vm184_vm10, %v1029_v36, 0.0  ;;  %v3719_v15 = vmul.f32 0.9248864, %v1038_v10  ;;  %v3723_v36 = vsel %vm3361_vm15, %v1028_v42, 0.0  ;;  %v1195_v63 = vrot.slane %v1070_v14, 2 }
 0x198   : > { %1062 = vrot.lane.b32.xlu1 %v3705_v49, %s3042_s26  ;;  %v3712_v33 = vmul.f32 0.8761586, %v1040_v16  ;;  %v1196_v35 = vrot.slane %v1071_v59, 2  ;;  %v1103_v5 = vmul.f32 0.79582006, %v1040_v16  ;;  %v1117_v7 = vrot.slane %v1104_v8, 1 }
 0x199   : > { %6387 = vst [vmem:[#allocation59_spill] sm:$0xff] %v3719_v15  ;;  %v1101_v47 = vmul.f32 0.79582006, %v1038_v10  ;;  %v1106_v3 = vmul.f32 0.79582006, %v1043_v0  ;;  %v1140_v2 = vrot.slane %v3705_v49, 1 }
 0x19a   : > { %1060 = vrot.lane.b32.xlu0 %v3712_v33, %s3042_s26  ;;  %v3728_v1 = vmul.f32 0.9248864, %v1040_v16  ;;  %v3731_v11 = vsel %vm390_vm1, %v1195_v63, %v1196_v35  ;;  %v1114_v56 = vrot.slane %v1103_v5, 1  ;;  %v1105_v24 = vmul.f32 0.79582006, %v3723_v36 }
 0x19b   : > { %v1193_v42 = vmul.f32 0.9248864, %v1043_v0  ;;  %v1113_v8 = vrot.slane %v1101_v47, 1  ;;  %v1121_v10 = vrot.slane %v1106_v3, 1  ;;  %v3743_v27 = vmul.f32 0.8761586, %v1043_v0 }
 0x19c   : > { %1078 = vrot.lane.b32.xlu1 %v1070_v14, %s3044_s3  ;;  %6388 = vst [vmem:[#allocation60_spill] sm:$0xff] %v3728_v1  ;;  %v1118_v14 = vsel %vm222_vm0, %v1116_v6, %v1117_v7  ;;  %v3749_v3 = vmul.f32 0.8761586, %v3723_v36 }
 0x19d   : > { %v1198_v21 = vrot.slane %v1193_v42, 2  ;;  %v1115_v16 = vsel %vm222_vm0, %v1113_v8, %v1114_v56  ;;  %v1122_v5 = vsel %vm222_vm0, %v1117_v7, %v1121_v10  ;;  %v1142_v7 = vrot.slane %v3743_v27, 1 }
 0x19e   : > { %1076 = vrot.lane.b32.xlu0 %v3719_v15, %s3044_s3  ;;  %v1095_v42 = vrot.slane %v3749_v3, 1  ;;  %v1172_v10 = vrot.slane %v3691_v25, 2 }
 0x19f   : > { %v3740_v63 = vsel %vm390_vm1, %v1196_v35, %v1198_v21  ;;  %v1093_v21 = vrot.slane %v3712_v33, 1  ;;  %v1092_v35 = vrot.slane %v3698_v19, 1 }
 0x1a0   : > { %1082 = vrot.lane.b32.xlu1 %v1071_v59, %s3044_s3  ;;  %v1119_v59 = vrot.slane %v1105_v24, 1  ;;  %v1139_v24 = vrot.slane %v3691_v25, 1 }
 0x1a1   : > { %v3760_v6 = vsel %vm222_vm0, %v1092_v35, %v1093_v21  ;;  %v3769_v8 = vsel %vm222_vm0, %v1093_v21, %v1095_v42  ;;  %v756_v42 = vsel %vm313_vm7, %v3653_v29, %v3651_v37 }
 0x1a2   : > { %1080 = vrot.lane.b32.xlu0 %v3728_v1, %s3044_s3  ;;  %v1120_v47 = vsel %vm222_vm0, %v1114_v56, %v1119_v59  ;;  %v1141_v0 = vsel %vm222_vm0, %v1139_v24, %v1140_v2  ;;  %6389 = vst [vmem:[#allocation61_spill] sm:$0xff] %v3760_v6  ;;  %v1143_v56 = vsel %vm222_vm0, %v1140_v2, %v1142_v7  ;;  %6390 = vst [vmem:[#allocation62_spill] sm:$0xff] %v3769_v8 }
 0x1a3   : > { %v754_v59 = vsel %vm313_vm7, %v3645_v4, %v3643_v48  ;;  %v764_v2 = vsel %vm3252_vm11, %v3643_v48, 0.0  ;;  %v755_v48 = vsel %vm313_vm7, %v3649_v13, %v3647_v62 }
 0x1a4   : > { %1125 = vrot.lane.b32.xlu1 %v1118_v14, %s3042_s26  ;;  %v6279_v14 = vrot.slane %v3705_v49, 2  ;;  %v763_v25 = vsel %vm3260_vm12, %v754_v59, 0.0  ;;  %v3791_v24 = vmul.f32 0.8761586, %v764_v2  ;;  %v3814_v7 = vmul.f32 0.9248864, %v764_v2 }
 0x1a5   : > { %v3800_v21 = vmul.f32 0.8761586, %v763_v25  ;;  %v827_v59 = vmul.f32 0.79582006, %v764_v2  ;;  %v826_v29 = vmul.f32 0.79582006, %v763_v25 }
 0x1a6   : > { %1123 = vrot.lane.b32.xlu0 %v1115_v16, %s3042_s26  ;;  %v6278_v16 = vrot.slane %v3712_v33, 2 }
 0x1a8   : > { %1129 = vrot.lane.b32.xlu1 %v1122_v5, %s3042_s26  ;;  %v1174_v5 = vsel %vm390_vm1, %v1172_v10, %v6279_v14  ;;  %v768_v10 = vsel %vm3352_vm14, %v3651_v37, 0.0  ;;  %v841_v37 = vrot.slane %v827_v59, 1 }
 0x1aa   : > { %1127 = vrot.lane.b32.xlu0 %v1120_v47, %s3042_s26  ;;  %v1169_v47 = vrot.slane %v3698_v19, 2  ;;  %v766_v19 = vsel %vm193_vm8, %v3647_v62, 0.0 }
 0x1ab   : > { %v3806_v35 = vmul.f32 0.8761586, %v766_v19  ;;  %v829_v62 = vmul.f32 0.79582006, %v766_v19 }
 0x1ac   : > { %1146 = vrot.lane.b32.xlu1 %v1141_v0, %s3044_s3  ;;  %v1171_v4 = vsel %vm390_vm1, %v1169_v47, %v6278_v16  ;;  %v765_v0 = vsel %vm184_vm10, %v755_v48, 0.0  ;;  %v3828_v47 = vmul.f32 0.9248864, %v766_v19  ;;  %v831_v16 = vmul.f32 0.79582006, %v768_v10 }
 0x1ad   : > { %v3810_v13 = vmul.f32 0.8761586, %v765_v0  ;;  %v842_v48 = vrot.slane %v829_v62, 1  ;;  %v3834_v14 = vmul.f32 0.9248864, %v765_v0  ;;  %v838_v19 = vrot.slane %v826_v29, 1 }
 0x1ae   : > { %1144 = vrot.lane.b32.xlu0 %v3760_v6, %s3044_s3  ;;  %v846_v6 = vrot.slane %v831_v16, 1  ;;  %v865_v59 = vrot.slane %v3806_v35, 1  ;;  %v864_v16 = vrot.slane %v3791_v24, 1 }
 0x1af   : > { %6392 = vst [vmem:[#allocation64_spill] sm:$0xff] %v3834_v14 }
 0x1b0   : > { %1150 = vrot.lane.b32.xlu1 %v1143_v56, %s3044_s3  ;;  %v3821_v56 = vmul.f32 0.9248864, %v763_v25  ;;  %v847_v18 = vsel %vm222_vm0, %v842_v48, %v846_v6 }
 0x1b2   : > { %1148 = vrot.lane.b32.xlu0 %v3769_v8, %s3044_s3  ;;  %6391 = vst [vmem:[#allocation63_spill] sm:$0xff] %v3821_v56 }
 0x1b4   : > { %1181 = vrot.lane.b32.xlu1 %v1174_v5, %s3042_s26  ;;  %v828_v5 = vmul.f32 0.79582006, %v765_v0  ;;  %v862_v0 = vmul.f32 0.8761586, %v768_v10 }
 0x1b6   : > { %1179 = vrot.lane.b32.xlu0 %v1171_v4, %s3042_s26  ;;  %v767_v4 = vsel %vm3361_vm15, %v756_v42, 0.0  ;;  %v839_v8 = vrot.slane %v828_v5, 1  ;;  %v843_v42 = vsel %vm222_vm0, %v841_v37, %v842_v48  ;;  %v818_v37 = vrot.slane %v3810_v13, 1 }
 0x1b7   : > { %v830_v2 = vmul.f32 0.79582006, %v767_v4  ;;  %v815_v5 = vmul.f32 0.8761586, %v767_v4 }
 0x1b8   : > { %783 = vrot.lane.b32.xlu1 %v3791_v24, %s3042_s26  ;;  %v840_v62 = vsel %vm222_vm0, %v838_v19, %v839_v8  ;;  %v866_v19 = vsel %vm222_vm0, %v864_v16, %v865_v59  ;;  %v902_v16 = vrot.slane %v862_v0, 2 }
 0x1b9   : > { %v844_v25 = vrot.slane %v830_v2, 1  ;;  %v867_v2 = vrot.slane %v862_v0, 1  ;;  %v820_v6 = vrot.slane %v815_v5, 1  ;;  %v920_v0 = vrot.slane %v3814_v7, 2 }
 0x1ba   : > { %781 = vrot.lane.b32.xlu0 %v3800_v21, %s3042_s26 }
 0x1bb   : > { %v845_v29 = vsel %vm222_vm0, %v839_v8, %v844_v25  ;;  %v898_v8 = vrot.slane %v3806_v35, 2  ;;  %v3863_v25 = vsel %vm222_vm0, %v818_v37, %v820_v6  ;;  %v886_v6 = vrot.slane %v3834_v14, 2 }
 0x1bc   : > { %787 = vrot.lane.b32.xlu1 %v3806_v35, %s3042_s26  ;;  %6394 = vst [vmem:[#allocation66_spill] sm:$0xff] %v3863_v25  ;;  %v900_v35 = vrot.slane %v815_v5, 2 }
 0x1be   : > { %785 = vrot.lane.b32.xlu0 %v3810_v13, %s3042_s26 }
 0x1c0   : > { %803 = vrot.lane.b32.xlu1 %v3814_v7, %s3044_s3 }
 0x1c2   : > { %801 = vrot.lane.b32.xlu0 %v3821_v56, %s3044_s3 }
 0x1c4   : > { %807 = vrot.lane.b32.xlu1 %v3828_v47, %s3044_s3 }
 0x1c6   : > { %805 = vrot.lane.b32.xlu0 %v3834_v14, %s3044_s3 }
 0x1c8   : > { %850 = vrot.lane.b32.xlu1 %v843_v42, %s3042_s26  ;;  %v817_v42 = vrot.slane %v3800_v21, 1 }
 0x1ca   : > { %848 = vrot.lane.b32.xlu0 %v840_v62, %s3042_s26  ;;  %v3855_v48 = vsel %vm222_vm0, %v817_v42, %v818_v37  ;;  %v897_v62 = vrot.slane %v3791_v24, 2  ;;  %v894_v42 = vrot.slane %v3800_v21, 2  ;;  %v921_v37 = vrot.slane %v3828_v47, 2 }
 0x1cb   : > { %6393 = vst [vmem:[#allocation65_spill] sm:$0xff] %v3855_v48  ;;  %v918_v24 = vmul.f32 0.9248864, %v768_v10  ;;  %v885_v10 = vrot.slane %v3821_v56, 2 }
 0x1cc   : > { %854 = vrot.lane.b32.xlu1 %v847_v18, %s3042_s26  ;;  %v868_v18 = vsel %vm222_vm0, %v865_v59, %v867_v2  ;;  %v883_v2 = vmul.f32 0.9248864, %v767_v4 }
 0x1cd   : > { %v923_v5 = vrot.slane %v918_v24, 2  ;;  %v3885_v7 = vsel %vm390_vm1, %v885_v10, %v886_v6 }
 0x1ce   : > { %852 = vrot.lane.b32.xlu0 %v845_v29, %s3042_s26  ;;  %v895_v29 = vrot.slane %v3810_v13, 2  ;;  %v903_v13 = vsel %vm390_vm1, %v898_v8, %v902_v16  ;;  %v888_v47 = vrot.slane %v883_v2, 2  ;;  %6395 = vst [vmem:[#allocation67_spill] sm:$0xff] %v3885_v7 }
 0x1cf   : > { %v924_v4 = vsel %vm390_vm1, %v921_v37, %v923_v5  ;;  %v6398_v5 = vrot.slane %v3712_v33, 2 }
 0x1d0   : > { %871 = vrot.lane.b32.xlu1 %v866_v19, %s3044_s3  ;;  %v899_v19 = vsel %vm390_vm1, %v897_v62, %v898_v8  ;;  %v896_v59 = vsel %vm390_vm1, %v894_v42, %v895_v29  ;;  %v901_v21 = vsel %vm390_vm1, %v895_v29, %v900_v35  ;;  %v1177_v8 = vrot.slane %v3743_v27, 2  ;;  %v3892_v62 = vld [vmem:[%s3122_s25 + $0x8] sm:$0xfe]  ;;  %v3902_v42 = vld [vmem:[%s3122_s25 + $0x18] sm:$0xff]  ;;  %v3909_v27 = vld [vmem:[%s3122_s25] sm:$0xfe] }
 0x1d1   : > { %v1248_v29 = vsub.f32 %v3666_v17, %v3892_v62  ;;  %v3898_v16 = vsel %vm390_vm1, %v886_v6, %v888_v47  ;;  %v1250_v35 = vsub.f32 %v3177_v23, %v3902_v42  ;;  %v1158_v6 = vmul.f32 0.9248864, %v3723_v36 }
 0x1d2   : > { %869 = vrot.lane.b32.xlu0 %v3855_v48, %s3044_s3  ;;  %6396 = vst [vmem:[#allocation68_spill] sm:$0xff] %v3898_v16 }
 0x1d3   : > { %v1256_v10 = vand.u32 2147483647, %v1250_v35 }
 0x1d4   : > { %875 = vrot.lane.b32.xlu1 %v868_v18, %s3044_s3  ;;  %v922_v18 = vsel %vm390_vm1, %v920_v0, %v921_v37  ;;  %v6397_v37 = vrot.slane %v3705_v49, 2  ;;  %v3922_v0 = vld [vmem:[%s3122_s25 + $0x28] sm:$0x7] }
 0x1d5   : > { %v1252_v2 = vsub.f32 %v3679_v32, %v3922_v0  ;;  %v1269_v35 = vrot.slane %v1256_v10, 1 }
 0x1d6   : > { %873 = vrot.lane.b32.xlu0 %v3863_v25, %s3044_s3  ;;  %v1178_v24 = vsel %vm390_vm1, %v6397_v37, %v1177_v8  ;;  %v1160_v37 = vrot.slane %v3719_v15, 2 }
 0x1d8   : > { %906 = vrot.lane.b32.xlu1 %v899_v19, %s3042_s26  ;;  %v1175_v19 = vrot.slane %v3749_v3, 2 }
 0x1da   : > { %904 = vrot.lane.b32.xlu0 %v896_v59, %s3042_s26  ;;  %v1247_v59 = vsub.f32 %v3669_v34, %v3909_v27  ;;  %v1176_v49 = vsel %vm390_vm1, %v6398_v5, %v1175_v19  ;;  %v1163_v19 = vrot.slane %v1158_v6, 2 }
 0x1dc   : > { %910 = vrot.lane.b32.xlu1 %v903_v13, %s3042_s26  ;;  %v3917_v13 = vld [vmem:[%s3122_s25 + $0x10] sm:$0xff]  ;;  %v1253_v47 = vand.u32 2147483647, %v1247_v59 }
 0x1dd   : > { %v1249_v3 = vsub.f32 %v3174_v22, %v3917_v13 }
 0x1de   : > { %908 = vrot.lane.b32.xlu0 %v901_v21, %s3042_s26  ;;  %v1254_v21 = vand.u32 2147483647, %v1248_v29  ;;  %v1265_v5 = vrot.slane %v1253_v47, 1 }
 0x1df   : > { %v1255_v29 = vand.u32 2147483647, %v1249_v3 }
 0x1e0   : > { %927 = vrot.lane.b32.xlu1 %v922_v18, %s3044_s3  ;;  %v1161_v18 = vrot.slane %v3728_v1, 2  ;;  %v1268_v33 = vrot.slane %v1254_v21, 1 }
 0x1e2   : > { %925 = vrot.lane.b32.xlu0 %v3885_v7, %s3044_s3  ;;  %v3942_v36 = vsel %vm390_vm1, %v1160_v37, %v1161_v18  ;;  %v3949_v3 = vsel %vm390_vm1, %v1161_v18, %v1163_v19 }
 0x1e3   : > { %6399 = vst [vmem:[#allocation69_spill] sm:$0xff] %v3942_v36  ;;  %6400 = vst [vmem:[#allocation70_spill] sm:$0xff] %v3949_v3 }
 0x1e4   : > { %931 = vrot.lane.b32.xlu1 %v924_v4, %s3044_s3  ;;  %v3934_v4 = vld [vmem:[%s3122_s25 + $0x20] sm:$0x7] }
 0x1e5   : > { %v1251_v8 = vsub.f32 %v3683_v12, %v3934_v4 }
 0x1e6   : > { %929 = vrot.lane.b32.xlu0 %v3898_v16, %s3044_s3 }
 0x1e7   : > { %v1257_v59 = vand.u32 2147483647, %v1251_v8 }
 0x1e8   : > { %1185 = vrot.lane.b32.xlu1 %v1178_v24, %s3042_s26  ;;  %v1258_v24 = vand.u32 2147483647, %v1252_v2 }
 0x1e9   : > { %v1271_v6 = vrot.slane %v1257_v59, 1 }
 0x1ea   : > { %1183 = vrot.lane.b32.xlu0 %v1176_v49, %s3042_s26  ;;  %v1266_v49 = vrot.slane %v1255_v29, 1  ;;  %v1273_v21 = vrot.slane %v1258_v24, 1 }
 0x1ec   : > { %1202 = vrot.lane.b32.xlu1 %v3731_v11, %s3044_s3  ;;  %v1270_v11 = vsel %vm222_vm0, %v1268_v33, %v1269_v35  ;;  %v1267_v2 = vsel %vm222_vm0, %v1265_v5, %v1266_v49  ;;  %v1274_v10 = vsel %vm222_vm0, %v1269_v35, %v1273_v21 }
 0x1ee   : > { %1200 = vrot.lane.b32.xlu0 %v3942_v36, %s3044_s3 }
 0x1f0   : > { %1206 = vrot.lane.b32.xlu1 %v3740_v63, %s3044_s3  ;;  %v1272_v63 = vsel %vm222_vm0, %v1266_v49, %v1271_v6 }
 0x1f2   : > { %1204 = vrot.lane.b32.xlu0 %v3949_v3, %s3044_s3 }
 0x1f4   : > { %1277 = vrot.lane.b32.xlu1 %v1270_v11, %s3042_s26 }
 0x1f6   : > { %1275 = vrot.lane.b32.xlu0 %v1267_v2, %s3042_s26 }
 0x1f8   : > { %1281 = vrot.lane.b32.xlu1 %v1274_v10, %s3042_s26 }
 0x1fa   : > { %1279 = vrot.lane.b32.xlu0 %v1272_v63, %s3042_s26 }
 0x1fc   : > { %1285 = vrot.lane.b32.xlu1 %v1273_v21, %s3042_s26 }
 0x1fe   : > { %1283 = vrot.lane.b32.xlu0 %v1271_v6, %s3042_s26 }
 0x206   : > { %v3963_v18 = vpop.permute.xlu1 %1058 }
 0x207   : > { %6401 = vst [vmem:[#allocation71_spill] sm:$0xff] %v3963_v18 }
 0x208   : > { %v3965_v47 = vpop.permute.xlu0 %1056 }
 0x209   : > { %6402 = vst [vmem:[#allocation72_spill] sm:$0xff] %v3965_v47 }
 0x20a   : > { %v3967_v8 = vpop.permute.xlu1 %1062 }
 0x20b   : > { %6403 = vst [vmem:[#allocation73_spill] sm:$0xff] %v3967_v8 }
 0x20c   : > { %v3969_v37 = vpop.permute.xlu0 %1060 }
 0x20d   : > { %6404 = vst [vmem:[#allocation74_spill] sm:$0xff] %v3969_v37 }
 0x20e   : > { %v3971_v29 = vpop.permute.xlu1 %1078 }
 0x20f   : > { %6405 = vst [vmem:[#allocation75_spill] sm:$0xff] %v3971_v29 }
 0x210   : > { %v3973_v33 = vpop.permute.xlu0 %1076 }
 0x211   : > { %6406 = vst [vmem:[#allocation76_spill] sm:$0xff] %v3973_v33 }
 0x212   : > { %v3975_v19 = vpop.permute.xlu1 %1082 }
 0x213   : > { %6407 = vst [vmem:[#allocation77_spill] sm:$0xff] %v3975_v19 }
 0x214   : > { %v3977_v35 = vpop.permute.xlu0 %1080 }
 0x215   : > { %6408 = vst [vmem:[#allocation78_spill] sm:$0xff] %v3977_v35 }
 0x216   : > { %v3979_v24 = vpop.permute.xlu1 %1125 }
 0x217   : > { %6409 = vst [vmem:[#allocation79_spill] sm:$0xff] %v3979_v24 }
 0x218   : > { %v3981_v59 = vpop.permute.xlu0 %1123 }
 0x219   : > { %6410 = vst [vmem:[#allocation80_spill] sm:$0xff] %v3981_v59 }
 0x21a   : > { %v3983_v5 = vpop.permute.xlu1 %1129 }
 0x21b   : > { %6411 = vst [vmem:[#allocation81_spill] sm:$0xff] %v3983_v5 }
 0x21c   : > { %v3985_v49 = vpop.permute.xlu0 %1127 }
 0x21d   : > { %6412 = vst [vmem:[#allocation82_spill] sm:$0xff] %v3985_v49 }
 0x21e   : > { %v3987_v11 = vpop.permute.xlu1 %1146 }
 0x21f   : > { %6413 = vst [vmem:[#allocation83_spill] sm:$0xff] %v3987_v11 }
 0x220   : > { %v3989_v21 = vpop.permute.xlu0 %1144 }
 0x221   : > { %6414 = vst [vmem:[#allocation84_spill] sm:$0xff] %v3989_v21 }
 0x222   : > { %v3991_v2 = vpop.permute.xlu1 %1150 }
 0x223   : > { %6415 = vst [vmem:[#allocation85_spill] sm:$0xff] %v3991_v2 }
 0x224   : > { %v3993_v6 = vpop.permute.xlu0 %1148 }
 0x225   : > { %6416 = vst [vmem:[#allocation86_spill] sm:$0xff] %v3993_v6 }
 0x226   : > { %v3995_v10 = vpop.permute.xlu1 %1181 }
 0x227   : > { %6417 = vst [vmem:[#allocation87_spill] sm:$0xff] %v3995_v10 }
 0x228   : > { %v3997_v63 = vpop.permute.xlu0 %1179 }
 0x229   : > { %6418 = vst [vmem:[#allocation88_spill] sm:$0xff] %v3997_v63 }
 0x22a   : > { %v3999_v3 = vpop.permute.xlu1 %783 }
 0x22c   : > { %v4001_v36 = vpop.permute.xlu0 %781 }
 0x22e   : > { %v4003_v16 = vpop.permute.xlu1 %787 }
 0x22f   : > { %6419 = vst [vmem:[#allocation89_spill] sm:$0xff] %v4003_v16 }
 0x230   : > { %v4005_v5 = vpop.permute.xlu0 %785 }
 0x231   : > { %6420 = vst [vmem:[#allocation90_spill] sm:$0xff] %v4005_v5 }
 0x232   : > { %v4007_v49 = vpop.permute.xlu1 %803 }
 0x234   : > { %v4009_v11 = vpop.permute.xlu0 %801 }
 0x235   : > { %6421 = vst [vmem:[#allocation91_spill] sm:$0xff] %v4009_v11 }
 0x236   : > { %v4011_v21 = vpop.permute.xlu1 %807 }
 0x237   : > { %6422 = vst [vmem:[#allocation92_spill] sm:$0xff] %v4011_v21 }
 0x238   : > { %v4013_v2 = vpop.permute.xlu0 %805 }
 0x239   : > { %6423 = vst [vmem:[#allocation93_spill] sm:$0xff] %v4013_v2 }
 0x23a   : > { %v4015_v6 = vpop.permute.xlu1 %850 }
 0x23b   : > { %6424 = vst [vmem:[#allocation94_spill] sm:$0xff] %v4015_v6 }
 0x23c   : > { %v4017_v10 = vpop.permute.xlu0 %848 }
 0x23d   : > { %6425 = vst [vmem:[#allocation95_spill] sm:$0xff] %v4017_v10 }
 0x23e   : > { %v4019_v63 = vpop.permute.xlu1 %854 }
 0x23f   : > { %6426 = vst [vmem:[#allocation96_spill] sm:$0xff] %v4019_v63 }
 0x240   : > { %v4021_v7 = vpop.permute.xlu0 %852 }
 0x241   : > { %6427 = vst [vmem:[#allocation97_spill] sm:$0xff] %v4021_v7 }
 0x242   : > { %v4023_v59 = vpop.permute.xlu1 %871 }
 0x243   : > { %6428 = vst [vmem:[#allocation98_spill] sm:$0xff] %v4023_v59 }
 0x244   : > { %v4025_v24 = vpop.permute.xlu0 %869 }
 0x245   : > { %6429 = vst [vmem:[#allocation99_spill] sm:$0xff] %v4025_v24 }
 0x246   : > { %v4027_v1 = vpop.permute.xlu1 %875 }
 0x247   : > { %6430 = vst [vmem:[#allocation100_spill] sm:$0xff] %v4027_v1 }
 0x248   : > { %v4029_v25 = vpop.permute.xlu0 %873 }
 0x249   : > { %6431 = vst [vmem:[#allocation101_spill] sm:$0xff] %v4029_v25 }
 0x24a   : > { %v4031_v35 = vpop.permute.xlu1 %906 }
 0x24b   : > { %6432 = vst [vmem:[#allocation102_spill] sm:$0xff] %v4031_v35 }
 0x24c   : > { %v4033_v19 = vpop.permute.xlu0 %904 }
 0x24d   : > { %6433 = vst [vmem:[#allocation103_spill] sm:$0xff] %v4033_v19 }
 0x24e   : > { %v4035_v15 = vpop.permute.xlu1 %910 }
 0x24f   : > { %6434 = vst [vmem:[#allocation104_spill] sm:$0xff] %v4035_v15 }
 0x250   : > { %v4037_v33 = vpop.permute.xlu0 %908 }
 0x251   : > { %6435 = vst [vmem:[#allocation105_spill] sm:$0xff] %v4037_v33 }
 0x252   : > { %v4039_v29 = vpop.permute.xlu1 %927 }
 0x253   : > { %6436 = vst [vmem:[#allocation106_spill] sm:$0xff] %v4039_v29 }
 0x254   : > { %v4041_v63 = vpop.permute.xlu0 %925 }
 0x255   : > { %6437 = vst [vmem:[#allocation107_spill] sm:$0xff] %v4041_v63 }
 0x256   : > { %v4043_v7 = vpop.permute.xlu1 %931 }
 0x257   : > { %6438 = vst [vmem:[#allocation108_spill] sm:$0xff] %v4043_v7 }
 0x258   : > { %v4045_v37 = vpop.permute.xlu0 %929 }
 0x259   : > { %6439 = vst [vmem:[#allocation109_spill] sm:$0xff] %v4045_v37 }
 0x25a   : > { %v4047_v8 = vpop.permute.xlu1 %1185 }
 0x25b   : > { %6440 = vst [vmem:[#allocation110_spill] sm:$0xff] %v4047_v8 }
 0x25c   : > { %v4049_v1 = vpop.permute.xlu0 %1183 }
 0x25d   : > { %6441 = vst [vmem:[#allocation111_spill] sm:$0xff] %v4049_v1 }
 0x25e   : > { %v4051_v25 = vpop.permute.xlu1 %1202 }
 0x25f   : > { %6442 = vst [vmem:[#allocation112_spill] sm:$0xff] %v4051_v25 }
 0x260   : > { %v4053_v35 = vpop.permute.xlu0 %1200 }
 0x261   : > { %6443 = vst [vmem:[#allocation113_spill] sm:$0xff] %v4053_v35 }
 0x262   : > { %v4055_v19 = vpop.permute.xlu1 %1206 }
 0x263   : > { %6444 = vst [vmem:[#allocation114_spill] sm:$0xff] %v4055_v19 }
 0x264   : > { %v4057_v15 = vpop.permute.xlu0 %1204 }
 0x265   : > { %6445 = vst [vmem:[#allocation115_spill] sm:$0xff] %v4057_v15 }
 0x266   : > { %v1278_v33 = vpop.permute.xlu1 %1277 }
 0x267   : > { %v1297_v63 = vsel %vm3252_vm11, %v1278_v33, 0.0 }
 0x268   : > { %v4061_v29 = vmul.f32 0.8761586, %v1297_v63  ;;  %v1276_v7 = vpop.permute.xlu0 %1275  ;;  %v4083_v48 = vmul.f32 0.9248864, %v1297_v63  ;;  %v1360_v18 = vmul.f32 0.79582006, %v1297_v63 }
 0x269   : > { %v1287_v37 = vsel %vm245_vm9, %v1276_v7, %v1278_v33 }
 0x26a   : > { %v1296_v1 = vsel %vm3260_vm12, %v1287_v37, 0.0  ;;  %1316 = vrot.lane.b32.xlu1 %v4061_v29, %s3042_s26  ;;  %v1282_v8 = vpop.permute.xlu1 %1281 }
 0x26b   : > { %v4068_v35 = vmul.f32 0.8761586, %v1296_v1  ;;  %v1299_v15 = vsel %vm193_vm8, %v1282_v8, 0.0  ;;  %v1359_v2 = vmul.f32 0.79582006, %v1296_v1 }
 0x26c   : > { %v1280_v19 = vpop.permute.xlu0 %1279  ;;  %v4072_v25 = vmul.f32 0.8761586, %v1299_v15  ;;  %v1362_v47 = vmul.f32 0.79582006, %v1299_v15  ;;  %v4094_v6 = vmul.f32 0.9248864, %v1299_v15 }
 0x26d   : > { %v1288_v24 = vsel %vm245_vm9, %v1280_v19, %v1282_v8  ;;  %1314 = vrot.lane.b32.xlu0 %v4068_v35, %s3042_s26  ;;  %v4088_v19 = vmul.f32 0.9248864, %v1296_v1  ;;  %v1371_v15 = vrot.slane %v1359_v2, 1 }
 0x26e   : > { %v1298_v7 = vsel %vm184_vm10, %v1288_v24, 0.0  ;;  %1320 = vrot.lane.b32.xlu1 %v4072_v25, %s3042_s26  ;;  %v1286_v33 = vpop.permute.xlu1 %1285 }
 0x26f   : > { %v4079_v37 = vmul.f32 0.8761586, %v1298_v7  ;;  %6446 = vst [vmem:[#allocation116_spill] sm:$0xff] %v4088_v19  ;;  %v1301_v24 = vsel %vm3352_vm14, %v1286_v33, 0.0  ;;  %v1361_v10 = vmul.f32 0.79582006, %v1298_v7 }
 0x270   : > { %v1284_v59 = vpop.permute.xlu0 %1283  ;;  %v1364_v21 = vmul.f32 0.79582006, %v1301_v24  ;;  %v4100_v5 = vmul.f32 0.9248864, %v1298_v7  ;;  %v1395_v7 = vmul.f32 0.8761586, %v1301_v24 }
 0x271   : > { %1318 = vrot.lane.b32.xlu0 %v4079_v37, %s3042_s26  ;;  %v1289_v8 = vsel %vm245_vm9, %v1284_v59, %v1286_v33  ;;  %v1375_v59 = vrot.slane %v1362_v47, 1  ;;  %v1374_v33 = vrot.slane %v1360_v18, 1  ;;  %v1372_v16 = vrot.slane %v1361_v10, 1 }
 0x272   : > { %1336 = vrot.lane.b32.xlu1 %v4083_v48, %s3044_s3  ;;  %v1300_v14 = vsel %vm3361_vm15, %v1289_v8, 0.0  ;;  %6447 = vst [vmem:[#allocation117_spill] sm:$0xff] %v4100_v5  ;;  %v1379_v56 = vrot.slane %v1364_v21, 1  ;;  %v1398_v18 = vrot.slane %v4072_v25, 1  ;;  %v1397_v21 = vrot.slane %v4061_v29, 1 }
 0x273   : > { %v1363_v63 = vmul.f32 0.79582006, %v1300_v14  ;;  %v1376_v8 = vsel %vm222_vm0, %v1374_v33, %v1375_v59  ;;  %v1373_v47 = vsel %vm222_vm0, %v1371_v15, %v1372_v16  ;;  %v1348_v10 = vmul.f32 0.8761586, %v1300_v14 }
 0x274   : > { %v1380_v11 = vsel %vm222_vm0, %v1375_v59, %v1379_v56  ;;  %v1351_v33 = vrot.slane %v4079_v37, 1  ;;  %v1399_v15 = vsel %vm222_vm0, %v1397_v21, %v1398_v18  ;;  %v1435_v21 = vrot.slane %v1395_v7, 2 }
 0x275   : > { %1334 = vrot.lane.b32.xlu0 %v4088_v19, %s3044_s3  ;;  %v1377_v1 = vrot.slane %v1363_v63, 1  ;;  %v1400_v63 = vrot.slane %v1395_v7, 1  ;;  %v1353_v56 = vrot.slane %v1348_v10, 1  ;;  %v1453_v7 = vrot.slane %v4083_v48, 2 }
 0x276   : > { %1340 = vrot.lane.b32.xlu1 %v4094_v6, %s3044_s3 }
 0x277   : > { %v1378_v2 = vsel %vm222_vm0, %v1372_v16, %v1377_v1  ;;  %v1401_v16 = vsel %vm222_vm0, %v1398_v18, %v1400_v63  ;;  %v4129_v1 = vsel %vm222_vm0, %v1351_v33, %v1353_v56  ;;  %v1427_v18 = vrot.slane %v4068_v35, 2  ;;  %v1472_v56 = vld [vmem:[%s3203_s29 + $0x8] sm:$0xfe] }
 0x278   : > { %6449 = vst [vmem:[#allocation119_spill] sm:$0xff] %v4129_v1 }
 0x279   : > { %1338 = vrot.lane.b32.xlu0 %v4100_v5, %s3044_s3 }
 0x27a   : > { %1383 = vrot.lane.b32.xlu1 %v1376_v8, %s3042_s26  ;;  %v1350_v8 = vrot.slane %v4068_v35, 1 }
 0x27c   : > { %v4121_v59 = vsel %vm222_vm0, %v1350_v8, %v1351_v33  ;;  %v1416_v8 = vmul.f32 0.9248864, %v1300_v14 }
 0x27d   : > { %1381 = vrot.lane.b32.xlu0 %v1373_v47, %s3042_s26  ;;  %6448 = vst [vmem:[#allocation118_spill] sm:$0xff] %v4121_v59  ;;  %v1430_v47 = vrot.slane %v4061_v29, 2  ;;  %v1454_v29 = vrot.slane %v4094_v6, 2 }
 0x27e   : > { %1387 = vrot.lane.b32.xlu1 %v1380_v11, %s3042_s26  ;;  %v1431_v11 = vrot.slane %v4072_v25, 2  ;;  %v1433_v25 = vrot.slane %v1348_v10, 2  ;;  %v1419_v10 = vrot.slane %v4100_v5, 2  ;;  %v1421_v14 = vrot.slane %v1416_v8, 2 }
 0x27f   : > { %v1455_v6 = vsel %vm390_vm1, %v1453_v7, %v1454_v29 }
 0x280   : > { %v1436_v33 = vsel %vm390_vm1, %v1431_v11, %v1435_v21  ;;  %v1214_v21 = vld [vmem:[%s3203_s29] sm:$0xfe] }
 0x281   : > { %1385 = vrot.lane.b32.xlu0 %v1378_v2, %s3042_s26  ;;  %v1428_v2 = vrot.slane %v4079_v37, 2  ;;  %v1451_v37 = vmul.f32 0.9248864, %v1301_v24  ;;  %v1418_v24 = vrot.slane %v4088_v19, 2 }
 0x282   : > { %1404 = vrot.lane.b32.xlu1 %v1399_v15, %s3044_s3  ;;  %v1432_v15 = vsel %vm390_vm1, %v1430_v47, %v1431_v11  ;;  %v2975_v11 = vld [vmem:[%s3203_s29 + $0x18] sm:$0xff] }
 0x283   : > { %v1429_v63 = vsel %vm390_vm1, %v1427_v18, %v1428_v2  ;;  %v1434_v35 = vsel %vm390_vm1, %v1428_v2, %v1433_v25  ;;  %v1483_v47 = vrot.slane %v2975_v11, 1  ;;  %v4153_v48 = vsel %vm390_vm1, %v1418_v24, %v1419_v10 }
 0x284   : > { %6450 = vst [vmem:[#allocation120_spill] sm:$0xff] %v4153_v48  ;;  %v1482_v2 = vrot.slane %v1472_v56, 1  ;;  %v1224_v25 = vrot.slane %v1214_v21, 1 }
 0x285   : > { %1402 = vrot.lane.b32.xlu0 %v4121_v59, %s3044_s3 }
 0x286   : > { %1408 = vrot.lane.b32.xlu1 %v1401_v16, %s3044_s3  ;;  %v1456_v16 = vrot.slane %v1451_v37, 2  ;;  %v4165_v37 = vsel %vm222_vm0, %v1482_v2, %v1483_v47 }
 0x288   : > { %v1457_v18 = vsel %vm390_vm1, %v1454_v29, %v1456_v16 }
 0x289   : > { %1406 = vrot.lane.b32.xlu0 %v4129_v1, %s3044_s3 }
 0x28a   : > { %1439 = vrot.lane.b32.xlu1 %v1432_v15, %s3042_s26  ;;  %v1473_v15 = vld [vmem:[%s3203_s29 + $0x28] sm:$0x1] }
 0x28b   : > { %v1485_v8 = vrot.slane %v1473_v15, 1 }
 0x28d   : > { %1437 = vrot.lane.b32.xlu0 %v1429_v63, %s3042_s26  ;;  %v4162_v63 = vsel %vm390_vm1, %v1419_v10, %v1421_v14  ;;  %v4177_v56 = vsel %vm222_vm0, %v1483_v47, %v1485_v8 }
 0x28e   : > { %1443 = vrot.lane.b32.xlu1 %v1436_v33, %s3042_s26  ;;  %6451 = vst [vmem:[#allocation121_spill] sm:$0xff] %v4162_v63  ;;  %v2976_v33 = vld [vmem:[%s3203_s29 + $0x10] sm:$0xff] }
 0x28f   : > { %v1225_v7 = vrot.slane %v2976_v33, 1 }
 0x291   : > { %1441 = vrot.lane.b32.xlu0 %v1434_v35, %s3042_s26  ;;  %v1215_v35 = vld [vmem:[%s3203_s29 + $0x20] sm:$0x1]  ;;  %v4174_v29 = vsel %vm222_vm0, %v1224_v25, %v1225_v7 }
 0x292   : > { %1460 = vrot.lane.b32.xlu1 %v1455_v6, %s3044_s3  ;;  %6452 = vst [vmem:[#allocation122_spill] sm:$0xff] %v4174_v29  ;;  %v1227_v10 = vrot.slane %v1215_v35, 1 }
 0x294   : > { %v4184_v16 = vsel %vm222_vm0, %v1225_v7, %v1227_v10 }
 0x295   : > { %1458 = vrot.lane.b32.xlu0 %v4153_v48, %s3044_s3  ;;  %6453 = vst [vmem:[#allocation123_spill] sm:$0xff] %v4184_v16 }
 0x296   : > { %1464 = vrot.lane.b32.xlu1 %v1457_v18, %s3044_s3 }
 0x299   : > { %1462 = vrot.lane.b32.xlu0 %v4162_v63, %s3044_s3 }
 0x29a   : > { %1489 = vrot.lane.b32.xlu1 %v4165_v37, %s3042_s26 }
 0x29d   : > { %1487 = vrot.lane.b32.xlu0 %v4174_v29, %s3042_s26 }
 0x29e   : > { %1493 = vrot.lane.b32.xlu1 %v4177_v56, %s3042_s26 }
 0x2a1   : > { %1491 = vrot.lane.b32.xlu0 %v4184_v16, %s3042_s26 }
 0x2a2   : > { %1517 = vrot.lane.b32.xlu1 %v3892_v62, %s3043_s30 }
 0x2a5   : > { %1515 = vrot.lane.b32.xlu0 %v3909_v27, %s3043_s30 }
 0x2a6   : > { %1521 = vrot.lane.b32.xlu1 %v3902_v42, %s3043_s30 }
 0x2a9   : > { %1519 = vrot.lane.b32.xlu0 %v3917_v13, %s3043_s30 }
 0x2aa   : > { %1525 = vrot.lane.b32.xlu1 %v3922_v0, %s3043_s30 }
 0x2ad   : > { %1523 = vrot.lane.b32.xlu0 %v3934_v4, %s3043_s30 }
 0x2dc   : > { %v4200_v6 = vpop.permute.xlu1 %1316 }
 0x2dd   : > { %6454 = vst [vmem:[#allocation124_spill] sm:$0xff] %v4200_v6 }
 0x2df   : > { %v4202_v24 = vpop.permute.xlu0 %1314 }
 0x2e0   : > { %6455 = vst [vmem:[#allocation125_spill] sm:$0xff] %v4202_v24  ;;  %v4204_v11 = vpop.permute.xlu1 %1320 }
 0x2e1   : > { %6456 = vst [vmem:[#allocation126_spill] sm:$0xff] %v4204_v11 }
 0x2e3   : > { %v4206_v47 = vpop.permute.xlu0 %1318 }
 0x2e4   : > { %6457 = vst [vmem:[#allocation127_spill] sm:$0xff] %v4206_v47  ;;  %v4208_v14 = vpop.permute.xlu1 %1336 }
 0x2e5   : > { %6458 = vst [vmem:[#allocation128_spill] sm:$0xff] %v4208_v14 }
 0x2e7   : > { %v4210_v2 = vpop.permute.xlu0 %1334 }
 0x2e8   : > { %6459 = vst [vmem:[#allocation129_spill] sm:$0xff] %v4210_v2  ;;  %v4212_v21 = vpop.permute.xlu1 %1340 }
 0x2e9   : > { %6460 = vst [vmem:[#allocation130_spill] sm:$0xff] %v4212_v21 }
 0x2eb   : > { %v4214_v15 = vpop.permute.xlu0 %1338 }
 0x2ec   : > { %6461 = vst [vmem:[#allocation131_spill] sm:$0xff] %v4214_v15  ;;  %v4216_v18 = vpop.permute.xlu1 %1383 }
 0x2ed   : > { %6462 = vst [vmem:[#allocation132_spill] sm:$0xff] %v4216_v18 }
 0x2ef   : > { %v4218_v25 = vpop.permute.xlu0 %1381 }
 0x2f0   : > { %6463 = vst [vmem:[#allocation133_spill] sm:$0xff] %v4218_v25  ;;  %v4220_v33 = vpop.permute.xlu1 %1387 }
 0x2f1   : > { %6464 = vst [vmem:[#allocation134_spill] sm:$0xff] %v4220_v33 }
 0x2f3   : > { %v4222_v7 = vpop.permute.xlu0 %1385 }
 0x2f4   : > { %6465 = vst [vmem:[#allocation135_spill] sm:$0xff] %v4222_v7  ;;  %v4224_v8 = vpop.permute.xlu1 %1404 }
 0x2f5   : > { %6466 = vst [vmem:[#allocation136_spill] sm:$0xff] %v4224_v8 }
 0x2f7   : > { %v4226_v35 = vpop.permute.xlu0 %1402 }
 0x2f8   : > { %6467 = vst [vmem:[#allocation137_spill] sm:$0xff] %v4226_v35  ;;  %v4228_v10 = vpop.permute.xlu1 %1408 }
 0x2f9   : > { %6468 = vst [vmem:[#allocation138_spill] sm:$0xff] %v4228_v10 }
 0x2fb   : > { %v4230_v63 = vpop.permute.xlu0 %1406 }
 0x2fc   : > { %6469 = vst [vmem:[#allocation139_spill] sm:$0xff] %v4230_v63  ;;  %v4232_v48 = vpop.permute.xlu1 %1439 }
 0x2fd   : > { %6470 = vst [vmem:[#allocation140_spill] sm:$0xff] %v4232_v48 }
 0x2ff   : > { %v4234_v1 = vpop.permute.xlu0 %1437 }
 0x300   : > { %6471 = vst [vmem:[#allocation141_spill] sm:$0xff] %v4234_v1  ;;  %v4236_v59 = vpop.permute.xlu1 %1443 }
 0x301   : > { %6472 = vst [vmem:[#allocation142_spill] sm:$0xff] %v4236_v59 }
 0x303   : > { %v4238_v5 = vpop.permute.xlu0 %1441 }
 0x304   : > { %6473 = vst [vmem:[#allocation143_spill] sm:$0xff] %v4238_v5  ;;  %v4240_v25 = vpop.permute.xlu1 %1460 }
 0x305   : > { %6474 = vst [vmem:[#allocation144_spill] sm:$0xff] %v4240_v25 }
 0x307   : > { %v4242_v33 = vpop.permute.xlu0 %1458 }
 0x308   : > { %6475 = vst [vmem:[#allocation145_spill] sm:$0xff] %v4242_v33  ;;  %v4244_v7 = vpop.permute.xlu1 %1464 }
 0x309   : > { %6476 = vst [vmem:[#allocation146_spill] sm:$0xff] %v4244_v7 }
 0x30b   : > { %v4246_v8 = vpop.permute.xlu0 %1462 }
 0x30c   : > { %6477 = vst [vmem:[#allocation147_spill] sm:$0xff] %v4246_v8  ;;  %v4248_v35 = vpop.permute.xlu1 %1489 }
 0x30d   : > { %6478 = vst [vmem:[#allocation148_spill] sm:$0xff] %v4248_v35 }
 0x30f   : > { %v4250_v10 = vpop.permute.xlu0 %1487 }
 0x310   : > { %6479 = vst [vmem:[#allocation149_spill] sm:$0xff] %v4250_v10  ;;  %v4252_v63 = vpop.permute.xlu1 %1493 }
 0x311   : > { %6480 = vst [vmem:[#allocation150_spill] sm:$0xff] %v4252_v63 }
 0x313   : > { %v4254_v48 = vpop.permute.xlu0 %1491 }
 0x314   : > { %6481 = vst [vmem:[#allocation151_spill] sm:$0xff] %v4254_v48  ;;  %v1518_v1 = vpop.permute.xlu1 %1517 }
 0x317   : > { %v1516_v59 = vpop.permute.xlu0 %1515 }
 0x318   : > { %v1527_v5 = vsel %vm714_vm2, %v1516_v59, %v1518_v1  ;;  %v1536_v25 = vsub.f32 %v3669_v34, %v1516_v59  ;;  %v1522_v18 = vpop.permute.xlu1 %1521 }
 0x319   : > { %v1537_v33 = vsub.f32 %v3666_v17, %v1527_v5 }
 0x31a   : > { %v1542_v15 = vand.u32 2147483647, %v1536_v25 }
 0x31b   : > { %v1520_v7 = vpop.permute.xlu0 %1519  ;;  %v1543_v10 = vand.u32 2147483647, %v1537_v33 }
 0x31c   : > { %v1528_v8 = vsel %vm714_vm2, %v1520_v7, %v1522_v18  ;;  %v1538_v35 = vsub.f32 %v3174_v22, %v1520_v7  ;;  %v1526_v21 = vpop.permute.xlu1 %1525  ;;  %v1554_v19 = vrot.slane %v1542_v15, 1 }
 0x31d   : > { %v1539_v63 = vsub.f32 %v3177_v23, %v1528_v8  ;;  %v1557_v5 = vrot.slane %v1543_v10, 1 }
 0x31e   : > { %v1544_v48 = vand.u32 2147483647, %v1538_v35 }
 0x31f   : > { %v1545_v47 = vand.u32 2147483647, %v1539_v63  ;;  %v1524_v11 = vpop.permute.xlu0 %1523 }
 0x320   : > { %v1555_v1 = vrot.slane %v1544_v48, 1  ;;  %v1529_v34 = vsel %vm714_vm2, %v1524_v11, %v1526_v21  ;;  %v1540_v17 = vsub.f32 %v3683_v12, %v1524_v11 }
 0x321   : > { %v1558_v59 = vrot.slane %v1545_v47, 1  ;;  %v1541_v25 = vsub.f32 %v3679_v32, %v1529_v34 }
 0x322   : > { %v1546_v18 = vand.u32 2147483647, %v1540_v17  ;;  %v1556_v7 = vsel %vm222_vm0, %v1554_v19, %v1555_v1 }
 0x323   : > { %v1547_v33 = vand.u32 2147483647, %v1541_v25  ;;  %1564 = vrot.lane.b32.xlu0 %v1556_v7, %s3044_s3  ;;  %v1559_v8 = vsel %vm222_vm0, %v1557_v5, %v1558_v59 }
 0x324   : > { %v1560_v63 = vrot.slane %v1546_v18, 1  ;;  %1566 = vrot.lane.b32.xlu1 %v1559_v8, %s3044_s3 }
 0x325   : > { %v1562_v48 = vrot.slane %v1547_v33, 1 }
 0x326   : > { %v1561_v21 = vsel %vm222_vm0, %v1555_v1, %v1560_v63 }
 0x327   : > { %1568 = vrot.lane.b32.xlu0 %v1561_v21, %s3044_s3  ;;  %v1563_v12 = vsel %vm222_vm0, %v1558_v59, %v1562_v48 }
 0x328   : > { %1570 = vrot.lane.b32.xlu1 %v1563_v12, %s3044_s3 }
 0x32b   : > { %1572 = vrot.lane.b32.xlu0 %v1560_v63, %s3044_s3 }
 0x32c   : > { %1574 = vrot.lane.b32.xlu1 %v1562_v48, %s3044_s3 }
 0x395   : > { %v1565_v32 = vpop.permute.xlu0 %1564 }
 0x396   : > { %v1567_v19 = vpop.permute.xlu1 %1566 }
 0x397   : > { %v1576_v11 = vsel %vm313_vm7, %v1565_v32, %v1567_v19  ;;  %v1586_v47 = vsel %vm3252_vm11, %v1567_v19, 0.0 }
 0x398   : > { %v1585_v15 = vsel %vm3260_vm12, %v1576_v11, 0.0  ;;  %v4280_v35 = vmul.f32 0.8761586, %v1586_v47  ;;  %v4301_v8 = vmul.f32 0.9248864, %v1586_v47 }
 0x399   : > { %v4282_v10 = vmul.f32 0.8761586, %v1585_v15  ;;  %v1569_v1 = vpop.permute.xlu0 %1568  ;;  %v4304_v48 = vmul.f32 0.9248864, %v1585_v15  ;;  %v1649_v19 = vmul.f32 0.79582006, %v1586_v47 }
 0x39a   : > { %1605 = vrot.lane.b32.xlu1 %v4280_v35, %s3042_s26  ;;  %v1571_v34 = vpop.permute.xlu1 %1570 }
 0x39b   : > { %v1577_v17 = vsel %vm313_vm7, %v1569_v1, %v1571_v34  ;;  %v1588_v5 = vsel %vm193_vm8, %v1571_v34, 0.0  ;;  %1603 = vrot.lane.b32.xlu0 %v4282_v10, %s3042_s26  ;;  %6482 = vst [vmem:[#allocation152_spill] sm:$0xff] %v4304_v48  ;;  %v1648_v1 = vmul.f32 0.79582006, %v1585_v15  ;;  %v1663_v47 = vrot.slane %v1649_v19, 1 }
 0x39c   : > { %v1587_v59 = vsel %vm184_vm10, %v1577_v17, 0.0  ;;  %v4293_v25 = vmul.f32 0.8761586, %v1588_v5  ;;  %v1651_v21 = vmul.f32 0.79582006, %v1588_v5 }
 0x39d   : > { %v4295_v18 = vmul.f32 0.8761586, %v1587_v59  ;;  %v1573_v7 = vpop.permute.xlu0 %1572  ;;  %v1650_v12 = vmul.f32 0.79582006, %v1587_v59  ;;  %v4318_v34 = vmul.f32 0.9248864, %v1588_v5 }
 0x39e   : > { %1609 = vrot.lane.b32.xlu1 %v4293_v25, %s3042_s26  ;;  %v1575_v33 = vpop.permute.xlu1 %1574  ;;  %v4320_v17 = vmul.f32 0.9248864, %v1587_v59  ;;  %v1687_v19 = vrot.slane %v4293_v25, 1 }
 0x39f   : > { %1607 = vrot.lane.b32.xlu0 %v4295_v18, %s3042_s26  ;;  %v1578_v63 = vsel %vm313_vm7, %v1573_v7, %v1575_v33  ;;  %v4308_v32 = vsel %vm3352_vm14, %v1575_v33, 0.0  ;;  %v1664_v7 = vrot.slane %v1651_v21, 1  ;;  %v1661_v2 = vrot.slane %v1650_v12, 1 }
 0x3a0   : > { %v4314_v11 = vsel %vm3361_vm15, %v1578_v63, 0.0  ;;  %6483 = vst [vmem:[#allocation153_spill] sm:$0xff] %v4320_v17  ;;  %v1653_v33 = vmul.f32 0.79582006, %v4308_v32  ;;  %v1660_v63 = vrot.slane %v1648_v1, 1 }
 0x3a1   : > { %v1652_v14 = vmul.f32 0.79582006, %v4314_v11  ;;  %v1665_v15 = vsel %vm222_vm0, %v1663_v47, %v1664_v7  ;;  %v1684_v21 = vmul.f32 0.8761586, %v4308_v32  ;;  %v1637_v6 = vmul.f32 0.8761586, %v4314_v11 }
 0x3a2   : > { %1625 = vrot.lane.b32.xlu1 %v4301_v8, %s3044_s3  ;;  %v1668_v24 = vrot.slane %v1653_v33, 1  ;;  %v1662_v59 = vsel %vm222_vm0, %v1660_v63, %v1661_v2  ;;  %v1686_v33 = vrot.slane %v4280_v35, 1  ;;  %v1639_v47 = vrot.slane %v4282_v10, 1 }
 0x3a3   : > { %1623 = vrot.lane.b32.xlu0 %v4304_v48, %s3044_s3  ;;  %v1666_v5 = vrot.slane %v1652_v14, 1  ;;  %v1640_v14 = vrot.slane %v4295_v18, 1  ;;  %v1689_v63 = vrot.slane %v1684_v21, 1 }
 0x3a4   : > { %v1669_v12 = vsel %vm222_vm0, %v1664_v7, %v1668_v24  ;;  %v1642_v7 = vrot.slane %v1637_v6, 1 }
 0x3a5   : > { %v1667_v1 = vsel %vm222_vm0, %v1661_v2, %v1666_v5  ;;  %v4345_v24 = vsel %vm222_vm0, %v1639_v47, %v1640_v14  ;;  %v1690_v2 = vsel %vm222_vm0, %v1687_v19, %v1689_v63  ;;  %v1720_v5 = vrot.slane %v4293_v25, 2 }
 0x3a6   : > { %1629 = vrot.lane.b32.xlu1 %v4318_v34, %s3044_s3  ;;  %6484 = vst [vmem:[#allocation154_spill] sm:$0xff] %v4345_v24 }
 0x3a7   : > { %1627 = vrot.lane.b32.xlu0 %v4320_v17, %s3044_s3 }
 0x3aa   : > { %1672 = vrot.lane.b32.xlu1 %v1665_v15, %s3042_s26  ;;  %v1688_v15 = vsel %vm222_vm0, %v1686_v33, %v1687_v19  ;;  %v1716_v33 = vrot.slane %v4282_v10, 2  ;;  %v4364_v19 = vrot.slane %v3892_v62, 7  ;;  %v1818_v62 = vrot.slane %v3922_v0, 7 }
 0x3ab   : > { %1670 = vrot.lane.b32.xlu0 %v1662_v59, %s3042_s26  ;;  %v4353_v59 = vsel %vm222_vm0, %v1640_v14, %v1642_v7  ;;  %v1814_v14 = vrot.slane %v3902_v42, 7  ;;  %v1722_v0 = vrot.slane %v1637_v6, 2  ;;  %v1740_v7 = vmul.f32 0.9248864, %v4308_v32 }
 0x3ac   : > { %6485 = vst [vmem:[#allocation155_spill] sm:$0xff] %v4353_v59  ;;  %v1707_v6 = vrot.slane %v4304_v48, 2 }
 0x3ad   : > { %v4377_v10 = vsel %vm1809_vm13, %v4364_v19, %v1814_v14  ;;  %v4388_v42 = vsel %vm1809_vm13, %v1814_v14, %v1818_v62 }
 0x3ae   : > { %1676 = vrot.lane.b32.xlu1 %v1669_v12, %s3042_s26  ;;  %v1717_v12 = vrot.slane %v4295_v18, 2  ;;  %v4368_v18 = vrot.slane %v3909_v27, 7  ;;  %v1816_v27 = vrot.slane %v3934_v4, 7  ;;  %v1743_v4 = vrot.slane %v4318_v34, 2 }
 0x3af   : > { %1674 = vrot.lane.b32.xlu0 %v1667_v1, %s3042_s26  ;;  %v1719_v1 = vrot.slane %v4280_v35, 2  ;;  %v1812_v35 = vrot.slane %v3917_v13, 7 }
 0x3b0   : > { %v1718_v25 = vsel %vm390_vm1, %v1716_v33, %v1717_v12  ;;  %v1723_v33 = vsel %vm390_vm1, %v1717_v12, %v1722_v0 }
 0x3b1   : > { %v1721_v47 = vsel %vm390_vm1, %v1719_v1, %v1720_v5  ;;  %v4381_v63 = vsel %vm1809_vm13, %v4368_v18, %v1812_v35  ;;  %v4390_v13 = vsel %vm1809_vm13, %v1812_v35, %v1816_v27  ;;  %v1705_v1 = vmul.f32 0.9248864, %v4314_v11 }
 0x3b2   : > { %1693 = vrot.lane.b32.xlu1 %v1688_v15, %s3044_s3  ;;  %v1724_v15 = vrot.slane %v1684_v21, 2  ;;  %v1708_v21 = vrot.slane %v4320_v17, 2  ;;  %v1798_v17 = vld [vmem:[%s3122_s25 + $0x8] sm:$0xfc] }
 0x3b3   : > { %1691 = vrot.lane.b32.xlu0 %v4345_v24, %s3044_s3  ;;  %v1710_v32 = vrot.slane %v1705_v1, 2  ;;  %v1797_v24 = vld [vmem:[%s3122_s25] sm:$0xfc]  ;;  %vm1802_vm3 = vcmp.lt.f32.partialorder %v1798_v17, 0.0 }
 0x3b4   : > { %v4409_v11 = vsel %vm390_vm1, %v1707_v6, %v1708_v21  ;;  %vm1801_vm4 = vcmp.lt.f32.partialorder %v1797_v24, 0.0 }
 0x3b5   : > { %6486 = vst [vmem:[#allocation156_spill] sm:$0xff] %v4409_v11 }
 0x3b6   : > { %1697 = vrot.lane.b32.xlu1 %v1690_v2, %s3044_s3  ;;  %v1725_v2 = vsel %vm390_vm1, %v1720_v5, %v1724_v15 }
 0x3b7   : > { %1695 = vrot.lane.b32.xlu0 %v4353_v59, %s3044_s3 }
 0x3ba   : > { %1728 = vrot.lane.b32.xlu1 %v1721_v47, %s3042_s26  ;;  %v1742_v47 = vrot.slane %v4301_v8, 2  ;;  %v4416_v8 = vsel %vm390_vm1, %v1708_v21, %v1710_v32 }
 0x3bb   : > { %1726 = vrot.lane.b32.xlu0 %v1718_v25, %s3042_s26  ;;  %v1745_v25 = vrot.slane %v1740_v7, 2  ;;  %6487 = vst [vmem:[#allocation157_spill] sm:$0xff] %v4416_v8 }
 0x3bc   : > { %v1744_v34 = vsel %vm390_vm1, %v1742_v47, %v1743_v4 }
 0x3bd   : > { %v1746_v5 = vsel %vm390_vm1, %v1743_v4, %v1745_v25 }
 0x3be   : > { %2360 = vrot.lane.b32.xlu1 %v4364_v19, %s3043_s30 }
 0x3bf   : > { %2358 = vrot.lane.b32.xlu0 %v4368_v18, %s3043_s30 }
 0x3c2   : > { %2364 = vrot.lane.b32.xlu1 %v4377_v10, %s3043_s30 }
 0x3c3   : > { %2362 = vrot.lane.b32.xlu0 %v4381_v63, %s3043_s30 }
 0x3c6   : > { %2368 = vrot.lane.b32.xlu1 %v4388_v42, %s3043_s30 }
 0x3c7   : > { %2366 = vrot.lane.b32.xlu0 %v4390_v13, %s3043_s30 }
 0x3ca   : > { %1732 = vrot.lane.b32.xlu1 %v1725_v2, %s3042_s26 }
 0x3cb   : > { %1730 = vrot.lane.b32.xlu0 %v1723_v33, %s3042_s26 }
 0x3ce   : > { %1749 = vrot.lane.b32.xlu1 %v1744_v34, %s3044_s3 }
 0x3cf   : > { %1747 = vrot.lane.b32.xlu0 %v4409_v11, %s3044_s3 }
 0x3d2   : > { %1753 = vrot.lane.b32.xlu1 %v1746_v5, %s3044_s3 }
 0x3d3   : > { %1751 = vrot.lane.b32.xlu0 %v4416_v8, %s3044_s3 }
 0x3d6   : > { %1771 = vrot.lane.b32.xlu1 %v4165_v37, %s3044_s3 }
 0x3d7   : > { %1769 = vrot.lane.b32.xlu0 %v4174_v29, %s3044_s3 }
 0x3da   : > { %1775 = vrot.lane.b32.xlu1 %v4177_v56, %s3044_s3 }
 0x3db   : > { %1773 = vrot.lane.b32.xlu0 %v4184_v16, %s3044_s3 }
 0x3de   : > { %1822 = vrot.lane.b32.xlu1 %v4364_v19, %s3042_s26 }
 0x3df   : > { %1820 = vrot.lane.b32.xlu0 %v4368_v18, %s3042_s26 }
 0x3e2   : > { %1826 = vrot.lane.b32.xlu1 %v4377_v10, %s3042_s26 }
 0x3e3   : > { %1824 = vrot.lane.b32.xlu0 %v4381_v63, %s3042_s26 }
 0x3e6   : > { %1830 = vrot.lane.b32.xlu1 %v4388_v42, %s3042_s26 }
 0x3e7   : > { %1828 = vrot.lane.b32.xlu0 %v4390_v13, %s3042_s26 }
 0x40c   : > { %v4440_v37 = vpop.permute.xlu1 %1605 }
 0x40d   : > { %6488 = vst [vmem:[#allocation158_spill] sm:$0xff] %v4440_v37  ;;  %v4442_v56 = vpop.permute.xlu0 %1603 }
 0x40e   : > { %6489 = vst [vmem:[#allocation159_spill] sm:$0xff] %v4442_v56 }
 0x410   : > { %v4444_v12 = vpop.permute.xlu1 %1609 }
 0x411   : > { %6490 = vst [vmem:[#allocation160_spill] sm:$0xff] %v4444_v12  ;;  %v4446_v14 = vpop.permute.xlu0 %1607 }
 0x412   : > { %6491 = vst [vmem:[#allocation161_spill] sm:$0xff] %v4446_v14 }
 0x414   : > { %v4448_v35 = vpop.permute.xlu1 %1625 }
 0x415   : > { %6492 = vst [vmem:[#allocation162_spill] sm:$0xff] %v4448_v35  ;;  %v4450_v62 = vpop.permute.xlu0 %1623 }
 0x416   : > { %6493 = vst [vmem:[#allocation163_spill] sm:$0xff] %v4450_v62 }
 0x418   : > { %v4452_v27 = vpop.permute.xlu1 %1629 }
 0x419   : > { %6494 = vst [vmem:[#allocation164_spill] sm:$0xff] %v4452_v27  ;;  %v4454_v15 = vpop.permute.xlu0 %1627  ;;  %v1800_v27 = vld [vmem:[%s3122_s25 + $0x28] sm:$0xf] }
 0x41a   : > { %6495 = vst [vmem:[#allocation165_spill] sm:$0xff] %v4454_v15  ;;  %vm1804_vm5 = vcmp.lt.f32.partialorder %v1800_v27, 0.0 }
 0x41b   : > { %v4522_v48 = vsel %vm1804_vm5, inf, %v1800_v27 }
 0x41c   : > { %v4456_v0 = vpop.permute.xlu1 %1672 }
 0x41d   : > { %6496 = vst [vmem:[#allocation166_spill] sm:$0xff] %v4456_v0  ;;  %v4458_v4 = vpop.permute.xlu0 %1670 }
 0x41e   : > { %6497 = vst [vmem:[#allocation167_spill] sm:$0xff] %v4458_v4  ;;  %v1799_v4 = vld [vmem:[%s3122_s25 + $0x20] sm:$0xf] }
 0x41f   : > { %vm1803_vm6 = vcmp.lt.f32.partialorder %v1799_v4, 0.0 }
 0x420   : > { %v4460_v7 = vpop.permute.xlu1 %1676  ;;  %v4525_v56 = vsel %vm1803_vm6, inf, %v1799_v4 }
 0x421   : > { %6498 = vst [vmem:[#allocation168_spill] sm:$0xff] %v4460_v7  ;;  %v4462_v2 = vpop.permute.xlu0 %1674 }
 0x422   : > { %6499 = vst [vmem:[#allocation169_spill] sm:$0xff] %v4462_v2 }
 0x424   : > { %v4464_v1 = vpop.permute.xlu1 %1693 }
 0x425   : > { %6500 = vst [vmem:[#allocation170_spill] sm:$0xff] %v4464_v1  ;;  %v4466_v33 = vpop.permute.xlu0 %1691 }
 0x426   : > { %6501 = vst [vmem:[#allocation171_spill] sm:$0xff] %v4466_v33 }
 0x428   : > { %v4468_v21 = vpop.permute.xlu1 %1697 }
 0x429   : > { %6502 = vst [vmem:[#allocation172_spill] sm:$0xff] %v4468_v21  ;;  %v4470_v47 = vpop.permute.xlu0 %1695 }
 0x42a   : > { %6503 = vst [vmem:[#allocation173_spill] sm:$0xff] %v4470_v47 }
 0x42c   : > { %v4472_v6 = vpop.permute.xlu1 %1728 }
 0x42d   : > { %6504 = vst [vmem:[#allocation174_spill] sm:$0xff] %v4472_v6  ;;  %v4474_v25 = vpop.permute.xlu0 %1726 }
 0x42e   : > { %6505 = vst [vmem:[#allocation175_spill] sm:$0xff] %v4474_v25 }
 0x430   : > { %v4476_v34 = vpop.permute.xlu1 %2360 }
 0x431   : > { %v4478_v32 = vpop.permute.xlu0 %2358 }
 0x434   : > { %v4480_v5 = vpop.permute.xlu1 %2364 }
 0x435   : > { %v4482_v8 = vpop.permute.xlu0 %2362 }
 0x438   : > { %v4484_v11 = vpop.permute.xlu1 %2368 }
 0x439   : > { %v4486_v59 = vpop.permute.xlu0 %2366 }
 0x43c   : > { %v4488_v21 = vpop.permute.xlu1 %1732 }
 0x43d   : > { %6506 = vst [vmem:[#allocation176_spill] sm:$0xff] %v4488_v21  ;;  %v4490_v47 = vpop.permute.xlu0 %1730 }
 0x43e   : > { %6507 = vst [vmem:[#allocation177_spill] sm:$0xff] %v4490_v47  ;;  %v4510_v47 = vsel %vm1802_vm3, inf, %v1798_v17 }
 0x440   : > { %v4492_v6 = vpop.permute.xlu1 %1749 }
 0x441   : > { %6508 = vst [vmem:[#allocation178_spill] sm:$0xff] %v4492_v6  ;;  %v4494_v25 = vpop.permute.xlu0 %1747 }
 0x442   : > { %6509 = vst [vmem:[#allocation179_spill] sm:$0xff] %v4494_v25 }
 0x444   : > { %v4496_v2 = vpop.permute.xlu1 %1753 }
 0x445   : > { %6510 = vst [vmem:[#allocation180_spill] sm:$0xff] %v4496_v2  ;;  %v4498_v7 = vpop.permute.xlu0 %1751 }
 0x446   : > { %6511 = vst [vmem:[#allocation181_spill] sm:$0xff] %v4498_v7  ;;  %v4513_v7 = vsel %vm1801_vm4, inf, %v1797_v24 }
 0x448   : > { %v4500_v33 = vpop.permute.xlu1 %1771 }
 0x449   : > { %6512 = vst [vmem:[#allocation182_spill] sm:$0xff] %v4500_v33  ;;  %v4502_v1 = vpop.permute.xlu0 %1769 }
 0x44a   : > { %6513 = vst [vmem:[#allocation183_spill] sm:$0xff] %v4502_v1 }
 0x44c   : > { %v4506_v15 = vpop.permute.xlu1 %1775 }
 0x44d   : > { %6514 = vst [vmem:[#allocation184_spill] sm:$0xff] %v4506_v15  ;;  %v4508_v21 = vpop.permute.xlu0 %1773 }
 0x44e   : > { %6515 = vst [vmem:[#allocation185_spill] sm:$0xff] %v4508_v21 }
 0x450   : > { %v1823_v25 = vpop.permute.xlu1 %1822 }
 0x451   : > { %v1842_v2 = vsub.f32 %v4510_v47, %v1823_v25  ;;  %v1821_v6 = vpop.permute.xlu0 %1820 }
 0x452   : > { %v1832_v33 = vsel %vm245_vm9, %v1821_v6, %v1823_v25 }
 0x453   : > { %v1841_v1 = vsub.f32 %v4513_v7, %v1832_v33  ;;  %v1848_v15 = vand.u32 2147483647, %v1842_v2 }
 0x454   : > { %v1827_v0 = vpop.permute.xlu1 %1826 }
 0x455   : > { %v1844_v21 = vsub.f32 %v3177_v23, %v1827_v0  ;;  %v1825_v14 = vpop.permute.xlu0 %1824  ;;  %v1847_v17 = vand.u32 2147483647, %v1841_v1  ;;  %v1862_v25 = vrot.slane %v1848_v15, 2 }
 0x456   : > { %v1833_v12 = vsel %vm245_vm9, %v1825_v14, %v1827_v0 }
 0x457   : > { %v1850_v16 = vand.u32 2147483647, %v1844_v21  ;;  %v1843_v24 = vsub.f32 %v3174_v22, %v1833_v12  ;;  %v1859_v37 = vrot.slane %v1847_v17, 2 }
 0x458   : > { %v1831_v6 = vpop.permute.xlu1 %1830 }
 0x459   : > { %v1863_v62 = vrot.slane %v1850_v16, 2  ;;  %v1849_v33 = vand.u32 2147483647, %v1843_v24  ;;  %v1846_v35 = vsub.f32 %v4522_v48, %v1831_v6  ;;  %v1829_v2 = vpop.permute.xlu0 %1828 }
 0x45a   : > { %v1834_v1 = vsel %vm245_vm9, %v1829_v2, %v1831_v6 }
 0x45b   : > { %v1864_v14 = vsel %vm390_vm1, %v1862_v25, %v1863_v62  ;;  %v1860_v0 = vrot.slane %v1849_v33, 2  ;;  %v4529_v21 = vand.u32 2147483647, %v1846_v35  ;;  %v1845_v12 = vsub.f32 %v4525_v56, %v1834_v1 }
 0x45c   : > { %v4534_v27 = vsel %vm3252_vm11, %v1864_v14, 0.0  ;;  %v2092_v25 = vsub.f32 %v3174_v22, %v4381_v63  ;;  %v2090_v33 = vsub.f32 %v4513_v7, %v4368_v18 }
 0x45d   : > { %v1861_v16 = vsel %vm390_vm1, %v1859_v37, %v1860_v0  ;;  %v6307_v15 = vrot.slane %v4529_v21, 2  ;;  %v4538_v4 = vand.u32 2147483647, %v1845_v12  ;;  %v4541_v17 = vmul.f32 0.8761586, %v4534_v27 }
 0x45e   : > { %v1875_v24 = vsel %vm3260_vm12, %v1861_v16, 0.0  ;;  %v2098_v14 = vand.u32 2147483647, %v2092_v25  ;;  %v2094_v12 = vsub.f32 %v4525_v56, %v4390_v13  ;;  %v2096_v16 = vand.u32 2147483647, %v2090_v33 }
 0x45f   : > { %v1868_v35 = vsel %vm390_vm1, %v1863_v62, %v6307_v15  ;;  %v6306_v6 = vrot.slane %v4538_v4, 2  ;;  %1895 = vrot.lane.b32.xlu1 %v4541_v17, %s3042_s26  ;;  %v4551_v37 = vmul.f32 0.8761586, %v1875_v24  ;;  %v4588_v25 = vmul.f32 0.9248864, %v1875_v24 }
 0x460   : > { %v4559_v2 = vsel %vm193_vm8, %v1868_v35, 0.0  ;;  %v4582_v35 = vmul.f32 0.9248864, %v4534_v27  ;;  %v2108_v13 = vrot.slane %v2096_v16, 2  ;;  %v2100_v15 = vand.u32 2147483647, %v2094_v12 }
 0x461   : > { %v1866_v62 = vsel %vm390_vm1, %v1860_v0, %v6306_v6  ;;  %1893 = vrot.lane.b32.xlu0 %v4551_v37, %s3042_s26  ;;  %v4567_v1 = vmul.f32 0.8761586, %v4559_v2  ;;  %v2093_v0 = vsub.f32 %v3177_v23, %v4377_v10  ;;  %v2109_v6 = vrot.slane %v2098_v14, 2 }
 0x462   : > { %v1877_v63 = vsel %vm184_vm10, %v1866_v62, 0.0  ;;  %v2091_v62 = vsub.f32 %v4510_v47, %v4364_v19  ;;  %v4595_v43 = vmul.f32 0.9248864, %v4559_v2  ;;  %v2095_v19 = vsub.f32 %v4522_v48, %v4388_v42 }
 0x463   : > { %1899 = vrot.lane.b32.xlu1 %v4567_v1, %s3042_s26  ;;  %v4573_v18 = vmul.f32 0.8761586, %v1877_v63  ;;  %v4590_v33 = vmul.f32 0.79582006, %v1877_v63  ;;  %v2099_v10 = vand.u32 2147483647, %v2093_v0  ;;  %v2110_v16 = vsel %vm390_vm1, %v2108_v13, %v2109_v6 }
 0x464   : > { %v2097_v46 = vand.u32 2147483647, %v2091_v62  ;;  %v1938_v61 = vmul.f32 0.79582006, %v1875_v24  ;;  %v4601_v14 = vmul.f32 0.9248864, %v1877_v63  ;;  %v2381_v62 = vsub.f32 %v3174_v22, %v4482_v8 }
 0x465   : > { %1897 = vrot.lane.b32.xlu0 %v4573_v18, %s3042_s26  ;;  %v1951_v12 = vrot.slane %v4590_v33, 1  ;;  %v2114_v0 = vrot.slane %v2100_v15, 2  ;;  %v2112_v57 = vrot.slane %v2099_v10, 2  ;;  %v2101_v42 = vand.u32 2147483647, %v2095_v19 }
 0x466   : > { %v2111_v29 = vrot.slane %v2097_v46, 2  ;;  %v1950_v24 = vrot.slane %v1938_v61, 1  ;;  %v2379_v63 = vsub.f32 %v4513_v7, %v4478_v32  ;;  %v2371_v10 = vsel %vm714_vm2, %v4482_v8, %v4480_v5 }
 0x467   : > { %1915 = vrot.lane.b32.xlu1 %v4582_v35, %s3044_s3  ;;  %v2115_v15 = vsel %vm390_vm1, %v2109_v6, %v2114_v0  ;;  %v2387_v22 = vand.u32 2147483647, %v2381_v62  ;;  %v2383_v46 = vsub.f32 %v4525_v56, %v4486_v59  ;;  %v2116_v61 = vrot.slane %v2101_v42, 2 }
 0x468   : > { %v1952_v13 = vsel %vm222_vm0, %v1950_v24, %v1951_v12  ;;  %v2113_v19 = vsel %vm390_vm1, %v2111_v29, %v2112_v57  ;;  %v2370_v7 = vsel %vm714_vm2, %v4478_v32, %v4476_v34  ;;  %v2385_v6 = vand.u32 2147483647, %v2379_v63 }
 0x469   : > { %1913 = vrot.lane.b32.xlu0 %v4588_v25, %s3044_s3  ;;  %v2372_v8 = vsel %vm714_vm2, %v4486_v59, %v4484_v11  ;;  %v2398_v5 = vrot.slane %v2387_v22, 2  ;;  %v2389_v56 = vand.u32 2147483647, %v2383_v46  ;;  %v2380_v62 = vsub.f32 %v4510_v47, %v2370_v7 }
 0x46a   : > { %v2117_v29 = vsel %vm390_vm1, %v2112_v57, %v2116_v61  ;;  %v2397_v34 = vrot.slane %v2385_v6, 2  ;;  %v2384_v42 = vsub.f32 %v4522_v48, %v2372_v8  ;;  %v1939_v22 = vmul.f32 0.79582006, %v4534_v27 }
 0x46b   : > { %1919 = vrot.lane.b32.xlu1 %v4595_v43, %s3044_s3  ;;  %v2386_v24 = vand.u32 2147483647, %v2380_v62  ;;  %v6517_v46 = vrot.slane %v4538_v4, 2 }
 0x46c   : > { %v2399_v59 = vsel %vm390_vm1, %v2397_v34, %v2398_v5  ;;  %v2390_v63 = vand.u32 2147483647, %v2384_v42  ;;  %v1953_v6 = vrot.slane %v1939_v22, 1  ;;  %v1976_v34 = vrot.slane %v4541_v17, 1 }
 0x46d   : > { %1917 = vrot.lane.b32.xlu0 %v4601_v14, %s3044_s3  ;;  %v2400_v47 = vrot.slane %v2386_v24, 2 }
 0x46f   : > { %2118 = vrot.lane.b32.xlu1 %v2110_v16, %s3042_s26  ;;  %v2382_v16 = vsub.f32 %v3177_v23, %v2371_v10  ;;  %v2403_v23 = vrot.slane %v2389_v56, 2  ;;  %v1977_v56 = vrot.slane %v4567_v1, 1 }
 0x471   : > { %1960 = vrot.lane.b32.xlu0 %v1952_v13, %s3042_s26  ;;  %v2388_v32 = vand.u32 2147483647, %v2382_v16  ;;  %v2404_v57 = vsel %vm390_vm1, %v2398_v5, %v2403_v23  ;;  %v6516_v13 = vrot.slane %v4529_v21, 2  ;;  %v1978_v42 = vsel %vm222_vm0, %v1976_v34, %v1977_v56 }
 0x473   : > { %2122 = vrot.lane.b32.xlu1 %v2115_v15, %s3042_s26  ;;  %v2401_v11 = vrot.slane %v2388_v32, 2  ;;  %v1880_v48 = vsel %vm3352_vm14, %v6516_v13, 0.0  ;;  %v2405_v15 = vrot.slane %v2390_v63, 2  ;;  %v1930_v32 = vrot.slane %v4573_v18, 1 }
 0x474   : > { %v1974_v8 = vmul.f32 0.8761586, %v1880_v48  ;;  %v2006_v13 = vrot.slane %v4551_v37, 2  ;;  %v2030_v22 = vmul.f32 0.9248864, %v1880_v48 }
 0x475   : > { %2120 = vrot.lane.b32.xlu0 %v2113_v19, %s3042_s26  ;;  %v2402_v10 = vsel %vm390_vm1, %v2400_v47, %v2401_v11  ;;  %v2406_v7 = vsel %vm390_vm1, %v2401_v11, %v2405_v15  ;;  %v2009_v47 = vrot.slane %v4541_v17, 2 }
 0x476   : > { %v1979_v24 = vrot.slane %v1974_v8, 1 }
 0x477   : > { %2126 = vrot.lane.b32.xlu1 %v2114_v0, %s3042_s26  ;;  %v1941_v0 = vmul.f32 0.79582006, %v4559_v2  ;;  %v1943_v2 = vmul.f32 0.79582006, %v1880_v48  ;;  %v1997_v48 = vrot.slane %v4588_v25, 2 }
 0x478   : > { %v1980_v33 = vsel %vm222_vm0, %v1977_v56, %v1979_v24  ;;  %v315_v56 = vsel %vm313_vm7, %v3561_v53, %v3559_v41  ;;  %v6519_v41 = vld [vmem:[#allocation22_spill] sm:$0xff] }
 0x479   : > { %2124 = vrot.lane.b32.xlu0 %v2117_v29, %s3042_s26  ;;  %v1954_v19 = vrot.slane %v1941_v0, 1  ;;  %v1958_v16 = vrot.slane %v1943_v2, 1 }
 0x47b   : > { %2407 = vrot.lane.b32.xlu1 %v2399_v59, %s3044_s3  ;;  %v1955_v27 = vsel %vm222_vm0, %v1953_v6, %v1954_v19  ;;  %v1959_v5 = vsel %vm222_vm0, %v1954_v19, %v1958_v16  ;;  %v1998_v19 = vrot.slane %v4601_v14, 2  ;;  %v293_v16 = vsel %vm245_vm9, %v3537_v31, %v3535_v30 }
 0x47c   : > { %v544_v31 = vsel %vm313_vm7, %v3573_v54, %v3571_v26  ;;  %v6522_v26 = vld [vmem:[#allocation23_spill] sm:$0xff]  ;;  %v6523_v54 = vld [vmem:[#allocation24_spill] sm:$0xff] }
 0x47d   : > { %2128 = vrot.lane.b32.xlu0 %v2116_v61, %s3042_s26  ;;  %v1879_v61 = vsel %vm3361_vm15, %v6517_v46, 0.0 }
 0x47e   : > { %v1942_v21 = vmul.f32 0.79582006, %v1879_v61  ;;  %v1927_v62 = vmul.f32 0.8761586, %v1879_v61  ;;  %v1995_v46 = vmul.f32 0.9248864, %v1879_v61 }
 0x47f   : > { %2411 = vrot.lane.b32.xlu1 %v2404_v57, %s3044_s3  ;;  %v2007_v57 = vrot.slane %v4573_v18, 2  ;;  %v2033_v18 = vrot.slane %v4595_v43, 2  ;;  %v4703_v43 = vsel %vm390_vm1, %v1997_v48, %v1998_v19  ;;  %v6537_v48 = vld [vmem:[#allocation11_spill] sm:$0xff] }
 0x480   : > { %v1956_v4 = vrot.slane %v1942_v21, 1  ;;  %v1932_v11 = vrot.slane %v1927_v62, 1  ;;  %v2035_v21 = vrot.slane %v2030_v22, 2  ;;  %v2000_v6 = vrot.slane %v1995_v46, 2  ;;  %v6534_v46 = vld [vmem:[#allocation32_spill] sm:$0xff] }
 0x481   : > { %2409 = vrot.lane.b32.xlu0 %v2402_v10, %s3044_s3  ;;  %v2012_v10 = vrot.slane %v1927_v62, 2  ;;  %v524_v62 = vsel %vm245_vm9, %v3565_v9, %v3563_v45  ;;  %v6520_v45 = vld [vmem:[#allocation27_spill] sm:$0xff]  ;;  %v6521_v9 = vld [vmem:[#allocation28_spill] sm:$0xff] }
 0x482   : > { %v1957_v29 = vsel %vm222_vm0, %v1951_v12, %v1956_v4  ;;  %v2010_v12 = vrot.slane %v4567_v1, 2  ;;  %v4681_v63 = vsel %vm222_vm0, %v1930_v32, %v1932_v11  ;;  %v2008_v1 = vsel %vm390_vm1, %v2006_v13, %v2007_v57 }
 0x483   : > { %2415 = vrot.lane.b32.xlu1 %v2403_v23, %s3044_s3  ;;  %v1929_v23 = vrot.slane %v4551_v37, 1  ;;  %v2013_v2 = vsel %vm390_vm1, %v2007_v57, %v2012_v10  ;;  %v2032_v37 = vrot.slane %v4582_v35, 2  ;;  %v2036_v35 = vsel %vm390_vm1, %v2033_v18, %v2035_v21  ;;  %v6530_v57 = vld [vmem:[#allocation39_spill] sm:$0xff] }
 0x484   : > { %v2011_v0 = vsel %vm390_vm1, %v2009_v47, %v2010_v12  ;;  %v4710_v61 = vsel %vm390_vm1, %v1998_v19, %v2000_v6  ;;  %v297_v4 = vadd.f32 %v293_v16, %v3291_v20  ;;  %v361_v20 = vsel %vm245_vm9, %v3581_v60, %v3579_v51  ;;  %v6524_v51 = vld [vmem:[#allocation25_spill] sm:$0xff]  ;;  %v6525_v60 = vld [vmem:[#allocation26_spill] sm:$0xff]  ;;  %v6532_v10 = vld [vmem:[#allocation15_spill] sm:$0xff] }
 0x485   : > { %2413 = vrot.lane.b32.xlu0 %v2406_v7, %s3044_s3  ;;  %v4673_v59 = vsel %vm222_vm0, %v1929_v23, %v1930_v32  ;;  %v2034_v7 = vsel %vm390_vm1, %v2032_v37, %v2033_v18  ;;  %v545_v32 = vsel %vm313_vm7, %v6523_v54, %v6522_v26  ;;  %v6527_v23 = vld [vmem:[#allocation10_spill] sm:$0xff]  ;;  %v6533_v18 = vld [vmem:[#allocation31_spill] sm:$0xff]  ;;  %v6536_v19 = vld [vmem:[#allocation44_spill] sm:$0xff] }
 0x486   : > { %v6535_v37 = vld [vmem:[#allocation43_spill] sm:$0xff]  ;;  %v6551_v26 = vld [vmem:[#allocation12_spill] sm:$0xff] }
 0x487   : > { %1962 = vrot.lane.b32.xlu1 %v1955_v27, %s3042_s26  ;;  %v314_v27 = vsel %vm313_vm7, %v3553_v40, %v3551_v39  ;;  %v6518_v40 = vld [vmem:[#allocation21_spill] sm:$0xff]  ;;  %v612_v21 = vsel %vm313_vm7, %v6536_v19, %v6535_v37  ;;  %v6538_v16 = vld [vmem:[#allocation91_spill] sm:$0xff]  ;;  %v6565_v19 = vld [vmem:[#allocation52_spill] sm:$0xff] }
 0x488   : > { %v525_v53 = vsel %vm245_vm9, %v6519_v41, %v6518_v40  ;;  %v6546_v40 = vld [vmem:[#allocation90_spill] sm:$0xff]  ;;  %v6564_v37 = vld [vmem:[#allocation51_spill] sm:$0xff] }
 0x489   : > { %2417 = vrot.lane.b32.xlu0 %v2405_v15, %s3044_s3  ;;  %v2014_v15 = vrot.slane %v1974_v8, 2  ;;  %v294_v8 = vsel %vm245_vm9, %v3545_v50, %v3543_v38  ;;  %v528_v50 = vadd.f32 %v524_v62, %v3357_v52  ;;  %v362_v52 = vsel %vm245_vm9, %v6525_v60, %v6524_v51  ;;  %v6543_v62 = vld [vmem:[#allocation63_spill] sm:$0xff]  ;;  %v6552_v60 = vld [vmem:[#allocation92_spill] sm:$0xff] }
 0x48a   : > { %v298_v30 = vadd.f32 %v294_v8, %v3307_v28  ;;  %v382_v28 = vsel %vm313_vm7, %v6521_v9, %v6520_v45  ;;  %v6540_v8 = vld [vmem:[#allocation36_spill] sm:$0xff]  ;;  %v6549_v9 = vld [vmem:[#allocation45_spill] sm:$0xff] }
 0x48b   : > { %1966 = vrot.lane.b32.xlu1 %v1959_v5, %s3042_s26  ;;  %v2015_v17 = vsel %vm390_vm1, %v2010_v12, %v2014_v15  ;;  %v318_v5 = vadd.f32 %v314_v27, %v297_v4  ;;  %v6529_v12 = vld [vmem:[#allocation30_spill] sm:$0xff]  ;;  %v809_v27 = vsel %vm313_vm7, %v6538_v16, %v4007_v49  ;;  %v6539_v4 = vld [vmem:[#allocation35_spill] sm:$0xff]  ;;  %v6568_v16 = vld [vmem:[#allocation65_spill] sm:$0xff] }
 0x48c   : > { %v319_v38 = vadd.f32 %v315_v56, %v298_v30  ;;  %v6548_v49 = vld [vmem:[#allocation34_spill] sm:$0xff] }
 0x48d   : > { %1964 = vrot.lane.b32.xlu0 %v1957_v29, %s3042_s26  ;;  %v329_v39 = vadd.f32 %v3398_v58, %v318_v5  ;;  %v548_v29 = vadd.f32 %v544_v31, %v528_v50  ;;  %v6542_v5 = vld [vmem:[#allocation42_spill] sm:$0xff] }
 0x48e   : > { %v330_v24 = vadd.f32 %v6527_v23, %v319_v38  ;;  %v6555_v23 = vld [vmem:[#allocation14_spill] sm:$0xff] }
 0x48f   : > { %1983 = vrot.lane.b32.xlu1 %v1978_v42, %s3044_s3  ;;  %v365_v34 = vadd.f32 %v361_v20, %v329_v39  ;;  %v6526_v42 = vld [vmem:[#allocation9_spill] sm:$0xff]  ;;  %v559_v22 = vadd.f32 %v6532_v10, %v548_v29  ;;  %v6544_v20 = vld [vmem:[#allocation18_spill] sm:$0xff] }
 0x490   : > { %v529_v58 = vadd.f32 %v525_v53, %v6526_v42  ;;  %v6545_v39 = vld [vmem:[#allocation89_spill] sm:$0xff] }
 0x491   : > { %1981 = vrot.lane.b32.xlu0 %v4673_v59, %s3044_s3  ;;  %v386_v11 = vadd.f32 %v382_v28, %v365_v34  ;;  %v790_v41 = vsel %vm245_vm9, %v6546_v40, %v6545_v39  ;;  %v6547_v53 = vld [vmem:[#allocation33_spill] sm:$0xff]  ;;  %v6550_v28 = vld [vmem:[#allocation46_spill] sm:$0xff]  ;;  %v6576_v39 = vld [vmem:[#allocation76_spill] sm:$0xff] }
 0x492   : > { %v549_v15 = vadd.f32 %v545_v32, %v529_v58  ;;  %v419_v45 = vsel %vm245_vm9, %v6548_v49, %v6547_v53  ;;  %v613_v29 = vsel %vm313_vm7, %v6550_v28, %v6549_v9  ;;  %v6554_v58 = vld [vmem:[#allocation13_spill] sm:$0xff]  ;;  %v6577_v53 = vld [vmem:[#allocation20_spill] sm:$0xff]  ;;  %v6578_v9 = vld [vmem:[#allocation59_spill] sm:$0xff] }
 0x493   : > { %1987 = vrot.lane.b32.xlu1 %v1980_v33, %s3044_s3  ;;  %v6528_v33 = vld [vmem:[#allocation29_spill] sm:$0xff]  ;;  %v398_v6 = vadd.f32 %v6537_v48, %v386_v11  ;;  %v6567_v48 = vld [vmem:[#allocation72_spill] sm:$0xff] }
 0x494   : > { %v383_v47 = vsel %vm313_vm7, %v6529_v12, %v6528_v33  ;;  %v560_v38 = vadd.f32 %v6544_v20, %v549_v15  ;;  %v6556_v11 = vld [vmem:[#allocation37_spill] sm:$0xff]  ;;  %v6557_v33 = vld [vmem:[#allocation38_spill] sm:$0xff] }
 0x495   : > { %1985 = vrot.lane.b32.xlu0 %v4681_v63, %s3044_s3  ;;  %v440_v12 = vsel %vm313_vm7, %v6557_v33, %v6556_v11  ;;  %v6574_v20 = vld [vmem:[#allocation74_spill] sm:$0xff] }
 0x497   : > { %2018 = vrot.lane.b32.xlu1 %v2011_v0, %s3042_s26  ;;  %v6531_v0 = vld [vmem:[#allocation40_spill] sm:$0xff] }
 0x498   : > { %v591_v13 = vsel %vm245_vm9, %v6531_v0, %v6530_v57  ;;  %v6559_v57 = vld [vmem:[#allocation48_spill] sm:$0xff] }
 0x499   : > { %2016 = vrot.lane.b32.xlu0 %v2008_v1, %s3042_s26  ;;  %v366_v1 = vadd.f32 %v362_v52, %v330_v24  ;;  %v6553_v52 = vld [vmem:[#allocation93_spill] sm:$0xff]  ;;  %v4797_v24 = vsel %vm245_vm9, %v6555_v23, %v6554_v58  ;;  %v6585_v23 = vld [vmem:[#allocation66_spill] sm:$0xff] }
 0x49a   : > { %v810_v42 = vsel %vm313_vm7, %v6553_v52, %v6552_v60  ;;  %v6583_v52 = vld [vmem:[#allocation77_spill] sm:$0xff] }
 0x49b   : > { %2022 = vrot.lane.b32.xlu1 %v2015_v17, %s3042_s26  ;;  %v789_v17 = vsel %vm245_vm9, %v4001_v36, %v3999_v3  ;;  %v439_v36 = vsel %vm313_vm7, %v6540_v8, %v6539_v4  ;;  %v6541_v3 = vld [vmem:[#allocation41_spill] sm:$0xff] }
 0x49c   : > { %v592_v56 = vsel %vm245_vm9, %v6542_v5, %v6541_v3  ;;  %v793_v30 = vadd.f32 %v789_v17, %v6543_v62  ;;  %v6570_v3 = vld [vmem:[#allocation99_spill] sm:$0xff]  ;;  %v6572_v62 = vld [vmem:[#allocation50_spill] sm:$0xff] }
 0x49d   : > { %2020 = vrot.lane.b32.xlu0 %v2013_v2, %s3042_s26  ;;  %v418_v2 = vsel %vm245_vm9, %v6534_v46, %v6533_v18  ;;  %v596_v51 = vadd.f32 %v592_v56, %v560_v38  ;;  %v6562_v18 = vld [vmem:[#allocation94_spill] sm:$0xff]  ;;  %v6563_v46 = vld [vmem:[#allocation95_spill] sm:$0xff]  ;;  %v6571_v56 = vld [vmem:[#allocation49_spill] sm:$0xff] }
 0x49e   : > { %v422_v31 = vadd.f32 %v418_v2, %v398_v6  ;;  %v813_v34 = vadd.f32 %v809_v27, %v793_v30  ;;  %v856_v2 = vsel %vm245_vm9, %v6563_v46, %v6562_v18  ;;  %v648_v30 = vsel %vm245_vm9, %v6572_v62, %v6571_v56  ;;  %v6596_v56 = vld [vmem:[#allocation61_spill] sm:$0xff] }
 0x49f   : > { %2039 = vrot.lane.b32.xlu1 %v2034_v7, %s3044_s3  ;;  %v387_v7 = vadd.f32 %v383_v47, %v366_v1  ;;  %v6558_v47 = vld [vmem:[#allocation47_spill] sm:$0xff]  ;;  %v617_v10 = vadd.f32 %v613_v29, %v596_v51  ;;  %v6579_v29 = vld [vmem:[#allocation96_spill] sm:$0xff]  ;;  %v6582_v51 = vld [vmem:[#allocation54_spill] sm:$0xff] }
 0x4a0   : > { %v443_v32 = vadd.f32 %v439_v36, %v422_v31  ;;  %v647_v0 = vsel %vm245_vm9, %v6559_v57, %v6558_v47  ;;  %v824_v27 = vadd.f32 %v6568_v16, %v813_v34  ;;  %v6569_v36 = vld [vmem:[#allocation98_spill] sm:$0xff]  ;;  %v6573_v31 = vld [vmem:[#allocation73_spill] sm:$0xff]  ;;  %v6586_v47 = vld [vmem:[#allocation60_spill] sm:$0xff] }
 0x4a1   : > { %2037 = vrot.lane.b32.xlu0 %v4703_v43, %s3044_s3  ;;  %v399_v54 = vadd.f32 %v6551_v26, %v387_v7  ;;  %v6566_v7 = vld [vmem:[#allocation71_spill] sm:$0xff]  ;;  %v877_v5 = vsel %vm313_vm7, %v6570_v3, %v6569_v36  ;;  %v1065_v38 = vsel %vm245_vm9, %v6574_v20, %v6573_v31  ;;  %v628_v49 = vadd.f32 %v6577_v53, %v617_v10  ;;  %v6580_v34 = vld [vmem:[#allocation97_spill] sm:$0xff]  ;;  %v6589_v10 = vld [vmem:[#allocation16_spill] sm:$0xff] }
 0x4a2   : > { %v1064_v6 = vsel %vm245_vm9, %v6567_v48, %v6566_v7  ;;  %vm447_vm2 = vcmp.lt.f32.partialorder %v443_v32, inf  ;;  %v857_v26 = vsel %vm245_vm9, %v6580_v34, %v6579_v29  ;;  %v1069_v57 = vadd.f32 %v1065_v38, %v6586_v47  ;;  %v2977_v48 = vld [vmem:[%s3203_s29] sm:$0xff]  ;;  %v6594_v16 = vld [vmem:[#allocation80_spill] sm:$0xff]  ;;  %v6595_v36 = vld [vmem:[#allocation67_spill] sm:$0xff] }
 0x4a3   : > { %2043 = vrot.lane.b32.xlu1 %v2036_v35, %s3044_s3  ;;  %v595_v35 = vadd.f32 %v591_v13, %v559_v22  ;;  %v6560_v13 = vld [vmem:[#allocation64_spill] sm:$0xff]  ;;  %v423_v1 = vadd.f32 %v419_v45, %v399_v54  ;;  %v6561_v22 = vld [vmem:[#allocation19_spill] sm:$0xff]  ;;  %v1068_v28 = vadd.f32 %v1064_v6, %v6578_v9  ;;  %v6581_v54 = vld [vmem:[#allocation53_spill] sm:$0xff]  ;;  %v449_v18 = vsel %vm447_vm2, %v443_v32, inf }
 0x4a4   : > { %v794_v15 = vadd.f32 %v790_v41, %v6560_v13  ;;  %v860_v41 = vadd.f32 %v856_v2, %v824_v27  ;;  %v669_v60 = vsel %vm313_vm7, %v6582_v51, %v6581_v54  ;;  %v6587_v13 = vld [vmem:[#allocation100_spill] sm:$0xff]  ;;  %v451_v6 = vsel %vm447_vm2, %v2977_v48, 0  ;;  %v6598_v31 = vld [vmem:[#allocation107_spill] sm:$0xff]  ;;  %v6599_v38 = vld [vmem:[#allocation81_spill] sm:$0xff] }
 0x4a5   : > { %2041 = vrot.lane.b32.xlu0 %v4710_v61, %s3044_s3  ;;  %v616_v50 = vadd.f32 %v612_v21, %v595_v35  ;;  %v668_v21 = vsel %vm313_vm7, %v6565_v19, %v6564_v37  ;;  %v444_v4 = vadd.f32 %v440_v12, %v423_v1  ;;  %v652_v12 = vadd.f32 %v648_v30, %v628_v49  ;;  %v6591_v19 = vld [vmem:[#allocation102_spill] sm:$0xff]  ;;  %v6604_v34 = vld [vmem:[#allocation104_spill] sm:$0xff] }
 0x4a6   : > { %v814_v35 = vadd.f32 %v810_v42, %v794_v15  ;;  %v6584_v42 = vld [vmem:[#allocation78_spill] sm:$0xff]  ;;  %v881_v33 = vadd.f32 %v877_v5, %v860_v41  ;;  %v6588_v15 = vld [vmem:[#allocation101_spill] sm:$0xff]  ;;  %v6602_v41 = vld [vmem:[#allocation84_spill] sm:$0xff] }
 0x4a7   : > { %v627_v17 = vadd.f32 %v6561_v22, %v616_v50  ;;  %v6575_v50 = vld [vmem:[#allocation75_spill] sm:$0xff]  ;;  %v1085_v58 = vsel %vm313_vm7, %v6584_v42, %v6583_v52  ;;  %v878_v1 = vsel %vm313_vm7, %v6588_v15, %v6587_v13  ;;  %v6590_v22 = vld [vmem:[#allocation17_spill] sm:$0xff]  ;;  %vm448_vm13 = vcmp.lt.f32.partialorder %v444_v4, inf  ;;  %v6597_v30 = vld [vmem:[#allocation106_spill] sm:$0xff] }
 0x4a8   : > { %v1084_v40 = vsel %vm313_vm7, %v6576_v39, %v6575_v50  ;;  %v825_v11 = vadd.f32 %v6585_v23, %v814_v35  ;;  %v673_v2 = vadd.f32 %v669_v60, %v652_v12  ;;  %v1089_v37 = vadd.f32 %v1085_v58, %v1069_v57  ;;  %v6593_v35 = vld [vmem:[#allocation79_spill] sm:$0xff]  ;;  %v6600_v50 = vld [vmem:[#allocation82_spill] sm:$0xff]  ;;  %v6606_v60 = vld [vmem:[#allocation85_spill] sm:$0xff] }
 0x4a9   : > { %v651_v8 = vadd.f32 %v647_v0, %v627_v17  ;;  %v1088_v0 = vadd.f32 %v1084_v40, %v1068_v28  ;;  %v691_v17 = vsel %vm245_vm9, %v6590_v22, %v6589_v10  ;;  %v1131_v27 = vsel %vm245_vm9, %v6594_v16, %v6593_v35  ;;  %v6601_v40 = vld [vmem:[#allocation83_spill] sm:$0xff]  ;;  %v6603_v28 = vld [vmem:[#allocation62_spill] sm:$0xff]  ;;  %v6608_v58 = vld [vmem:[#allocation68_spill] sm:$0xff] }
 0x4aa   : > { %v861_v46 = vadd.f32 %v857_v26, %v825_v11  ;;  %v892_v3 = vadd.f32 %v6595_v36, %v881_v33  ;;  %v450_v5 = vsel %vm448_vm13, %v444_v4, inf  ;;  %v933_v20 = vsel %vm313_vm7, %v6598_v31, %v6597_v30  ;;  %v6605_v26 = vld [vmem:[#allocation105_spill] sm:$0xff]  ;;  %v6607_v52 = vld [vmem:[#allocation86_spill] sm:$0xff]  ;;  %v4881_v33 = vld [vmem:[%s3203_s29 + $0x10] sm:$0xff] }
 0x4ab   : > { %v672_v45 = vadd.f32 %v668_v21, %v651_v8  ;;  %v6592_v21 = vld [vmem:[#allocation103_spill] sm:$0xff]  ;;  %v1099_v62 = vadd.f32 %v6596_v56, %v1088_v0  ;;  %v1132_v39 = vsel %vm245_vm9, %v6600_v50, %v6599_v38  ;;  %v1152_v53 = vsel %vm313_vm7, %v6602_v41, %v6601_v40  ;;  %v6609_v0 = vld [vmem:[#allocation108_spill] sm:$0xff]  ;;  %v6610_v13 = vld [vmem:[#allocation109_spill] sm:$0xff] }
 0x4ac   : > { %v912_v7 = vsel %vm245_vm9, %v6592_v21, %v6591_v19  ;;  %v882_v8 = vadd.f32 %v878_v1, %v861_v46  ;;  %vm679_vm5 = vcmp.lt.f32.partialorder %v673_v2, inf  ;;  %v1100_v29 = vadd.f32 %v6603_v28, %v1089_v37  ;;  %v6612_v48 = vld [vmem:[#allocation88_spill] sm:$0xff]  ;;  %v6613_v36 = vld [vmem:[#allocation69_spill] sm:$0xff]  ;;  %v6614_v56 = vld [vmem:[#allocation55_spill] sm:$0xff] }
 0x4ad   : > { %vm678_vm3 = vcmp.lt.f32.partialorder %v672_v45, inf  ;;  %vm676_vm4 = vcmp.lt.f32.partialorder %v672_v45, %v449_v18  ;;  %v916_v49 = vadd.f32 %v912_v7, %v892_v3  ;;  %v1135_v9 = vadd.f32 %v1131_v27, %v1099_v62  ;;  %v6611_v7 = vld [vmem:[#allocation87_spill] sm:$0xff]  ;;  %v6619_v40 = vld [vmem:[#allocation112_spill] sm:$0xff]  ;;  %v6620_v41 = vld [vmem:[#allocation113_spill] sm:$0xff] }
 0x4ae   : > { %v694_v32 = vsel %vm678_vm3, %v672_v45, inf  ;;  %v913_v54 = vsel %vm245_vm9, %v6605_v26, %v6604_v34  ;;  %v698_v51 = vsel %vm678_vm3, %v4797_v24, 0  ;;  %v1153_v42 = vsel %vm313_vm7, %v6607_v52, %v6606_v60 }
 0x4af   : > { %v893_v23 = vadd.f32 %v6608_v58, %v882_v8  ;;  %v937_v11 = vadd.f32 %v933_v20, %v916_v49  ;;  %v452_v12 = vsel %vm448_vm13, %v4881_v33, 0  ;;  %v1136_v47 = vadd.f32 %v1132_v39, %v1100_v29  ;;  %v6621_v49 = vld [vmem:[#allocation124_spill] sm:$0xff] }
 0x4b0   : > { %v1156_v57 = vadd.f32 %v1152_v53, %v1135_v9  ;;  %v934_v15 = vsel %vm313_vm7, %v6610_v13, %v6609_v0  ;;  %v680_v1 = vsel %vm676_vm4, %v672_v45, %v449_v18  ;;  %vm677_vm6 = vcmp.lt.f32.partialorder %v673_v2, %v450_v5  ;;  %v6622_v9 = vld [vmem:[#allocation125_spill] sm:$0xff]  ;;  %v6627_v0 = vld [vmem:[#allocation116_spill] sm:$0xff] }
 0x4b1   : > { %v695_v10 = vsel %vm679_vm5, %v673_v2, inf  ;;  %v917_v22 = vadd.f32 %v913_v54, %v893_v23  ;;  %v696_v46 = vsel %vm676_vm4, %v449_v18, %v694_v32  ;;  %v1157_v37 = vadd.f32 %v1153_v42, %v1136_v47  ;;  %v6616_v18 = vld [vmem:[#allocation57_spill] sm:$0xff]  ;;  %v6618_v32 = vld [vmem:[#allocation70_spill] sm:$0xff]  ;;  %v6623_v54 = vld [vmem:[#allocation128_spill] sm:$0xff] }
 0x4b2   : > { %v692_v19 = vsel %vm676_vm4, %v4797_v24, %v451_v6  ;;  %v700_v4 = vsel %vm676_vm4, %v451_v6, %v698_v51  ;;  %v699_v21 = vsel %vm679_vm5, %v691_v17, 0  ;;  %v1187_v35 = vsel %vm245_vm9, %v6612_v48, %v6611_v7  ;;  %v6615_v24 = vld [vmem:[#allocation56_spill] sm:$0xff]  ;;  %v6617_v6 = vld [vmem:[#allocation58_spill] sm:$0xff]  ;;  %v6624_v51 = vld [vmem:[#allocation129_spill] sm:$0xff] }
 0x4b3   : > { %v4898_v16 = vadd.f32 %v934_v15, %v917_v22  ;;  %vm941_vm2 = vcmp.lt.f32.partialorder %v937_v11, %v696_v46  ;;  %v681_v27 = vsel %vm677_vm6, %v673_v2, %v450_v5  ;;  %v697_v8 = vsel %vm677_vm6, %v450_v5, %v695_v10  ;;  %v6625_v23 = vld [vmem:[#allocation110_spill] sm:$0xff] }
 0x4b4   : > { %v1167_v3 = vadd.f32 %v6613_v36, %v1156_v57  ;;  %vm939_vm13 = vcmp.lt.f32.partialorder %v937_v11, %v680_v1  ;;  %v955_v45 = vsel %vm313_vm7, %v6615_v24, %v6614_v56  ;;  %v956_v62 = vsel %vm313_vm7, %v6617_v6, %v6616_v18  ;;  %v6628_v36 = vld [vmem:[#allocation126_spill] sm:$0xff] }
 0x4b5   : > { %vm943_vm3 = vcmp.lt.f32.partialorder %v937_v11, inf  ;;  %v693_v30 = vsel %vm677_vm6, %v691_v17, %v452_v12  ;;  %v1168_v38 = vadd.f32 %v6618_v32, %v1157_v37  ;;  %v959_v50 = vsel %vm941_vm2, %v937_v11, %v696_v46  ;;  %v6630_v6 = vld [vmem:[#allocation130_spill] sm:$0xff]  ;;  %v6632_v32 = vld [vmem:[#allocation132_spill] sm:$0xff] }
 0x4b6   : > { %v1191_v20 = vadd.f32 %v1187_v35, %v1167_v3  ;;  %v701_v39 = vsel %vm677_vm6, %v452_v12, %v699_v21  ;;  %v1208_v53 = vsel %vm313_vm7, %v6620_v41, %v6619_v40  ;;  %v1322_v28 = vsel %vm245_vm9, %v6622_v9, %v6621_v49  ;;  %v6626_v12 = vld [vmem:[#allocation111_spill] sm:$0xff]  ;;  %v6636_v49 = vld [vmem:[#allocation117_spill] sm:$0xff]  ;;  %v6637_v9 = vld [vmem:[#allocation118_spill] sm:$0xff] }
 0x4b7   : > { %v4920_v29 = vsel %vm939_vm13, %v937_v11, %v680_v1  ;;  %vm942_vm4 = vcmp.lt.f32.partialorder %v4898_v16, %v697_v8  ;;  %v4924_v34 = vsel %vm939_vm13, %v955_v45, %v692_v19  ;;  %v963_v2 = vsel %vm941_vm2, %v955_v45, %v700_v4  ;;  %v6629_v3 = vld [vmem:[#allocation127_spill] sm:$0xff] }
 0x4b8   : > { %v967_v5 = vsel %vm943_vm3, %v937_v11, inf  ;;  %v1342_v60 = vsel %vm313_vm7, %v6624_v51, %v6623_v54  ;;  %v4933_v52 = vsel %vm939_vm13, %v680_v1, %v959_v50  ;;  %v971_v42 = vsel %vm943_vm3, %v955_v45, 0 }
 0x4b9   : > { %vm940_vm5 = vcmp.lt.f32.partialorder %v4898_v16, %v681_v27  ;;  %v1188_v47 = vsel %vm245_vm9, %v6626_v12, %v6625_v23  ;;  %v4940_v57 = vadd.f32 %v1208_v53, %v1191_v20  ;;  %v1326_v13 = vadd.f32 %v1322_v28, %v6627_v0 }
 0x4ba   : > { %v960_v15 = vsel %vm942_vm4, %v4898_v16, %v697_v8  ;;  %v4947_v10 = vsel %vm939_vm13, %v692_v19, %v963_v2  ;;  %v969_v22 = vsel %vm941_vm2, %v696_v46, %v967_v5  ;;  %vm944_vm6 = vcmp.lt.f32.partialorder %v4898_v16, inf  ;;  %v6638_v2 = vld [vmem:[#allocation136_spill] sm:$0xff]  ;;  %v6639_v5 = vld [vmem:[#allocation137_spill] sm:$0xff] }
 0x4bb   : > { %v964_v37 = vsel %vm942_vm4, %v956_v62, %v701_v39  ;;  %v1346_v7 = vadd.f32 %v1342_v60, %v1326_v13  ;;  %v973_v48 = vsel %vm941_vm2, %v700_v4, %v971_v42  ;;  %v4957_v35 = vsel %vm940_vm5, %v4898_v16, %v681_v27 }
 0x4bc   : > { %v1192_v19 = vadd.f32 %v1188_v47, %v1168_v38  ;;  %v1323_v56 = vsel %vm245_vm9, %v6629_v3, %v6628_v36  ;;  %v4965_v24 = vsel %vm940_vm5, %v956_v62, %v693_v30  ;;  %v4969_v11 = vsel %vm940_vm5, %v681_v27, %v960_v15  ;;  %v6633_v38 = vld [vmem:[#allocation133_spill] sm:$0xff]  ;;  %v6634_v27 = vld [vmem:[#allocation114_spill] sm:$0xff]  ;;  %v6644_v3 = vld [vmem:[#allocation135_spill] sm:$0xff] }
 0x4bd   : > { %vm1216_vm2 = vcmp.lt.f32.partialorder %v4940_v57, %v4920_v29  ;;  %v4975_v4 = vsel %vm940_vm5, %v693_v30, %v964_v37  ;;  %v968_v45 = vsel %vm944_vm6, %v4898_v16, inf  ;;  %v972_v18 = vsel %vm944_vm6, %v956_v62, 0  ;;  %v6635_v30 = vld [vmem:[#allocation115_spill] sm:$0xff]  ;;  %v6641_v37 = vld [vmem:[#allocation158_spill] sm:$0xff] }
 0x4be   : > { %v1389_v50 = vsel %vm245_vm9, %v6633_v38, %v6632_v32  ;;  %vm1218_vm13 = vcmp.lt.f32.partialorder %v4940_v57, %v4933_v52  ;;  %v1209_v53 = vsel %vm313_vm7, %v6635_v30, %v6634_v27  ;;  %v1327_v62 = vadd.f32 %v1323_v56, %v6636_v49  ;;  %v6643_v36 = vld [vmem:[#allocation134_spill] sm:$0xff]  ;;  %v6647_v38 = vld [vmem:[#allocation163_spill] sm:$0xff]  ;;  %v6650_v30 = vld [vmem:[#allocation140_spill] sm:$0xff] }
 0x4bf   : > { %v1357_v28 = vadd.f32 %v6637_v9, %v1346_v7  ;;  %v1410_v54 = vsel %vm313_vm7, %v6639_v5, %v6638_v2  ;;  %v4998_v51 = vsel %vm942_vm4, %v697_v8, %v968_v45  ;;  %vm1220_vm3 = vcmp.lt.f32.partialorder %v4940_v57, %v969_v22  ;;  %v6640_v8 = vld [vmem:[#allocation122_spill] sm:$0xff]  ;;  %v6655_v2 = vld [vmem:[#allocation145_spill] sm:$0xff] }
 0x4c0   : > { %v1231_v23 = vsel %vm1218_vm13, %v4940_v57, %v4933_v52  ;;  %v5012_v12 = vadd.f32 %v1209_v53, %v1192_v19  ;;  %v5019_v16 = vsel %vm1216_vm2, %v4940_v57, %v4920_v29  ;;  %v5032_v15 = vsel %vm1216_vm2, %v6640_v8, %v4924_v34  ;;  %v6646_v32 = vld [vmem:[#allocation162_spill] sm:$0xff]  ;;  %v6651_v53 = vld [vmem:[#allocation141_spill] sm:$0xff] }
 0x4c1   : > { %v1390_v56 = vsel %vm245_vm9, %v6644_v3, %v6643_v36  ;;  %v1445_v49 = vsel %vm245_vm9, %v6651_v53, %v6650_v30  ;;  %v6661_v3 = vld [vmem:[#allocation166_spill] sm:$0xff] }
 0x4c2   : > { %vm1219_vm5 = vcmp.lt.f32.partialorder %v5012_v12, %v4969_v11  ;;  %vm1221_vm6 = vcmp.lt.f32.partialorder %v5012_v12, %v4998_v51 }
 0x4d1   : > { %v1896_v31 = vpop.permute.xlu1 %1895 }
 0x4d3   : > { %v1894_v17 = vpop.permute.xlu0 %1893 }
 0x4d4   : > { %v1901_v26 = vsel %vm245_vm9, %v1894_v17, %v1896_v31  ;;  %v6631_v31 = vld [vmem:[#allocation131_spill] sm:$0xff] }
 0x4d5   : > { %v1900_v58 = vpop.permute.xlu1 %1899  ;;  %v1343_v20 = vsel %vm313_vm7, %v6631_v31, %v6630_v6  ;;  %v1905_v40 = vadd.f32 %v1901_v26, %v4588_v25  ;;  %v5002_v25 = vsel %vm942_vm4, %v701_v39, %v972_v18  ;;  %v1235_v39 = vsel %vm1218_vm13, %v6640_v8, %v4947_v10  ;;  %v6645_v18 = vld [vmem:[#allocation119_spill] sm:$0xff] }
 0x4d6   : > { %v1347_v42 = vadd.f32 %v1343_v20, %v1327_v62  ;;  %v5057_v31 = vsel %vm1216_vm2, %v4924_v34, %v1235_v39  ;;  %v1243_v20 = vsel %vm1220_vm3, %v6640_v8, %v973_v48  ;;  %vm1217_vm4 = vcmp.lt.f32.partialorder %v5012_v12, %v4957_v35  ;;  %v6653_v48 = vld [vmem:[#allocation120_spill] sm:$0xff]  ;;  %v6656_v39 = vld [vmem:[#allocation123_spill] sm:$0xff] }
 0x4d7   : > { %v1898_v21 = vpop.permute.xlu0 %1897  ;;  %v5101_v8 = vsel %vm1217_vm4, %v5012_v12, %v4957_v35 }
 0x4d8   : > { %v1902_v1 = vsel %vm245_vm9, %v1898_v21, %v1900_v58  ;;  %v1393_v58 = vadd.f32 %v1389_v50, %v1357_v28  ;;  %v6642_v21 = vld [vmem:[#allocation159_spill] sm:$0xff]  ;;  %v1358_v6 = vadd.f32 %v6645_v18, %v1347_v42  ;;  %v1631_v50 = vsel %vm313_vm7, %v6647_v38, %v6646_v32  ;;  %v6664_v32 = vld [vmem:[#allocation164_spill] sm:$0xff]  ;;  %v6665_v38 = vld [vmem:[#allocation165_spill] sm:$0xff] }
 0x4d9   : > { %v1916_v46 = vpop.permute.xlu1 %1915  ;;  %v1906_v47 = vadd.f32 %v1902_v1, %v4601_v14  ;;  %v1611_v7 = vsel %vm245_vm9, %v6642_v21, %v6641_v37  ;;  %v5045_v14 = vsel %vm1216_vm2, %v4920_v29, %v1231_v23  ;;  %v1239_v1 = vsel %vm1220_vm3, %v4940_v57, %v969_v22  ;;  %v6652_v29 = vld [vmem:[#allocation152_spill] sm:$0xff]  ;;  %v6657_v57 = vld [vmem:[#allocation142_spill] sm:$0xff]  ;;  %v6660_v21 = vld [vmem:[#allocation161_spill] sm:$0xff] }
 0x4da   : > { %v1414_v13 = vadd.f32 %v1410_v54, %v1393_v58  ;;  %v1615_v34 = vadd.f32 %v1611_v7, %v6652_v29  ;;  %v1394_v22 = vadd.f32 %v1390_v56, %v1358_v6  ;;  %v5081_v28 = vsel %vm1218_vm13, %v4933_v52, %v1239_v1  ;;  %v6659_v37 = vld [vmem:[#allocation160_spill] sm:$0xff]  ;;  %v6662_v56 = vld [vmem:[#allocation167_spill] sm:$0xff] }
 0x4db   : > { %v1914_v41 = vpop.permute.xlu0 %1913  ;;  %v5092_v54 = vsel %vm1218_vm13, %v4947_v10, %v1243_v20  ;;  %v5108_v52 = vsel %vm1217_vm4, %v6656_v39, %v4965_v24  ;;  %v6658_v10 = vld [vmem:[#allocation143_spill] sm:$0xff]  ;;  %v1612_v7 = vsel %vm245_vm9, %v6660_v21, %v6659_v37  ;;  %v1678_v1 = vsel %vm245_vm9, %v6662_v56, %v6661_v3 }
 0x4dc   : > { %v1921_v17 = vsel %vm313_vm7, %v1914_v41, %v1916_v46  ;;  %v6649_v41 = vld [vmem:[#allocation139_spill] sm:$0xff]  ;;  %v1425_v9 = vadd.f32 %v6653_v48, %v1414_v13  ;;  %v1236_v13 = vsel %vm1219_vm5, %v6656_v39, %v4975_v4  ;;  %v6670_v48 = vld [vmem:[#allocation170_spill] sm:$0xff] }
 0x4dd   : > { %v5004_v26 = vadd.f32 %v1921_v17, %v1905_v40  ;;  %v1920_v60 = vpop.permute.xlu1 %1919  ;;  %v6648_v40 = vld [vmem:[#allocation138_spill] sm:$0xff]  ;;  %v6654_v17 = vld [vmem:[#allocation144_spill] sm:$0xff] }
 0x4de   : > { %v1411_v27 = vsel %vm313_vm7, %v6649_v41, %v6648_v40  ;;  %v1466_v5 = vsel %vm313_vm7, %v6655_v2, %v6654_v17  ;;  %v1449_v23 = vadd.f32 %v1445_v49, %v1425_v9  ;;  %v6666_v40 = vld [vmem:[#allocation154_spill] sm:$0xff]  ;;  %v6671_v9 = vld [vmem:[#allocation171_spill] sm:$0xff] }
 0x4df   : > { %v1918_v0 = vpop.permute.xlu0 %1917  ;;  %v1415_v58 = vadd.f32 %v1411_v27, %v1394_v22  ;;  %v1699_v17 = vsel %vm313_vm7, %v6671_v9, %v6670_v48  ;;  %v6683_v48 = vld [vmem:[#allocation173_spill] sm:$0xff]  ;;  %v6696_v27 = vld [vmem:[#allocation180_spill] sm:$0xff] }
 0x4e0   : > { %v1922_v19 = vsel %vm313_vm7, %v1918_v0, %v1920_v60  ;;  %v1635_v60 = vadd.f32 %v1631_v50, %v1615_v34  ;;  %v1232_v0 = vsel %vm1219_vm5, %v5012_v12, %v4969_v11  ;;  %v5126_v36 = vadd.f32 %v1466_v5, %v1449_v23  ;;  %v6669_v34 = vld [vmem:[#allocation153_spill] sm:$0xff]  ;;  %v6673_v5 = vld [vmem:[#allocation146_spill] sm:$0xff] }
 0x4e1   : > { %v5050_v46 = vadd.f32 %v1922_v19, %v1906_v47  ;;  %v2119_v45 = vpop.permute.xlu1 %2118  ;;  %v1446_v47 = vsel %vm245_vm9, %v6658_v10, %v6657_v57  ;;  %v1632_v50 = vsel %vm313_vm7, %v6665_v38, %v6664_v32  ;;  %v1616_v22 = vadd.f32 %v1612_v7, %v6669_v34 }
 0x4e2   : > { %v1646_v41 = vadd.f32 %v6666_v40, %v1635_v60  ;;  %v6674_v60 = vld [vmem:[#allocation147_spill] sm:$0xff]  ;;  %v1240_v57 = vsel %vm1221_vm6, %v5012_v12, %v4998_v51  ;;  %vm1476_vm2 = vcmp.lt.f32.partialorder %v5126_v36, %v5045_v14  ;;  %vm1478_vm13 = vcmp.lt.f32.partialorder %v5126_v36, %v5081_v28  ;;  %v6677_v40 = vld [vmem:[#allocation168_spill] sm:$0xff]  ;;  %v6680_v12 = vld [vmem:[#allocation174_spill] sm:$0xff] }
 0x4e3   : > { %v5074_v62 = vpop.permute.xlu0 %1960  ;;  %v1467_v23 = vsel %vm313_vm7, %v6674_v60, %v6673_v5  ;;  %v1636_v7 = vadd.f32 %v1632_v50, %v1616_v22  ;;  %v5205_v38 = vsel %vm1217_vm4, %v4965_v24, %v1236_v13  ;;  %v1242_v50 = vsel %vm1219_vm5, %v4969_v11, %v1240_v57  ;;  %v6679_v11 = vld [vmem:[#allocation155_spill] sm:$0xff]  ;;  %v6682_v22 = vld [vmem:[#allocation172_spill] sm:$0xff] }
 0x4e4   : > { %v1682_v10 = vadd.f32 %v1678_v1, %v1646_v41  ;;  %v6678_v41 = vld [vmem:[#allocation169_spill] sm:$0xff]  ;;  %vm1474_vm3 = vcmp.lt.f32.partialorder %v5126_v36, %v5019_v16  ;;  %v1499_v24 = vsel %vm1476_vm2, %v5126_v36, %v5045_v14  ;;  %v6681_v13 = vld [vmem:[#allocation175_spill] sm:$0xff]  ;;  %v1507_v34 = vsel %vm1478_vm13, %v5126_v36, %v5081_v28 }
 0x4e5   : > { %v2123_v42 = vpop.permute.xlu1 %2122  ;;  %v1700_v9 = vsel %vm313_vm7, %v6683_v48, %v6682_v22 }
 0x4e6   : > { %v1703_v51 = vadd.f32 %v1699_v17, %v1682_v10  ;;  %v6684_v17 = vld [vmem:[#allocation156_spill] sm:$0xff]  ;;  %v6687_v10 = vld [vmem:[#allocation179_spill] sm:$0xff] }
 0x4e7   : > { %v2121_v19 = vpop.permute.xlu0 %2120 }
 0x4e8   : > { %v2130_v18 = vsel %vm245_vm9, %v2119_v45, %v2121_v19  ;;  %v5134_v20 = vsel %vm3252_vm11, %v2121_v19, 0.0  ;;  %v6668_v45 = vld [vmem:[#allocation121_spill] sm:$0xff]  ;;  %v1714_v5 = vadd.f32 %v6684_v17, %v1703_v51 }
 0x4e9   : > { %v5142_v30 = vsel %vm3260_vm12, %v2130_v18, 0.0  ;;  %v5145_v53 = vmul.f32 0.8761586, %v5134_v20  ;;  %v5147_v49 = vpop.permute.xlu1 %2126  ;;  %v1426_v29 = vadd.f32 %v6668_v45, %v1415_v58  ;;  %v1244_v58 = vsel %vm1221_vm6, %v6656_v39, %v5002_v25 }
 0x4ea   : > { %v5155_v2 = vmul.f32 0.8761586, %v5142_v30  ;;  %v5196_v18 = vsel %vm1217_vm4, %v4957_v35, %v1232_v0  ;;  %v1246_v0 = vsel %vm1219_vm5, %v4975_v4, %v1244_v58  ;;  %v1679_v45 = vsel %vm245_vm9, %v6678_v41, %v6677_v40  ;;  %v6686_v58 = vld [vmem:[#allocation178_spill] sm:$0xff]  ;;  %v6689_v40 = vld [vmem:[#allocation148_spill] sm:$0xff]  ;;  %v6690_v41 = vld [vmem:[#allocation149_spill] sm:$0xff] }
 0x4eb   : > { %2159 = vrot.lane.b32.xlu1 %v5145_v53, %s3042_s26  ;;  %v2125_v37 = vpop.permute.xlu0 %2124  ;;  %v1450_v21 = vadd.f32 %v1446_v47, %v1426_v29  ;;  %v1647_v4 = vadd.f32 %v6679_v11, %v1636_v7  ;;  %v1734_v29 = vsel %vm245_vm9, %v6681_v13, %v6680_v12  ;;  %v5245_v60 = vmul.f32 0.9248864, %v5134_v20 }
 0x4ec   : > { %6672 = vst [vmem:[#allocation21_spill] sm:$0xff] %v5155_v2  ;;  %v2131_v19 = vsel %vm245_vm9, %v2123_v42, %v2125_v37  ;;  %v5175_v56 = vsel %vm193_vm8, %v2125_v37, 0.0  ;;  %2157 = vrot.lane.b32.xlu0 %v5155_v2, %s3042_s26  ;;  %v1755_v37 = vsel %vm313_vm7, %v6687_v10, %v6686_v58  ;;  %v1738_v7 = vadd.f32 %v1734_v29, %v1714_v5  ;;  %v6691_v58 = vld [vmem:[#allocation176_spill] sm:$0xff]  ;;  %v6692_v10 = vld [vmem:[#allocation177_spill] sm:$0xff] }
 0x4ed   : > { %v5183_v39 = vsel %vm184_vm10, %v2131_v19, 0.0  ;;  %v5186_v47 = vmul.f32 0.8761586, %v5175_v56  ;;  %v2408_v1 = vpop.permute.xlu1 %2407  ;;  %v5188_v42 = vadd.f32 %v1467_v23, %v1450_v21  ;;  %6685 = vst [vmem:[#allocation22_spill] sm:$0xff] %v5245_v60  ;;  %v1683_v57 = vadd.f32 %v1679_v45, %v1647_v4 }
 0x4ee   : > { %v5199_v32 = vmul.f32 0.8761586, %v5183_v39  ;;  %v5253_v21 = vmul.f32 0.9248864, %v5142_v30  ;;  %v5263_v19 = vsel %vm1474_vm3, %v5126_v36, %v5019_v16  ;;  %v1495_v45 = vsel %vm245_vm9, %v6690_v41, %v6689_v40  ;;  %v6693_v40 = vld [vmem:[#allocation150_spill] sm:$0xff]  ;;  %v6694_v41 = vld [vmem:[#allocation151_spill] sm:$0xff] }
 0x4ef   : > { %2163 = vrot.lane.b32.xlu1 %v5186_v47, %s3042_s26  ;;  %v5220_v35 = vpop.permute.xlu0 %2128  ;;  %vm1477_vm4 = vcmp.lt.f32.partialorder %v5188_v42, %v5196_v18  ;;  %vm1475_vm5 = vcmp.lt.f32.partialorder %v5188_v42, %v5101_v8  ;;  %vm1479_vm6 = vcmp.lt.f32.partialorder %v5188_v42, %v1242_v50  ;;  %v1704_v11 = vadd.f32 %v1700_v9, %v1683_v57 }
 0x4f0   : > { %2161 = vrot.lane.b32.xlu0 %v5199_v32, %s3042_s26  ;;  %6688 = vst [vmem:[#allocation27_spill] sm:$0xff] %v5253_v21  ;;  %v5274_v4 = vsel %vm1474_vm3, %v5019_v16, %v1499_v24  ;;  %v5280_v12 = vsel %vm1476_vm2, %v5045_v14, %v1507_v34  ;;  %v1500_v13 = vsel %vm1477_vm4, %v5188_v42, %v5196_v18  ;;  %v5292_v24 = vmul.f32 0.9248864, %v5175_v56 }
 0x4f1   : > { %v2412_v23 = vpop.permute.xlu1 %2411  ;;  %v5289_v29 = vadd.f32 %v1755_v37, %v1738_v7  ;;  %v1508_v34 = vsel %vm1479_vm6, %v5188_v42, %v1242_v50  ;;  %v5305_v9 = vsel %vm1475_vm5, %v5188_v42, %v5101_v8  ;;  %v5308_v17 = vmul.f32 0.9248864, %v5183_v39 }
 0x4f2   : > { %v1503_v57 = vsel %vm1476_vm2, %v1495_v45, %v5057_v31  ;;  %v1735_v37 = vsel %vm245_vm9, %v6692_v10, %v6691_v58  ;;  %v5423_v14 = vsel %vm1477_vm4, %v5196_v18, %v1508_v34  ;;  %v2132_v42 = vsel %vm245_vm9, %v5147_v49, %v5220_v35  ;;  %v6699_v34 = vld [vmem:[#allocation183_spill] sm:$0xff] }
 0x4f3   : > { %2179 = vrot.lane.b32.xlu1 %v5245_v60, %s3044_s3  ;;  %v2410_v51 = vpop.permute.xlu0 %2409  ;;  %v6695_v60 = vld [vmem:[#allocation157_spill] sm:$0xff]  ;;  %v1505_v25 = vsel %vm1474_vm3, %v5032_v15, %v1503_v57  ;;  %v1937_v18 = vadd.f32 %v4681_v63, %v5050_v46  ;;  %v2240_v55 = vrot.slane %v5145_v53, 1 }
 0x4f4   : > { %2177 = vrot.lane.b32.xlu0 %v5253_v21, %s3044_s3  ;;  %v2419_v22 = vsel %vm313_vm7, %v2408_v1, %v2410_v51  ;;  %v5312_v5 = vsel %vm3252_vm11, %v2410_v51, 0.0  ;;  %v5318_v1 = vsel %vm1474_vm3, %v1495_v45, %v5032_v15  ;;  %v1511_v51 = vsel %vm1478_vm13, %v1495_v45, %v5092_v54 }
 0x4f5   : > { %v5295_v48 = vpop.permute.xlu1 %2415  ;;  %v5329_v6 = vsel %vm3260_vm12, %v2419_v22, 0.0  ;;  %v1496_v21 = vsel %vm245_vm9, %v6694_v41, %v6693_v40  ;;  %v1715_v2 = vadd.f32 %v6695_v60, %v1704_v11  ;;  %v6697_v22 = vld [vmem:[#allocation181_spill] sm:$0xff]  ;;  %vm1765_vm11 = vcmp.lt.f32.partialorder %v5289_v29, %v5280_v12 }
 0x4f6   : > { %v1756_v10 = vsel %vm313_vm7, %v6697_v22, %v6696_v27  ;;  %v5350_v28 = vmul.f32 0.8761586, %v5312_v5  ;;  %v1936_v45 = vadd.f32 %v4673_v59, %v5004_v26  ;;  %v1504_v41 = vsel %vm1477_vm4, %v1496_v21, %v5205_v38 }
 0x4f7   : > { %2183 = vrot.lane.b32.xlu1 %v5292_v24, %s3044_s3  ;;  %v2414_v7 = vpop.permute.xlu0 %2413  ;;  %v1739_v60 = vadd.f32 %v1735_v37, %v1715_v2  ;;  %v1512_v27 = vsel %vm1479_vm6, %v1496_v21, %v1246_v0  ;;  %vm1763_vm12 = vcmp.lt.f32.partialorder %v5289_v29, %v5274_v4  ;;  %v1513_v50 = vsel %vm1476_vm2, %v5057_v31, %v1511_v51 }
 0x4f8   : > { %v2420_v58 = vsel %vm313_vm7, %v2412_v23, %v2414_v7  ;;  %2181 = vrot.lane.b32.xlu0 %v5308_v17, %s3044_s3  ;;  %v5355_v23 = vmul.f32 0.8761586, %v5329_v6  ;;  %v5359_v11 = vsel %vm193_vm8, %v2414_v7, 0.0  ;;  %vm1761_vm8 = vcmp.lt.f32.partialorder %v5289_v29, %v5263_v19 }
 0x4f9   : > { %v1963_v54 = vpop.permute.xlu1 %1962  ;;  %v5371_v59 = vsel %vm184_vm10, %v2420_v58, 0.0  ;;  %v5377_v3 = vadd.f32 %v1756_v10, %v1739_v60  ;;  %v5402_v0 = vsel %vm1475_vm5, %v5101_v8, %v1500_v13  ;;  %v5405_v37 = vmul.f32 0.8761586, %v5359_v11 }
 0x4fa   : > { %v1968_v40 = vsel %vm245_vm9, %v5074_v62, %v1963_v54  ;;  %v1789_v62 = vsel %vm1765_vm11, %v5289_v29, %v5280_v12  ;;  %v5411_v16 = vsel %vm1475_vm5, %v1496_v21, %v5108_v52  ;;  %v5417_v15 = vsel %vm1475_vm5, %v5108_v52, %v1504_v41 }
 0x4fb   : > { %v1972_v26 = vadd.f32 %v1968_v40, %v1936_v45  ;;  %2448 = vrot.lane.b32.xlu1 %v5350_v28, %s3042_s26  ;;  %v5375_v2 = vpop.permute.xlu0 %2417  ;;  %v5426_v31 = vmul.f32 0.8761586, %v5371_v59  ;;  %v5433_v36 = vsel %vm1761_vm8, %v5289_v29, %v5263_v19  ;;  %v5439_v8 = vsel %vm1763_vm12, %v5274_v4, %v1789_v62 }
 0x4fc   : > { %2446 = vrot.lane.b32.xlu0 %v5355_v23, %s3042_s26  ;;  %v1514_v52 = vsel %vm1477_vm4, %v5205_v38, %v1512_v27  ;;  %v1781_v13 = vsel %vm1763_vm12, %v5289_v29, %v5274_v4  ;;  %vm1764_vm10 = vcmp.lt.f32.partialorder %v5377_v3, %v5402_v0  ;;  %vm1766_vm2 = vcmp.lt.f32.partialorder %v5377_v3, %v5423_v14  ;;  %v6698_v38 = vld [vmem:[#allocation182_spill] sm:$0xff] }
 0x4fd   : > { %v1967_v7 = vpop.permute.xlu1 %1966  ;;  %v1777_v57 = vsel %vm313_vm7, %v6699_v34, %v6698_v38  ;;  %v5467_v51 = vmul.f32 0.79582006, %v5175_v56  ;;  %v5470_v58 = vmul.f32 0.9248864, %v5312_v5  ;;  %vm1762_vm13 = vcmp.lt.f32.partialorder %v5377_v3, %v5305_v9 }
 0x4fe   : > { %v5476_v63 = vmul.f32 0.9248864, %v5329_v6  ;;  %v5482_v49 = vsel %vm1761_vm8, %v5263_v19, %v1781_v13  ;;  %v1790_v56 = vsel %vm1766_vm2, %v5377_v3, %v5423_v14  ;;  %v2204_v54 = vmul.f32 0.79582006, %v5183_v39 }
 0x4ff   : > { %2452 = vrot.lane.b32.xlu1 %v5405_v37, %s3042_s26  ;;  %v1965_v21 = vpop.permute.xlu0 %1964  ;;  %v5492_v45 = vsel %vm3361_vm15, %v2132_v42, 0.0  ;;  %v5497_v60 = vsel %vm3352_vm14, %v5220_v35, 0.0  ;;  %v1785_v41 = vsel %vm1763_vm12, %v1777_v57, %v1505_v25  ;;  %v2203_v27 = vmul.f32 0.79582006, %v5134_v20 }
 0x500   : > { %2450 = vrot.lane.b32.xlu0 %v5426_v31, %s3042_s26  ;;  %v1969_v22 = vsel %vm245_vm9, %v1965_v21, %v1967_v7  ;;  %v1782_v35 = vsel %vm1764_vm10, %v5377_v3, %v5402_v0  ;;  %v2202_v62 = vmul.f32 0.79582006, %v5142_v30  ;;  %v2218_v7 = vrot.slane %v5467_v51, 1 }
 0x501   : > { %v1984_v10 = vpop.permute.xlu1 %1983  ;;  %v1973_v46 = vadd.f32 %v1969_v22, %v1937_v18  ;;  %v5516_v21 = vmul.f32 0.9248864, %v5359_v11  ;;  %v1793_v42 = vsel %vm1765_vm11, %v1777_v57, %v1513_v50  ;;  %v2206_v18 = vmul.f32 0.79582006, %v5492_v45  ;;  %v6701_v50 = vld [vmem:[#allocation185_spill] sm:$0xff] }
 0x502   : > { %v2207_v38 = vmul.f32 0.79582006, %v5497_v60  ;;  %v5524_v34 = vmul.f32 0.9248864, %v5371_v59  ;;  %v5530_v30 = vsel %vm1761_vm8, %v1777_v57, %v5318_v1  ;;  %v5537_v12 = vsel %vm1762_vm13, %v5377_v3, %v5305_v9 }
 0x503   : > { %2468 = vrot.lane.b32.xlu1 %v5470_v58, %s3044_s3  ;;  %v1982_v40 = vpop.permute.xlu0 %1981  ;;  %v2215_v22 = vrot.slane %v2204_v54, 1  ;;  %v5548_v57 = vsel %vm1761_vm8, %v5318_v1, %v1785_v41  ;;  %v2214_v19 = vrot.slane %v2202_v62, 1  ;;  %v5596_v14 = vmul.f32 0.8761586, %v5497_v60 }
 0x504   : > { %v1989_v39 = vsel %vm313_vm7, %v1982_v40, %v1984_v10  ;;  %2466 = vrot.lane.b32.xlu0 %v5476_v63, %s3044_s3  ;;  %v5554_v40 = vsel %vm1764_vm10, %v5402_v0, %v1790_v56  ;;  %v5569_v56 = vsel %vm1762_vm13, %v5305_v9, %v1782_v35  ;;  %v2222_v4 = vrot.slane %v2207_v38, 1 }
 0x505   : > { %v1993_v13 = vadd.f32 %v1989_v39, %v1972_v26  ;;  %v1988_v20 = vpop.permute.xlu1 %1987  ;;  %v6700_v26 = vld [vmem:[#allocation184_spill] sm:$0xff]  ;;  %v2217_v39 = vrot.slane %v2203_v27, 1  ;;  %v2421_v38 = vsel %vm313_vm7, %v5295_v48, %v5375_v2  ;;  %v2492_v44 = vmul.f32 0.79582006, %v5312_v5 }
 0x506   : > { %v1778_v51 = vsel %vm313_vm7, %v6701_v50, %v6700_v26  ;;  %v5562_v26 = vsel %vm1763_vm12, %v1505_v25, %v1793_v42  ;;  %v2051_v50 = vld [vmem:[%s3203_s29] sm:$0xfc]  ;;  %v2052_v25 = vld [vmem:[%s3203_s29 + $0x20] sm:$0x3]  ;;  %v2223_v48 = vsel %vm222_vm0, %v2218_v7, %v2222_v4 }
 0x507   : > { %2472 = vrot.lane.b32.xlu1 %v5516_v21, %s3044_s3  ;;  %v1986_v10 = vpop.permute.xlu0 %1985  ;;  %v5575_v27 = vsel %vm1762_vm13, %v1778_v51, %v5411_v16  ;;  %v2219_v29 = vsel %vm222_vm0, %v2217_v39, %v2218_v7  ;;  %v1794_v35 = vsel %vm1766_vm2, %v1778_v51, %v1514_v52  ;;  %v2004_v62 = vadd.f32 %v4703_v43, %v1993_v13 }
 0x508   : > { %v1990_v54 = vsel %vm313_vm7, %v1986_v10, %v1988_v20  ;;  %2470 = vrot.lane.b32.xlu0 %v5524_v34, %s3044_s3  ;;  %v2220_v20 = vrot.slane %v2206_v18, 1  ;;  %v2216_v18 = vsel %vm222_vm0, %v2214_v19, %v2215_v22  ;;  %v2061_v39 = vrot.slane %v2051_v50, 2 }
 0x509   : > { %v1994_v1 = vadd.f32 %v1990_v54, %v1973_v46  ;;  %v2019_v41 = vpop.permute.xlu1 %2018  ;;  %v1786_v46 = vsel %vm1764_vm10, %v1778_v51, %v5417_v15  ;;  %v2062_v54 = vrot.slane %v4881_v33, 2  ;;  %v2241_v43 = vrot.slane %v5186_v47, 1 }
 0x50a   : > { %v2064_v13 = vrot.slane %v2052_v25, 2  ;;  %v5600_v19 = vmul.f32 0.8761586, %v5492_v45  ;;  %v5606_v50 = vmul.f32 0.79582006, %v5359_v11  ;;  %v5610_v33 = vsel %vm3361_vm15, %v2421_v38, 0.0 }
 0x50b   : > { %2226 = vrot.lane.b32.xlu1 %v2219_v29, %s3042_s26  ;;  %v2017_v42 = vpop.permute.xlu0 %2016  ;;  %v2194_v29 = vrot.slane %v5199_v32, 1  ;;  %v5615_v25 = vsel %vm3352_vm14, %v5375_v2, 0.0  ;;  %v2005_v7 = vadd.f32 %v4710_v61, %v1994_v1  ;;  %v6702_v11 = vld [vmem:[#allocation21_spill] sm:$0xff]  ;;  %v5627_v2 = vmul.f32 0.79582006, %v5371_v59 }
 0x50c   : > { %v2024_v10 = vsel %vm245_vm9, %v2017_v42, %v2019_v41  ;;  %2224 = vrot.lane.b32.xlu0 %v2216_v18, %s3042_s26  ;;  %v2221_v41 = vsel %vm222_vm0, %v2215_v22, %v2220_v20  ;;  %v2491_v22 = vmul.f32 0.79582006, %v5329_v6  ;;  %v2243_v42 = vrot.slane %v5596_v14, 1 }
 0x50d   : > { %v2028_v52 = vadd.f32 %v2024_v10, %v2004_v62  ;;  %v2023_v51 = vpop.permute.xlu1 %2022  ;;  %v2193_v62 = vrot.slane %v6702_v11, 1  ;;  %v2196_v1 = vrot.slane %v5600_v19, 1  ;;  %v5631_v6 = vmul.f32 0.79582006, %v5610_v33 }
 0x50e   : > { %v2496_v38 = vmul.f32 0.79582006, %v5615_v25  ;;  %v2242_v10 = vsel %vm222_vm0, %v2240_v55, %v2241_v43  ;;  %v1796_v5 = vsel %vm1764_vm10, %v5417_v15, %v1794_v35  ;;  %v2507_v59 = vrot.slane %v5606_v50, 1 }
 0x50f   : > { %2230 = vrot.lane.b32.xlu1 %v2223_v48, %s3042_s26  ;;  %v2021_v4 = vpop.permute.xlu0 %2020  ;;  %v5652_v9 = vsel %vm390_vm1, %v2061_v39, %v2062_v54  ;;  %v5655_v3 = vsel %vm390_vm1, %v2062_v54, %v2064_v13  ;;  %v2506_v0 = vrot.slane %v2492_v44, 1  ;;  %v5659_v15 = vmul.f32 0.8761586, %v5615_v25 }
 0x510   : > { %v2025_v20 = vsel %vm245_vm9, %v2021_v4, %v2023_v51  ;;  %2228 = vrot.lane.b32.xlu0 %v2221_v41, %s3042_s26  ;;  %v1788_v51 = vsel %vm1762_vm13, %v5411_v16, %v1786_v46  ;;  %v5646_v41 = vsel %vm222_vm0, %v2193_v62, %v2194_v29  ;;  %v2504_v16 = vrot.slane %v5627_v2, 1 }
 0x511   : > { %v2029_v18 = vadd.f32 %v2025_v20, %v2005_v7  ;;  %v2040_v61 = vpop.permute.xlu1 %2039  ;;  %v2503_v7 = vrot.slane %v2491_v22, 1  ;;  %v2509_v35 = vrot.slane %v5631_v6, 1  ;;  %v2511_v50 = vrot.slane %v2496_v38, 1 }
 0x512   : > { %v2244_v22 = vsel %vm222_vm0, %v2241_v43, %v2243_v42  ;;  %v5664_v20 = vsel %vm222_vm0, %v2194_v29, %v2196_v1  ;;  %v2508_v13 = vsel %vm222_vm0, %v2506_v0, %v2507_v59 }
 0x513   : > { %2247 = vrot.lane.b32.xlu1 %v2242_v10, %s3044_s3  ;;  %v2038_v48 = vpop.permute.xlu0 %2037 }
 0x514   : > { %v2045_v4 = vsel %vm313_vm7, %v2038_v48, %v2040_v61  ;;  %2245 = vrot.lane.b32.xlu0 %v5646_v41, %s3044_s3  ;;  %v2505_v61 = vsel %vm222_vm0, %v2503_v7, %v2504_v16  ;;  %v2512_v7 = vsel %vm222_vm0, %v2507_v59, %v2511_v50 }
 0x515   : > { %v2049_v46 = vadd.f32 %v2045_v4, %v2028_v52  ;;  %v2044_v39 = vpop.permute.xlu1 %2043  ;;  %v2530_v4 = vrot.slane %v5405_v37, 1 }
 0x517   : > { %2251 = vrot.lane.b32.xlu1 %v2244_v22, %s3044_s3  ;;  %v2042_v54 = vpop.permute.xlu0 %2041  ;;  %vm2053_vm14 = vcmp.lt.f32.partialorder %v2049_v46, %v5433_v36  ;;  %vm2055_vm15 = vcmp.lt.f32.partialorder %v2049_v46, %v5482_v49  ;;  %vm2057_vm3 = vcmp.lt.f32.partialorder %v2049_v46, %v5439_v8  ;;  %v5738_v22 = vmul.f32 0.8761586, %v5610_v33 }
 0x518   : > { %v2046_v52 = vsel %vm313_vm7, %v2042_v54, %v2044_v39  ;;  %2249 = vrot.lane.b32.xlu0 %v5664_v20, %s3044_s3  ;;  %v5675_v43 = vsel %vm2053_vm14, %v2049_v46, %v5433_v36  ;;  %v5679_v29 = vsel %vm2053_vm14, %v5652_v9, %v5530_v30  ;;  %v2068_v55 = vsel %vm2055_vm15, %v2049_v46, %v5482_v49 }
 0x519   : > { %v2050_v62 = vadd.f32 %v2046_v52, %v2029_v18  ;;  %v5685_v42 = vsel %vm2053_vm14, %v5433_v36, %v2068_v55  ;;  %v2072_v44 = vsel %vm2055_vm15, %v5652_v9, %v5548_v57  ;;  %v2076_v2 = vsel %vm2057_vm3, %v2049_v46, %v5439_v8 }
 0x51a   : > { %v5694_v1 = vsel %vm2053_vm14, %v5530_v30, %v2072_v44  ;;  %v5699_v6 = vsel %vm2055_vm15, %v5482_v49, %v2076_v2  ;;  %v2080_v36 = vsel %vm2057_vm3, %v5652_v9, %v5562_v26  ;;  %v2485_v59 = vrot.slane %v5738_v22, 1 }
 0x51b   : > { %2515 = vrot.lane.b32.xlu1 %v2508_v13, %s3042_s26  ;;  %v5707_v18 = vsel %vm2055_vm15, %v5548_v57, %v2080_v36  ;;  %vm2054_vm4 = vcmp.lt.f32.partialorder %v2050_v62, %v5537_v12  ;;  %vm2056_vm5 = vcmp.lt.f32.partialorder %v2050_v62, %v5569_v56  ;;  %vm2058_vm6 = vcmp.lt.f32.partialorder %v2050_v62, %v5554_v40 }
 0x51c   : > { %2513 = vrot.lane.b32.xlu0 %v2505_v61, %s3042_s26  ;;  %v5714_v8 = vsel %vm2054_vm4, %v2050_v62, %v5537_v12  ;;  %v5718_v30 = vsel %vm2054_vm4, %v5655_v3, %v5575_v27  ;;  %v2069_v26 = vsel %vm2056_vm5, %v2050_v62, %v5569_v56  ;;  %v2073_v49 = vsel %vm2056_vm5, %v5655_v3, %v1788_v51  ;;  %v6703_v61 = vld [vmem:[#allocation22_spill] sm:$0xff] }
 0x51d   : > { %v5723_v57 = vsel %vm2054_vm4, %v5537_v12, %v2069_v26  ;;  %v5726_v38 = vsel %vm2054_vm4, %v5575_v27, %v2073_v49  ;;  %v2077_v10 = vsel %vm2058_vm6, %v2050_v62, %v5554_v40  ;;  %v2081_v48 = vsel %vm2058_vm6, %v5655_v3, %v1796_v5  ;;  %v6704_v26 = vld [vmem:[#allocation27_spill] sm:$0xff] }
 0x51e   : > { %v5733_v0 = vsel %vm2056_vm5, %v5569_v56, %v2077_v10  ;;  %v5735_v46 = vsel %vm2056_vm5, %v1788_v51, %v2081_v48  ;;  %v2510_v12 = vsel %vm222_vm0, %v2504_v16, %v2509_v35  ;;  %v2483_v40 = vrot.slane %v5426_v31, 1 }
 0x51f   : > { %2519 = vrot.lane.b32.xlu1 %v2512_v7, %s3042_s26  ;;  %v2529_v27 = vrot.slane %v5350_v28, 1  ;;  %v2482_v5 = vrot.slane %v5355_v23, 1  ;;  %v2532_v56 = vrot.slane %v5659_v15, 1  ;;  %v2274_v35 = vrot.slane %v5186_v47, 2 }
 0x520   : > { %2517 = vrot.lane.b32.xlu0 %v2510_v12, %s3042_s26  ;;  %v5759_v39 = vsel %vm222_vm0, %v2483_v40, %v2485_v59  ;;  %v2271_v54 = vrot.slane %v5199_v32, 2  ;;  %v2273_v13 = vrot.slane %v5145_v53, 2  ;;  %v2270_v52 = vrot.slane %v6702_v11, 2 }
 0x521   : > { %v2531_v51 = vsel %vm222_vm0, %v2529_v27, %v2530_v4  ;;  %v5751_v50 = vsel %vm222_vm0, %v2482_v5, %v2483_v40  ;;  %v2533_v16 = vsel %vm222_vm0, %v2530_v4, %v2532_v56  ;;  %v2278_v55 = vrot.slane %v5596_v14, 2 }
 0x522   : > { %v2275_v62 = vsel %vm390_vm1, %v2273_v13, %v2274_v35  ;;  %v2276_v47 = vrot.slane %v5600_v19, 2  ;;  %v2272_v44 = vsel %vm390_vm1, %v2270_v52, %v2271_v54  ;;  %v2297_v32 = vrot.slane %v5292_v24, 2  ;;  %v2979_v52 = vld [vmem:[%s3203_s29 + $0x18] sm:$0xff] }
 0x523   : > { %2536 = vrot.lane.b32.xlu1 %v2531_v51, %s3044_s3  ;;  %v2294_v2 = vmul.f32 0.9248864, %v5497_v60  ;;  %v2279_v53 = vsel %vm390_vm1, %v2274_v35, %v2278_v55  ;;  %v2259_v11 = vmul.f32 0.9248864, %v5492_v45  ;;  %v2262_v19 = vrot.slane %v5308_v17, 2 }
 0x524   : > { %2534 = vrot.lane.b32.xlu0 %v5751_v50, %s3044_s3  ;;  %v2277_v14 = vsel %vm390_vm1, %v2271_v54, %v2276_v47  ;;  %v2296_v36 = vrot.slane %v6703_v61, 2  ;;  %v2261_v49 = vrot.slane %v6704_v26, 2  ;;  %v2563_v7 = vrot.slane %v5405_v37, 2  ;;  %v2315_v35 = vld [vmem:[%s3203_s29 + $0x8] sm:$0xfc] }
 0x525   : > { %v2299_v10 = vrot.slane %v2294_v2, 2  ;;  %v2264_v60 = vrot.slane %v2259_v11, 2  ;;  %v2560_v12 = vrot.slane %v5426_v31, 2  ;;  %v2562_v40 = vrot.slane %v5350_v28, 2 }
 0x526   : > { %v2298_v24 = vsel %vm390_vm1, %v2296_v36, %v2297_v32  ;;  %v5785_v45 = vsel %vm390_vm1, %v2261_v49, %v2262_v19  ;;  %v2559_v27 = vrot.slane %v5355_v23, 2  ;;  %v2567_v5 = vrot.slane %v5659_v15, 2 }
 0x527   : > { %2540 = vrot.lane.b32.xlu1 %v2533_v16, %s3044_s3  ;;  %v2300_v48 = vsel %vm390_vm1, %v2297_v32, %v2299_v10  ;;  %v5793_v4 = vsel %vm390_vm1, %v2262_v19, %v2264_v60  ;;  %v2564_v56 = vsel %vm390_vm1, %v2562_v40, %v2563_v7  ;;  %v2565_v37 = vrot.slane %v5738_v22, 2 }
 0x528   : > { %2538 = vrot.lane.b32.xlu0 %v5759_v39, %s3044_s3  ;;  %v2561_v51 = vsel %vm390_vm1, %v2559_v27, %v2560_v12  ;;  %v2586_v31 = vrot.slane %v5516_v21, 2  ;;  %v2583_v28 = vmul.f32 0.9248864, %v5615_v25  ;;  %v2568_v23 = vsel %vm390_vm1, %v2563_v7, %v2567_v5 }
 0x529   : > { %v2548_v15 = vmul.f32 0.9248864, %v5610_v33  ;;  %v2566_v22 = vsel %vm390_vm1, %v2560_v12, %v2565_v37  ;;  %v2551_v59 = vrot.slane %v5524_v34, 2  ;;  %v2585_v16 = vrot.slane %v5470_v58, 2 }
 0x52a   : > { %v2550_v21 = vrot.slane %v5476_v63, 2  ;;  %v2588_v54 = vrot.slane %v2583_v28, 2  ;;  %v2326_v55 = vrot.slane %v2979_v52, 2  ;;  %v2325_v58 = vrot.slane %v2315_v35, 2 }
 0x52b   : > { %2282 = vrot.lane.b32.xlu1 %v2275_v62, %s3042_s26  ;;  %v2587_v25 = vsel %vm390_vm1, %v2585_v16, %v2586_v31  ;;  %v2553_v13 = vrot.slane %v2548_v15, 2  ;;  %v2316_v62 = vld [vmem:[%s3203_s29 + $0x28] sm:$0x3] }
 0x52c   : > { %2280 = vrot.lane.b32.xlu0 %v2272_v44, %s3042_s26  ;;  %v5820_v33 = vsel %vm390_vm1, %v2550_v21, %v2551_v59  ;;  %v2589_v47 = vsel %vm390_vm1, %v2586_v31, %v2588_v54  ;;  %v2327_v32 = vsel %vm390_vm1, %v2325_v58, %v2326_v55  ;;  %v2328_v2 = vrot.slane %v2316_v62, 2 }
 0x52d   : > { %v5829_v44 = vsel %vm390_vm1, %v2551_v59, %v2553_v13 }
 0x52f   : > { %2286 = vrot.lane.b32.xlu1 %v2279_v53, %s3042_s26  ;;  %v2329_v53 = vsel %vm390_vm1, %v2326_v55, %v2328_v2 }
 0x530   : > { %2284 = vrot.lane.b32.xlu0 %v2277_v14, %s3042_s26 }
 0x533   : > { %2303 = vrot.lane.b32.xlu1 %v2298_v24, %s3044_s3 }
 0x534   : > { %2301 = vrot.lane.b32.xlu0 %v5785_v45, %s3044_s3 }
 0x537   : > { %2307 = vrot.lane.b32.xlu1 %v2300_v48, %s3044_s3 }
 0x538   : > { %2305 = vrot.lane.b32.xlu0 %v5793_v4, %s3044_s3 }
 0x53b   : > { %2571 = vrot.lane.b32.xlu1 %v2564_v56, %s3042_s26 }
 0x53c   : > { %2569 = vrot.lane.b32.xlu0 %v2561_v51, %s3042_s26 }
 0x53f   : > { %2575 = vrot.lane.b32.xlu1 %v2568_v23, %s3042_s26 }
 0x540   : > { %2573 = vrot.lane.b32.xlu0 %v2566_v22, %s3042_s26 }
 0x543   : > { %2592 = vrot.lane.b32.xlu1 %v2587_v25, %s3044_s3 }
 0x544   : > { %2590 = vrot.lane.b32.xlu0 %v5820_v33, %s3044_s3 }
 0x547   : > { %2596 = vrot.lane.b32.xlu1 %v2589_v47, %s3044_s3 }
 0x548   : > { %2594 = vrot.lane.b32.xlu0 %v5829_v44, %s3044_s3 }
 0x54b   : > { %2332 = vrot.lane.b32.xlu1 %v2327_v32, %s3042_s26 }
 0x54c   : > { %2330 = vrot.lane.b32.xlu0 %v5652_v9, %s3042_s26 }
 0x54f   : > { %2336 = vrot.lane.b32.xlu1 %v2329_v53, %s3042_s26 }
 0x550   : > { %2334 = vrot.lane.b32.xlu0 %v5655_v3, %s3042_s26 }
 0x553   : > { %2614 = vrot.lane.b32.xlu1 %v2327_v32, %s3044_s3 }
 0x554   : > { %2612 = vrot.lane.b32.xlu0 %v5652_v9, %s3044_s3 }
 0x557   : > { %2618 = vrot.lane.b32.xlu1 %v2329_v53, %s3044_s3 }
 0x558   : > { %2616 = vrot.lane.b32.xlu0 %v5655_v3, %s3044_s3 }
 0x55d   : > { %v2160_v11 = vpop.permute.xlu1 %2159 }
 0x55e   : > { %v2158_v14 = vpop.permute.xlu0 %2157 }
 0x55f   : > { %v2165_v19 = vsel %vm245_vm9, %v2158_v14, %v2160_v11 }
 0x560   : > { %v2169_v24 = vadd.f32 %v2165_v19, %v6704_v26 }
 0x561   : > { %v2164_v61 = vpop.permute.xlu1 %2163 }
 0x562   : > { %v2162_v36 = vpop.permute.xlu0 %2161 }
 0x563   : > { %v2166_v49 = vsel %vm245_vm9, %v2162_v36, %v2164_v61 }
 0x564   : > { %v2170_v12 = vadd.f32 %v2166_v49, %v5308_v17 }
 0x565   : > { %v2180_v10 = vpop.permute.xlu1 %2179 }
 0x566   : > { %v2178_v60 = vpop.permute.xlu0 %2177 }
 0x567   : > { %v2185_v48 = vsel %vm313_vm7, %v2178_v60, %v2180_v10 }
 0x568   : > { %v2189_v9 = vadd.f32 %v2185_v48, %v2169_v24 }
 0x569   : > { %v2184_v7 = vpop.permute.xlu1 %2183 }
 0x56a   : > { %v2182_v40 = vpop.permute.xlu0 %2181  ;;  %v2200_v49 = vadd.f32 %v5646_v41, %v2189_v9 }
 0x56b   : > { %v2186_v3 = vsel %vm313_vm7, %v2182_v40, %v2184_v7 }
 0x56c   : > { %v2190_v27 = vadd.f32 %v2186_v3, %v2170_v12 }
 0x56d   : > { %v2449_v5 = vpop.permute.xlu1 %2448 }
 0x56e   : > { %v2447_v56 = vpop.permute.xlu0 %2446  ;;  %v2201_v12 = vadd.f32 %v5664_v20, %v2190_v27 }
 0x56f   : > { %v2454_v37 = vsel %vm245_vm9, %v2447_v56, %v2449_v5 }
 0x570   : > { %v2458_v23 = vadd.f32 %v2454_v37, %v5476_v63 }
 0x571   : > { %v2453_v51 = vpop.permute.xlu1 %2452 }
 0x572   : > { %v2451_v31 = vpop.permute.xlu0 %2450 }
 0x573   : > { %v2455_v28 = vsel %vm245_vm9, %v2451_v31, %v2453_v51 }
 0x574   : > { %v2459_v16 = vadd.f32 %v2455_v28, %v5524_v34 }
 0x575   : > { %v2469_v26 = vpop.permute.xlu1 %2468 }
 0x576   : > { %v2467_v15 = vpop.permute.xlu0 %2466 }
 0x577   : > { %v2474_v22 = vsel %vm313_vm7, %v2467_v15, %v2469_v26 }
 0x578   : > { %v2478_v59 = vadd.f32 %v2474_v22, %v2458_v23 }
 0x579   : > { %v2473_v17 = vpop.permute.xlu1 %2472 }
 0x57a   : > { %v2471_v21 = vpop.permute.xlu0 %2470 }
 0x57b   : > { %v2475_v35 = vsel %vm313_vm7, %v2471_v21, %v2473_v17 }
 0x57c   : > { %v5859_v54 = vadd.f32 %v2475_v35, %v2459_v16 }
 0x57d   : > { %v2227_v25 = vpop.permute.xlu1 %2226 }
 0x57e   : > { %v2225_v13 = vpop.permute.xlu0 %2224 }
 0x57f   : > { %v2232_v36 = vsel %vm245_vm9, %v2225_v13, %v2227_v25  ;;  %v2489_v13 = vadd.f32 %v5751_v50, %v2478_v59 }
 0x580   : > { %v2236_v60 = vadd.f32 %v2232_v36, %v2200_v49 }
 0x581   : > { %v2231_v52 = vpop.permute.xlu1 %2230 }
 0x582   : > { %v2229_v55 = vpop.permute.xlu0 %2228 }
 0x583   : > { %v2233_v7 = vsel %vm245_vm9, %v2229_v55, %v2231_v52 }
 0x584   : > { %v2237_v56 = vadd.f32 %v2233_v7, %v2201_v12 }
 0x585   : > { %v2248_v58 = vpop.permute.xlu1 %2247 }
 0x586   : > { %v2246_v62 = vpop.permute.xlu0 %2245 }
 0x587   : > { %v2253_v10 = vsel %vm313_vm7, %v2246_v62, %v2248_v58 }
 0x588   : > { %v2257_v40 = vadd.f32 %v2253_v10, %v2236_v60 }
 0x589   : > { %v2252_v47 = vpop.permute.xlu1 %2251 }
 0x58a   : > { %v2250_v63 = vpop.permute.xlu0 %2249  ;;  %v2268_v41 = vadd.f32 %v5785_v45, %v2257_v40 }
 0x58b   : > { %v2254_v3 = vsel %vm313_vm7, %v2250_v63, %v2252_v47 }
 0x58c   : > { %v2258_v31 = vadd.f32 %v2254_v3, %v2237_v56 }
 0x58d   : > { %v2516_v32 = vpop.permute.xlu1 %2515 }
 0x58e   : > { %v2514_v2 = vpop.permute.xlu0 %2513  ;;  %v2269_v20 = vadd.f32 %v5793_v4, %v2258_v31 }
 0x58f   : > { %v2521_v22 = vsel %vm245_vm9, %v2514_v2, %v2516_v32 }
 0x590   : > { %v2525_v63 = vadd.f32 %v2521_v22, %v2489_v13 }
 0x591   : > { %v2520_v53 = vpop.permute.xlu1 %2519 }
 0x592   : > { %v2518_v11 = vpop.permute.xlu0 %2517 }
 0x593   : > { %v2522_v50 = vsel %vm245_vm9, %v2518_v11, %v2520_v53  ;;  %v2490_v53 = vadd.f32 %v5759_v39, %v5859_v54 }
 0x595   : > { %v2537_v14 = vpop.permute.xlu1 %2536 }
 0x596   : > { %v2535_v19 = vpop.permute.xlu0 %2534 }
 0x597   : > { %v2542_v62 = vsel %vm313_vm7, %v2535_v19, %v2537_v14 }
 0x598   : > { %v2546_v11 = vadd.f32 %v2542_v62, %v2525_v63 }
 0x599   : > { %v2541_v34 = vpop.permute.xlu1 %2540 }
 0x59a   : > { %v2539_v61 = vpop.permute.xlu0 %2538 }
 0x59b   : > { %v2543_v49 = vsel %vm313_vm7, %v2539_v61, %v2541_v34 }
 0x59d   : > { %v2283_v24 = vpop.permute.xlu1 %2282 }
 0x59e   : > { %v2281_v48 = vpop.permute.xlu0 %2280 }
 0x59f   : > { %v2288_v51 = vsel %vm245_vm9, %v2281_v48, %v2283_v24  ;;  %v2526_v24 = vadd.f32 %v2522_v50, %v2490_v53  ;;  %v2557_v48 = vadd.f32 %v5820_v33, %v2546_v11  ;;  %v3045_v53 = vmov 0  }
 0x5a0   : > { %v2292_v28 = vadd.f32 %v2288_v51, %v2268_v41 }
 0x5a1   : > { %v2287_v5 = vpop.permute.xlu1 %2286  ;;  %v2547_v54 = vadd.f32 %v2543_v49, %v2526_v24 }
 0x5a2   : > { %v2285_v37 = vpop.permute.xlu0 %2284 }
 0x5a3   : > { %v2289_v23 = vsel %vm245_vm9, %v2285_v37, %v2287_v5  ;;  %v2558_v56 = vadd.f32 %v5829_v44, %v2547_v54 }
 0x5a4   : > { %v2293_v16 = vadd.f32 %v2289_v23, %v2269_v20 }
 0x5a5   : > { %v2304_v9 = vpop.permute.xlu1 %2303 }
 0x5a6   : > { %v2302_v26 = vpop.permute.xlu0 %2301 }
 0x5a7   : > { %v2309_v15 = vsel %vm313_vm7, %v2302_v26, %v2304_v9 }
 0x5a8   : > { %v5872_v27 = vadd.f32 %v2309_v15, %v2292_v28 }
 0x5a9   : > { %v2308_v17 = vpop.permute.xlu1 %2307 }
 0x5aa   : > { %v2306_v21 = vpop.permute.xlu0 %2305  ;;  %vm2317_vm0 = vcmp.lt.f32.partialorder %v5872_v27, %v5675_v43  ;;  %vm2319_vm1 = vcmp.lt.f32.partialorder %v5872_v27, %v5685_v42  ;;  %vm2321_vm11 = vcmp.lt.f32.partialorder %v5872_v27, %v5699_v6 }
 0x5ab   : > { %v2310_v45 = vsel %vm313_vm7, %v2306_v21, %v2308_v17  ;;  %v2342_v4 = vsel %vm2319_vm1, %v5872_v27, %v5685_v42  ;;  %v2350_v35 = vsel %vm2321_vm11, %v5872_v27, %v5699_v6  ;;  %v5897_v25 = vsel %vm2317_vm0, %v5872_v27, %v5675_v43 }
 0x5ac   : > { %v5900_v52 = vadd.f32 %v2310_v45, %v2293_v16  ;;  %v5906_v55 = vsel %vm2317_vm0, %v5675_v43, %v2342_v4  ;;  %v5912_v58 = vsel %vm2319_vm1, %v5685_v42, %v2350_v35 }
 0x5ad   : > { %v2572_v47 = vpop.permute.xlu1 %2571 }
 0x5ae   : > { %v2570_v32 = vpop.permute.xlu0 %2569  ;;  %vm2318_vm8 = vcmp.lt.f32.partialorder %v5900_v52, %v5714_v8  ;;  %vm2320_vm12 = vcmp.lt.f32.partialorder %v5900_v52, %v5723_v57  ;;  %vm2322_vm10 = vcmp.lt.f32.partialorder %v5900_v52, %v5733_v0 }
 0x5af   : > { %v2343_v59 = vsel %vm2320_vm12, %v5900_v52, %v5723_v57  ;;  %v2351_v2 = vsel %vm2322_vm10, %v5900_v52, %v5733_v0  ;;  %v5937_v14 = vsel %vm2318_vm8, %v5900_v52, %v5714_v8  ;;  %v2577_v39 = vsel %vm245_vm9, %v2570_v32, %v2572_v47 }
 0x5b0   : > { %v5945_v19 = vsel %vm2318_vm8, %v5714_v8, %v2343_v59  ;;  %v5951_v36 = vsel %vm2320_vm12, %v5723_v57, %v2351_v2  ;;  %v2581_v12 = vadd.f32 %v2577_v39, %v2557_v48 }
 0x5b1   : > { %v2576_v10 = vpop.permute.xlu1 %2575 }
 0x5b2   : > { %v2574_v60 = vpop.permute.xlu0 %2573 }
 0x5b3   : > { %v2578_v3 = vsel %vm245_vm9, %v2574_v60, %v2576_v10 }
 0x5b4   : > { %v2582_v34 = vadd.f32 %v2578_v3, %v2558_v56 }
 0x5b5   : > { %v2593_v7 = vpop.permute.xlu1 %2592 }
 0x5b6   : > { %v2591_v40 = vpop.permute.xlu0 %2590 }
 0x5b7   : > { %v2598_v5 = vsel %vm313_vm7, %v2591_v40, %v2593_v7 }
 0x5b8   : > { %v2602_v37 = vadd.f32 %v2598_v5, %v2581_v12 }
 0x5b9   : > { %v2597_v51 = vpop.permute.xlu1 %2596 }
 0x5ba   : > { %v2595_v61 = vpop.permute.xlu0 %2594  ;;  %vm2604_vm2 = vcmp.lt.f32.partialorder %v2602_v37, %v5897_v25  ;;  %vm2606_vm13 = vcmp.lt.f32.partialorder %v2602_v37, %v5906_v55  ;;  %vm2608_vm14 = vcmp.lt.f32.partialorder %v2602_v37, %v5912_v58 }
 0x5bb   : > { %v2599_v33 = vsel %vm313_vm7, %v2595_v61, %v2597_v51  ;;  %v2610_v31 = vsel %vm2604_vm2, %v2602_v37, %v5897_v25  ;;  %v2624_v44 = vsel %vm2606_vm13, %v2602_v37, %v5906_v55  ;;  %v2632_v41 = vsel %vm2608_vm14, %v2602_v37, %v5912_v58 }
 0x5bc   : > { %v5972_v9 = vadd.f32 %v2599_v33, %v2582_v34  ;;  %v2626_v28 = vsel %vm2604_vm2, %v5897_v25, %v2624_v44  ;;  %v2634_v26 = vsel %vm2606_vm13, %v5906_v55, %v2632_v41 }
 0x5bd   : > { %v2333_v23 = vpop.permute.xlu1 %2332  ;;  %vm2644_vm5 = vcmp.gt.f32.partialorder %v2626_v28, 1.0  ;;  %vm2648_vm6 = vcmp.gt.f32.partialorder %v2634_v26, 1.0 }
 0x5be   : > { %v2331_v15 = vpop.permute.xlu0 %2330  ;;  %vm2605_vm15 = vcmp.lt.f32.partialorder %v5972_v9, %v5937_v14  ;;  %vm2607_vm3 = vcmp.lt.f32.partialorder %v5972_v9, %v5945_v19  ;;  %vm2609_vm4 = vcmp.lt.f32.partialorder %v5972_v9, %v5951_v36 }
 0x5bf   : > { %v2338_v20 = vsel %vm245_vm9, %v2331_v15, %v2333_v23  ;;  %v5992_v22 = vsel %vm2605_vm15, %v5972_v9, %v5937_v14  ;;  %v2625_v17 = vsel %vm2607_vm3, %v5972_v9, %v5945_v19  ;;  %v2633_v16 = vsel %vm2609_vm4, %v5972_v9, %v5951_v36 }
 0x5c0   : > { %v2340_v21 = vsel %vm2317_vm0, %v2338_v20, %v5679_v29  ;;  %v2346_v45 = vsel %vm2319_vm1, %v2338_v20, %v5694_v1  ;;  %v2354_v4 = vsel %vm2321_vm11, %v2338_v20, %v5707_v18  ;;  %v2627_v35 = vsel %vm2605_vm15, %v5937_v14, %v2625_v17 }
 0x5c1   : > { %v2337_v13 = vpop.permute.xlu1 %2336  ;;  %v2348_v62 = vsel %vm2317_vm0, %v5679_v29, %v2346_v45  ;;  %v2356_v47 = vsel %vm2319_vm1, %v5694_v1, %v2354_v4  ;;  %v2635_v6 = vsel %vm2607_vm3, %v5945_v19, %v2633_v16 }
 0x5c2   : > { %v2335_v18 = vpop.permute.xlu0 %2334 }
 0x5c3   : > { %v2339_v63 = vsel %vm245_vm9, %v2335_v18, %v2337_v13  ;;  %vm2640_vm9 = vcmp.gt.f32.partialorder %v2610_v31, 1.0 }
 0x5c4   : > { %v2341_v32 = vsel %vm2318_vm8, %v2339_v63, %v5718_v30  ;;  %v2347_v43 = vsel %vm2320_vm12, %v2339_v63, %v5726_v38  ;;  %v2355_v29 = vsel %vm2322_vm10, %v2339_v63, %v5735_v46 }
 0x5c5   : > { %v2615_v42 = vpop.permute.xlu1 %2614  ;;  %v2349_v1 = vsel %vm2318_vm8, %v5718_v30, %v2347_v43  ;;  %v2357_v27 = vsel %vm2320_vm12, %v5726_v38, %v2355_v29 }
 0x5c6   : > { %v2613_v50 = vpop.permute.xlu0 %2612 }
 0x5c7   : > { %v2620_v59 = vsel %vm313_vm7, %v2613_v50, %v2615_v42 }
 0x5c8   : > { %v2622_v0 = vsel %vm2604_vm2, %v2620_v59, %v2340_v21  ;;  %v2628_v46 = vsel %vm2606_vm13, %v2620_v59, %v2348_v62  ;;  %v2636_v8 = vsel %vm2608_vm14, %v2620_v59, %v2356_v47 }
 0x5c9   : > { %v2630_v30 = vsel %vm2604_vm2, %v2340_v21, %v2628_v46  ;;  %v2638_v57 = vsel %vm2606_vm13, %v2348_v62, %v2636_v8  ;;  %v6064_v38 = vsel %vm2640_vm9, 8, %v2622_v0  ;;  %v2619_v11 = vpop.permute.xlu1 %2618  ;;  %vm2641_vm2 = vcmp.gt.f32.partialorder %v5992_v22, 1.0 }
 0x5ca   : > { %v6066_v52 = vsel %vm2644_vm5, 8, %v2630_v30  ;;  %v6068_v2 = vsel %vm2648_vm6, 8, %v2638_v57  ;;  %vm2652_vm0 = vcmp.eq.s32.totalorder %v6064_v38, 0  ;;  %vm2668_vm1 = vcmp.eq.s32.totalorder %v6064_v38, 1  ;;  %v2617_v49 = vpop.permute.xlu0 %2616 }
 0x5cb   : > { %v2654_v58 = vsel %vm2652_vm0, 1, %v3045_v53  ;;  %vm2656_vm11 = vcmp.eq.s32.totalorder %v6066_v52, 0  ;;  %v2670_v25 = vsel %vm2668_vm1, 1, %v3045_v53  ;;  %vm2662_vm8 = vcmp.eq.s32.totalorder %v6068_v2, 0 }
 0x5cc   : > { %v2658_v55 = vsel %vm2656_vm11, 1, %v3045_v53  ;;  %vm2672_vm12 = vcmp.eq.s32.totalorder %v6066_v52, 1  ;;  %vm2690_vm10 = vcmp.eq.s32.totalorder %v6064_v38, 2  ;;  %vm2645_vm13 = vcmp.gt.f32.partialorder %v2627_v35, 1.0 }
 0x5cd   : > { %v2660_v10 = vadd.s32 %v2658_v55, %v2654_v58  ;;  %v2674_v24 = vsel %vm2672_vm12, 1, %v3045_v53  ;;  %vm2678_vm14 = vcmp.eq.s32.totalorder %v6068_v2, 1  ;;  %vm2712_vm9 = vcmp.eq.s32.totalorder %v6064_v38, 3 }
 0x5ce   : > { %v2676_v60 = vadd.s32 %v2674_v24, %v2670_v25  ;;  %vm2649_vm5 = vcmp.gt.f32.partialorder %v2635_v6, 1.0  ;;  %v2692_v39 = vsel %vm2690_vm10, 1, %v3045_v53  ;;  %vm2694_vm6 = vcmp.eq.s32.totalorder %v6066_v52, 2 }
 0x5cf   : > { %v2621_v54 = vsel %vm313_vm7, %v2617_v49, %v2619_v11  ;;  %v2664_v48 = vsel %vm2662_vm8, 1, %v3045_v53  ;;  %v2714_v5 = vsel %vm2712_vm9, 1, %v3045_v53  ;;  %vm2716_vm7 = vcmp.eq.s32.totalorder %v6066_v52, 3 }
 0x5d0   : > { %v2623_v7 = vsel %vm2605_vm15, %v2621_v54, %v2341_v32  ;;  %v2629_v12 = vsel %vm2607_vm3, %v2621_v54, %v2349_v1  ;;  %v2637_v40 = vsel %vm2609_vm4, %v2621_v54, %v2357_v27  ;;  %v2666_v3 = vadd.s32 %v2664_v48, %v2660_v10 }
 0x5d1   : > { %v2631_v56 = vsel %vm2605_vm15, %v2341_v32, %v2629_v12  ;;  %v2639_v37 = vsel %vm2607_vm3, %v2349_v1, %v2637_v40  ;;  %v6108_v51 = vsel %vm2641_vm2, 8, %v2623_v7  ;;  %vm2734_vm1 = vcmp.eq.s32.totalorder %v6064_v38, 4 }
 0x5d2   : > { %v6111_v36 = vsel %vm2645_vm13, 8, %v2631_v56  ;;  %v6113_v34 = vsel %vm2649_vm5, 8, %v2639_v37  ;;  %vm2653_vm4 = vcmp.eq.s32.totalorder %v6108_v51, 0  ;;  %vm2669_vm0 = vcmp.eq.s32.totalorder %v6108_v51, 1 }
 0x5d3   : > { %v2655_v14 = vsel %vm2653_vm4, 1, %v3045_v53  ;;  %vm2657_vm15 = vcmp.eq.s32.totalorder %v6111_v36, 0  ;;  %vm2663_vm3 = vcmp.eq.s32.totalorder %v6113_v34, 0  ;;  %v2671_v19 = vsel %vm2669_vm0, 1, %v3045_v53 }
 0x5d4   : > { %v2659_v61 = vsel %vm2657_vm15, 1, %v3045_v53  ;;  %vm2673_vm11 = vcmp.eq.s32.totalorder %v6111_v36, 1  ;;  %vm2679_vm8 = vcmp.eq.s32.totalorder %v6113_v34, 1  ;;  %vm2691_vm12 = vcmp.eq.s32.totalorder %v6108_v51, 2 }
 0x5d5   : > { %v2661_v33 = vadd.s32 %v2659_v61, %v2655_v14  ;;  %v2675_v31 = vsel %vm2673_vm11, 1, %v3045_v53  ;;  %v2693_v44 = vsel %vm2691_vm12, 1, %v3045_v53  ;;  %v2680_v41 = vsel %vm2678_vm14, 1, %v3045_v53 }
 0x5d6   : > { %v2677_v9 = vadd.s32 %v2675_v31, %v2671_v19  ;;  %vm2695_vm10 = vcmp.eq.s32.totalorder %v6111_v36, 2  ;;  %vm2713_vm2 = vcmp.eq.s32.totalorder %v6108_v51, 3  ;;  %vm2717_vm13 = vcmp.eq.s32.totalorder %v6111_v36, 3 }
 0x5d7   : > { %v2715_v28 = vsel %vm2713_vm2, 1, %v3045_v53  ;;  %vm2735_vm9 = vcmp.eq.s32.totalorder %v6108_v51, 4  ;;  %v2665_v26 = vsel %vm2663_vm3, 1, %v3045_v53  ;;  %v2681_v23 = vsel %vm2679_vm8, 1, %v3045_v53 }
 0x5d8   : > { %v2667_v15 = vadd.s32 %v2665_v26, %v2661_v33  ;;  %v2682_v20 = vadd.s32 %v2680_v41, %v2676_v60  ;;  %v2683_v22 = vadd.s32 %v2681_v23, %v2677_v9  ;;  %v2696_v17 = vsel %vm2694_vm6, 1, %v3045_v53 }
 0x5d9   : > { %v2697_v16 = vsel %vm2695_vm10, 1, %v3045_v53  ;;  %v2698_v21 = vadd.s32 %v2696_v17, %v2692_v39  ;;  %vm2700_vm14 = vcmp.eq.s32.totalorder %v6068_v2, 2  ;;  %vm2701_vm5 = vcmp.eq.s32.totalorder %v6113_v34, 2 }
 0x5da   : > { %vm2756_vm4 = vcmp.eq.s32.totalorder %v6064_v38, 5  ;;  %vm2757_vm0 = vcmp.eq.s32.totalorder %v6108_v51, 5  ;;  %vm2684_vm15 = vcmp.gt.s32.totalorder %v2682_v20, %v2666_v3  ;;  %vm2685_vm3 = vcmp.gt.s32.totalorder %v2683_v22, %v2667_v15 }
 0x5db   : > { %v2699_v45 = vadd.s32 %v2697_v16, %v2693_v44  ;;  %v2702_v4 = vsel %vm2700_vm14, 1, %v3045_v53  ;;  %v2686_v35 = vsel %vm2684_vm15, %v2682_v20, %v2666_v3  ;;  %v2687_v13 = vsel %vm2685_vm3, %v2683_v22, %v2667_v15 }
 0x5dc   : > { %v2688_v62 = vsel %vm2684_vm15, 1, %v3045_v53  ;;  %v2689_v47 = vsel %vm2685_vm3, 1, %v3045_v53  ;;  %v2703_v6 = vsel %vm2701_vm5, 1, %v3045_v53  ;;  %v2704_v18 = vadd.s32 %v2702_v4, %v2698_v21 }
 0x5dd   : > { %v2718_v63 = vsel %vm2716_vm7, 1, %v3045_v53  ;;  %v2719_v32 = vsel %vm2717_vm13, 1, %v3045_v53  ;;  %v2705_v43 = vadd.s32 %v2703_v6, %v2699_v45  ;;  %vm2722_vm6 = vcmp.eq.s32.totalorder %v6068_v2, 3 }
 0x5de   : > { %v2720_v29 = vadd.s32 %v2718_v63, %v2714_v5  ;;  %v2721_v42 = vadd.s32 %v2719_v32, %v2715_v28  ;;  %vm2706_vm11 = vcmp.gt.s32.totalorder %v2704_v18, %v2686_v35  ;;  %vm2723_vm8 = vcmp.eq.s32.totalorder %v6113_v34, 3 }
 0x5df   : > { %v2724_v1 = vsel %vm2722_vm6, 1, %v3045_v53  ;;  %v2736_v27 = vsel %vm2734_vm1, 1, %v3045_v53  ;;  %vm2707_vm12 = vcmp.gt.s32.totalorder %v2705_v43, %v2687_v13  ;;  %v2708_v50 = vsel %vm2706_vm11, %v2704_v18, %v2686_v35 }
 0x5e0   : > { %v2710_v59 = vsel %vm2706_vm11, 2, %v2688_v62  ;;  %v2725_v0 = vsel %vm2723_vm8, 1, %v3045_v53  ;;  %v2709_v46 = vsel %vm2707_vm12, %v2705_v43, %v2687_v13  ;;  %v2711_v8 = vsel %vm2707_vm12, 2, %v2689_v47 }
 0x5e1   : > { %v2726_v30 = vadd.s32 %v2724_v1, %v2720_v29  ;;  %v2727_v57 = vadd.s32 %v2725_v0, %v2721_v42  ;;  %v2737_v58 = vsel %vm2735_vm9, 1, %v3045_v53  ;;  %vm2738_vm7 = vcmp.eq.s32.totalorder %v6066_v52, 4 }
 0x5e2   : > { %vm2739_vm10 = vcmp.eq.s32.totalorder %v6111_v36, 4  ;;  %vm2744_vm2 = vcmp.eq.s32.totalorder %v6068_v2, 4  ;;  %v2740_v25 = vsel %vm2738_vm7, 1, %v3045_v53  ;;  %vm2745_vm9 = vcmp.eq.s32.totalorder %v6113_v34, 4 }
 0x5e3   : > { %vm2728_vm1 = vcmp.gt.s32.totalorder %v2726_v30, %v2708_v50  ;;  %vm2729_vm13 = vcmp.gt.s32.totalorder %v2727_v57, %v2709_v46  ;;  %v2741_v55 = vsel %vm2739_vm10, 1, %v3045_v53  ;;  %v2742_v60 = vadd.s32 %v2740_v25, %v2736_v27 }
 0x5e4   : > { %v2730_v11 = vsel %vm2728_vm1, %v2726_v30, %v2708_v50  ;;  %v2731_v49 = vsel %vm2729_vm13, %v2727_v57, %v2709_v46  ;;  %v2732_v10 = vsel %vm2728_vm1, 3, %v2710_v59  ;;  %v2733_v24 = vsel %vm2729_vm13, 3, %v2711_v8 }
 0x5e5   : > { %v2743_v39 = vadd.s32 %v2741_v55, %v2737_v58  ;;  %v2746_v54 = vsel %vm2744_vm2, 1, %v3045_v53  ;;  %v2747_v48 = vsel %vm2745_vm9, 1, %v3045_v53  ;;  %v2758_v7 = vsel %vm2756_vm4, 1, %v3045_v53 }
 0x5e6   : > { %v2759_v12 = vsel %vm2757_vm0, 1, %v3045_v53  ;;  %vm2760_vm14 = vcmp.eq.s32.totalorder %v6066_v52, 5  ;;  %v2748_v40 = vadd.s32 %v2746_v54, %v2742_v60  ;;  %vm2761_vm5 = vcmp.eq.s32.totalorder %v6111_v36, 5 }
 0x5e7   : > { %v2749_v3 = vadd.s32 %v2747_v48, %v2743_v39  ;;  %v2762_v5 = vsel %vm2760_vm14, 1, %v3045_v53  ;;  %v2763_v56 = vsel %vm2761_vm5, 1, %v3045_v53  ;;  %vm2766_vm15 = vcmp.eq.s32.totalorder %v6068_v2, 5 }
 0x5e8   : > { %v2764_v37 = vadd.s32 %v2762_v5, %v2758_v7  ;;  %vm2767_vm3 = vcmp.eq.s32.totalorder %v6113_v34, 5  ;;  %vm2750_vm4 = vcmp.gt.s32.totalorder %v2748_v40, %v2730_v11  ;;  %v2765_v14 = vadd.s32 %v2763_v56, %v2759_v12 }
 0x5e9   : > { %vm2751_vm6 = vcmp.gt.s32.totalorder %v2749_v3, %v2731_v49  ;;  %v2768_v19 = vsel %vm2766_vm15, 1, %v3045_v53  ;;  %v2752_v61 = vsel %vm2750_vm4, %v2748_v40, %v2730_v11  ;;  %v2754_v31 = vsel %vm2750_vm4, 4, %v2732_v10 }
 0x5ea   : > { %v2753_v33 = vsel %vm2751_vm6, %v2749_v3, %v2731_v49  ;;  %v2755_v44 = vsel %vm2751_vm6, 4, %v2733_v24  ;;  %v2769_v41 = vsel %vm2767_vm3, 1, %v3045_v53  ;;  %v2770_v9 = vadd.s32 %v2768_v19, %v2764_v37 }
 0x5eb   : > { %vm2778_vm0 = vcmp.eq.s32.totalorder %v6064_v38, 6  ;;  %vm2779_vm11 = vcmp.eq.s32.totalorder %v6108_v51, 6  ;;  %v2771_v28 = vadd.s32 %v2769_v41, %v2765_v14  ;;  %vm2782_vm8 = vcmp.eq.s32.totalorder %v6066_v52, 6 }
 0x5ec   : > { %v2780_v26 = vsel %vm2778_vm0, 1, %v3045_v53  ;;  %v2781_v23 = vsel %vm2779_vm11, 1, %v3045_v53  ;;  %vm2772_vm12 = vcmp.gt.s32.totalorder %v2770_v9, %v2752_v61  ;;  %vm2783_vm7 = vcmp.eq.s32.totalorder %v6111_v36, 6 }
 0x5ed   : > { %v2784_v15 = vsel %vm2782_vm8, 1, %v3045_v53  ;;  %vm2788_vm10 = vcmp.eq.s32.totalorder %v6068_v2, 6  ;;  %vm2773_vm2 = vcmp.gt.s32.totalorder %v2771_v28, %v2753_v33  ;;  %v2774_v20 = vsel %vm2772_vm12, %v2770_v9, %v2752_v61 }
 0x5ee   : > { %v2776_v22 = vsel %vm2772_vm12, 5, %v2754_v31  ;;  %v2785_v17 = vsel %vm2783_vm7, 1, %v3045_v53  ;;  %v2775_v16 = vsel %vm2773_vm2, %v2771_v28, %v2753_v33  ;;  %v2777_v21 = vsel %vm2773_vm2, 5, %v2755_v44 }
 0x5ef   : > { %v2786_v45 = vadd.s32 %v2784_v15, %v2780_v26  ;;  %v2787_v4 = vadd.s32 %v2785_v17, %v2781_v23  ;;  %vm2789_vm1 = vcmp.eq.s32.totalorder %v6113_v34, 6  ;;  %v2790_v35 = vsel %vm2788_vm10, 1, %v3045_v53 }
 0x5f0   : > { %vm2800_vm13 = vcmp.eq.s32.totalorder %v6064_v38, 7  ;;  %vm2801_vm9 = vcmp.eq.s32.totalorder %v6108_v51, 7  ;;  %v2791_v13 = vsel %vm2789_vm1, 1, %v3045_v53  ;;  %vm2804_vm14 = vcmp.eq.s32.totalorder %v6066_v52, 7 }
 0x5f1   : > { %v2792_v62 = vadd.s32 %v2790_v35, %v2786_v45  ;;  %v2802_v47 = vsel %vm2800_vm13, 1, %v3045_v53  ;;  %v2803_v6 = vsel %vm2801_vm9, 1, %v3045_v53  ;;  %v2793_v18 = vadd.s32 %v2791_v13, %v2787_v4 }
 0x5f2   : > { %vm2805_vm5 = vcmp.eq.s32.totalorder %v6111_v36, 7  ;;  %vm2810_vm15 = vcmp.eq.s32.totalorder %v6068_v2, 7  ;;  %v2806_v38 = vsel %vm2804_vm14, 1, %v3045_v53  ;;  %vm2811_vm4 = vcmp.eq.s32.totalorder %v6113_v34, 7 }
 0x5f3   : > { %vm2794_vm3 = vcmp.gt.s32.totalorder %v2792_v62, %v2774_v20  ;;  %v2807_v51 = vsel %vm2805_vm5, 1, %v3045_v53  ;;  %vm2795_vm6 = vcmp.gt.s32.totalorder %v2793_v18, %v2775_v16  ;;  %v2808_v43 = vadd.s32 %v2806_v38, %v2802_v47 }
 0x5f4   : > { %v2796_v63 = vsel %vm2794_vm3, %v2792_v62, %v2774_v20  ;;  %v2798_v32 = vsel %vm2794_vm3, 6, %v2776_v22  ;;  %v2797_v29 = vsel %vm2795_vm6, %v2793_v18, %v2775_v16  ;;  %v2799_v42 = vsel %vm2795_vm6, 6, %v2777_v21 }
 0x5f5   : > { %v2809_v1 = vadd.s32 %v2807_v51, %v2803_v6  ;;  %v2812_v52 = vsel %vm2810_vm15, 1, %v3045_v53  ;;  %v2813_v2 = vsel %vm2811_vm4, 1, %v3045_v53 }
 0x5f6   : > { %v2814_v36 = vadd.s32 %v2812_v52, %v2808_v43 }
 0x5f7   : > { %v2815_v27 = vadd.s32 %v2813_v2, %v2809_v1 }
 0x5f8   : > { %vm2816_vm0 = vcmp.gt.s32.totalorder %v2814_v36, %v2796_v63 }
 0x5f9   : > { %vm2817_vm11 = vcmp.gt.s32.totalorder %v2815_v27, %v2797_v29  ;;  %v2818_v34 = vsel %vm2816_vm0, 7, %v2798_v32 }
 0x5fa   : > { %v2819_v50 = vsel %vm2817_vm11, 7, %v2799_v42  ;;  %2820 = vst [vmem:[%s151_s7] sm:$0xff] %v2818_v34 }
 0x5fb   : > { %2821 = vst [vmem:[%s151_s7 + $0x8] sm:$0xff] %v2819_v50 }
 0x5fc   : > { %2993 = shalt.err (!%p2990_p3)
}
 0x5fd   : > { %s2994_s25 = scalar_lea.hbm %s6221_s17, 256  ;;  %s2998_s28 = scalar_lea.hbm %s6269_s2, 512 }
 0x5fe   : > { %p2995_p4 = scmp.ne.s32.totalorder %s6221_s17, %s2994_s25  ;;  %p2999_p9 = scmp.lt.s32.totalorder %s6221_s17, %s6269_s2 }
 0x5ff   : > { %p3000_p10 = scmp.lt.s32.totalorder %s2998_s28, %s2994_s25 }
 0x600   : > { %p2996_p7 = pnand %p2995_p4, %p3102_p5 }
 0x601   : > { %p3001_p11 = por %p3000_p10, %p2999_p9 }
 0x602   : > { %p2997_p8 = pneg %p2996_p7 }
 0x604   : > { %p3002_p12 = pnand %p3001_p11, %p2997_p8 }
 0x606   : > { %3005 = shalt.err (!%p3002_p12)
}
 0x607   : > { %s3047_s3 = smov 128   ;;  %s3048_s4 = smov 8  }
 0x608   : > { %2924 = dma.vmem_to_hbm [thread:$0]  (%p3102_p5), %s6223_s8, 256, %s6221_s17, %s6227_s13, %s3047_s3, %s3047_s3, %s3048_s4  }
 0x609 PF: > { %p2930_p13 = scmp.ge.s32.totalorder %s3040_s12, 2  ;;  %s2851_s5 = sand.u32 1, %s3028_s9  }
 0x60a   : > { %s2852_s6 = scalar_lea.sflag [#allocation3], %s2851_s5 }
 0x60b   : > { %p2927_p0 = pnand %p2930_p13, %p3106_p6 }
 0x60d   : > { %p2928_p1 = pneg %p2927_p0 }
 0x60f   : > { %3023 = dma.done.wait (%p2928_p1), %s2852_s6, 256  }
 0x610   : > { %3025 = vsyncadd (%p2928_p1), %s2852_s6, 4294967040  ;;  %p12_p2 = scmp.ge.s32.totalorder %s3089_s15, 4   ;;  %s6705_s9 = smov %s3032_s10 }
 0x611   : > { %s6706_s10 = smov %s3036_s11  ;;  %s6707_s11 = smov %s3100_s18 }
 0x612   : > { %s6708_s12 = smov %s3089_s15  ;;  %14 = sbr.rel (!%p12_p2) target bundleno = 3 (0x3), region = 66 }
 0x617   :  { %2857 = vsyncpa [#allocation3], 1 }
 0x618   :  { %2859 = vsyncpa [#allocation3 + $0x1], 1 }

</bundles_post_ra>
